<compile_context>
chip_gen: v6e
topology: v6e:2x2x1
jax: 0.10.0
libtpu: 0.0.40
codegen_flags: <defaults>
</compile_context>

<pallas_src>
import jax
import jax.numpy as jnp
from jax import lax
from jax.experimental import pallas as pl
from jax.experimental.pallas import tpu as pltpu

EPS = 1e-5


# ---------------------------------------------------------------------------
# Kernel 1+2: 3x3 conv (+ optional fused BN-affine+ReLU prologue) with a fused
# per-channel sum / sum-of-squares epilogue (BatchNorm statistics).
# ---------------------------------------------------------------------------
def _make_conv_kernel(H, W, C, fused):
    Wp = W + 2
    M = H * Wp
    pad_rows = Wp + 1
    taps = [di * Wp + dj for di in range(3) for dj in range(3)]

    def kernel(*refs):
        if fused:
            x_ref, w_ref, mask_ref, scale_ref, shift_ref, o_ref, st_ref = refs
        else:
            x_ref, w_ref, mask_ref, o_ref, st_ref = refs

        mask = mask_ref[...]                        # (M, 1) f32: 1 on real pixels

        if fused:
            # BN1 affine + ReLU + border re-zero in f32, one bf16 cast for the
            # whole plane, then pad to a conv-ready zero-bordered plane in VMEM.
            xf = x_ref[0].astype(jnp.float32)                        # (M, C)
            xf = jnp.maximum(xf * scale_ref[...] + shift_ref[...], 0.0) * mask
            z = jnp.zeros((pad_rows, C), jnp.bfloat16)
            xb = jnp.concatenate([z, xf.astype(jnp.bfloat16), z], axis=0)
        else:
            xb = x_ref[0]            # Layout-A bf16 plane, already zero padded

        # In-VMEM im2col: concatenate the 9 shifted taps along lanes, then one
        # K = 9*C MXU dot (f32 accumulation inside the MXU).
        slab = jnp.concatenate([xb[s:s + M, :] for s in taps], axis=1)
        acc = jnp.dot(slab, w_ref[...], preferred_element_type=jnp.float32)

        # Zero the garbage columns, emit per-plane BN statistics, and store the
        # whole plane with a single lane-dense aligned store.
        macc = acc * mask                                            # (M, C) f32
        st_ref[0] = jnp.concatenate(
            [jnp.sum(macc, axis=0, keepdims=True),
             jnp.sum(macc * macc, axis=0, keepdims=True)], axis=0)
        o_ref[0] = macc.astype(o_ref.dtype)

    return kernel


def conv3x3(x_plane, w_flat, mask, H, W, C, scale=None, shift=None):
    """One 3x3/stride-1/pad-1 bias-free conv over flattened planes.

    x_plane: (N, L, C) bf16 Layout-A plane (conv1) or (N, M, C) bf16 Layout-B
    plane when fusing BN1+ReLU (conv2).  Returns (h, stats): h is (N, M, C)
    bf16 Layout B; stats is (N, 2, C) f32 [sum; sum_sq] over valid pixels.
    """
    # TODO(synk): for large feature maps (64x64+, C>=256) add an H-band grid
    # axis with a halo and tile the im2col dot over M so per-step VMEM stays
    # inside v7x's 64 MiB.
    N, rows_in, _ = x_plane.shape
    Wp = W + 2
    M = H * Wp
    fused = scale is not None

    inputs = [x_plane, w_flat, mask]
    in_specs = [pl.BlockSpec((1, rows_in, C), lambda n: (n, 0, 0)),
                pl.BlockSpec((9 * C, C), lambda n: (0, 0)),
                pl.BlockSpec((M, 1), lambda n: (0, 0))]
    if fused:
        inputs += [scale.reshape(1, C).astype(jnp.float32),
                   shift.reshape(1, C).astype(jnp.float32)]
        in_specs += [pl.BlockSpec((1, C), lambda n: (0, 0)),
                     pl.BlockSpec((1, C), lambda n: (0, 0))]

    return pl.pallas_call(
        _make_conv_kernel(H, W, C, fused),
        out_shape=(jax.ShapeDtypeStruct((N, M, C), jnp.bfloat16),
                   jax.ShapeDtypeStruct((N, 2, C), jnp.float32)),
        grid_spec=pltpu.PrefetchScalarGridSpec(
            num_scalar_prefetch=0,
            grid=(N,),
            in_specs=in_specs,
            out_specs=(pl.BlockSpec((1, M, C), lambda n: (n, 0, 0)),
                       pl.BlockSpec((1, 2, C), lambda n: (n, 0, 0)))),
        compiler_params=pltpu.CompilerParams(
            dimension_semantics=("parallel",)),
    )(*inputs)


# ---------------------------------------------------------------------------
# Kernel 3: fused BN2 application + residual add (per-plane elementwise).
# ---------------------------------------------------------------------------
def _make_bn_residual_kernel(H, W, C):
    Wp = W + 2
    M = H * Wp

    def kernel(h_ref, x_ref, scale_ref, shift_ref, o_ref):
        h = h_ref[0].astype(jnp.float32)                             # (M, C)
        # Skip connection read from the same zero-padded Layout-A plane conv1
        # consumed: pixel (i, j) = flat row (i+1)*Wp + (j+1) = B-row + Wp + 1.
        xs = x_ref[0, Wp + 1:Wp + 1 + M, :].astype(jnp.float32)
        o_ref[0] = h * scale_ref[...] + shift_ref[...] + xs

    return kernel


def bn_residual(h2, x_plane, scale, shift, H, W, C):
    N = h2.shape[0]
    Wp = W + 2
    M = H * Wp
    L = x_plane.shape[1]
    return pl.pallas_call(
        _make_bn_residual_kernel(H, W, C),
        out_shape=jax.ShapeDtypeStruct((N, M, C), jnp.float32),
        grid_spec=pltpu.PrefetchScalarGridSpec(
            num_scalar_prefetch=0,
            grid=(N,),
            in_specs=[pl.BlockSpec((1, M, C), lambda n: (n, 0, 0)),
                      pl.BlockSpec((1, L, C), lambda n: (n, 0, 0)),
                      pl.BlockSpec((1, C), lambda n: (0, 0)),
                      pl.BlockSpec((1, C), lambda n: (0, 0))],
            out_specs=pl.BlockSpec((1, M, C), lambda n: (n, 0, 0))),
        compiler_params=pltpu.CompilerParams(
            dimension_semantics=("parallel",)),
    )(h2, x_plane,
      scale.reshape(1, C).astype(jnp.float32),
      shift.reshape(1, C).astype(jnp.float32))


# ---------------------------------------------------------------------------
# ResNetBlock forward
# ---------------------------------------------------------------------------
def _scale_shift(stats, count, gamma, beta):
    # Tiny (2, C) scalar math kept in plain JAX glue.
    s = jnp.sum(stats, axis=0)
    mean = s[0] / count
    var = jnp.maximum(s[1] / count - mean * mean, 0.0)   # biased train-mode var
    scale = gamma * lax.rsqrt(var + EPS)
    shift = beta - mean * scale
    return scale, shift


def resnet_block_forward(params, x_nchw):
    """y = x + BN2(conv2(ReLU(BN1(conv1(x)))))  (training-mode batch stats)."""
    N, C, H, W = x_nchw.shape
    Wp = W + 2
    M = H * Wp
    L = (H + 3) * Wp

    # NCHW -> NHWC -> zero-padded Layout-A bf16 plane (one fused XLA pass).
    x_nhwc = jnp.transpose(x_nchw, (0, 2, 3, 1)).astype(jnp.float32)
    x_a = jnp.pad(x_nhwc, ((0, 0), (1, 2), (1, 1), (0, 0)))
    x_a = x_a.reshape(N, L, C).astype(jnp.bfloat16)

    # Valid-pixel column mask in Layout B (1 for j < W, 0 for the 2 pad cols).
    mask = ((jnp.arange(M, dtype=jnp.int32) % Wp) < W)
    mask = mask.astype(jnp.float32).reshape(M, 1)

    w1 = params["w1"].reshape(9 * C, C).astype(jnp.bfloat16)
    w2 = params["w2"].reshape(9 * C, C).astype(jnp.bfloat16)

    count = N * H * W
    h1, st1 = conv3x3(x_a, w1, mask, H, W, C)                        # conv1 + stats
    s1, t1 = _scale_shift(st1, count, params["g1"], params["b1"])    # BN1
    h2, st2 = conv3x3(h1, w2, mask, H, W, C, scale=s1, shift=t1)     # BN1+ReLU+conv2
    s2, t2 = _scale_shift(st2, count, params["g2"], params["b2"])    # BN2
    y = bn_residual(h2, x_a, s2, t2, H, W, C)                        # BN2 + skip

    y = y.reshape(N, H, Wp, C)[:, :, :W, :]            # drop the 2 pad columns
    return jnp.transpose(y, (0, 3, 1, 2)).astype(x_nchw.dtype)


def init_params(key, channels):
    k1, k2 = jax.random.split(key)
    return {
        "w1": 0.05 * jax.random.normal(k1, (3, 3, channels, channels), jnp.float32),
        "g1": jnp.ones((channels,), jnp.float32),
        "b1": jnp.zeros((channels,), jnp.float32),
        "w2": 0.05 * jax.random.normal(k2, (3, 3, channels, channels), jnp.float32),
        "g2": jnp.ones((channels,), jnp.float32),
        "b2": jnp.zeros((channels,), jnp.float32),
    }


def resnet_block_reference(params, x_nchw):
    """Pure-JAX f32 reference (matches PyTorch ResNetBlock in train mode)."""
    x = x_nchw.astype(jnp.float32)

    def conv(h, w):
        return lax.conv_general_dilated(
            h, w, window_strides=(1, 1), padding=((1, 1), (1, 1)),
            dimension_numbers=("NCHW", "HWIO", "NCHW"),
            precision=lax.Precision.HIGHEST)

    def bn(h, g, b):
        mean = jnp.mean(h, axis=(0, 2, 3), keepdims=True)
        var = jnp.mean(jnp.square(h - mean), axis=(0, 2, 3), keepdims=True)
        return ((h - mean) * lax.rsqrt(var + EPS) * g.reshape(1, -1, 1, 1)
                + b.reshape(1, -1, 1, 1))

    h = jnp.maximum(bn(conv(x, params["w1"]), params["g1"], params["b1"]), 0.0)
    h = bn(conv(h, params["w2"]), params["g2"], params["b2"])
    return x + h


if __name__ == "__main__":
    key = jax.random.PRNGKey(0)
    kp, kx = jax.random.split(key)

    # ResNetBlock(in_channels=128) at a 16x16 feature map, batch 2
    # (matches one of the blocks used inside the cGAN generator).
    N, C, H, W = 2, 128, 16, 16
    params = init_params(kp, C)
    x = jax.random.normal(kx, (N, C, H, W), dtype=jnp.float32)

    fwd = jax.jit(resnet_block_forward)
    y = jax.block_until_ready(fwd(params, x))

    assert y.shape == (N, C, H, W), y.shape
    assert bool(jnp.all(jnp.isfinite(y)))

    y_ref = jax.jit(resnet_block_reference)(params, x)
    err = float(jnp.max(jnp.abs(y - y_ref)))
    assert err < 0.25, f"max |pallas - reference| = {err}"
    print("KERNEL_OK")
</pallas_src>

<mosaic_0001>
module attributes {stable_mosaic.version = 11 : i64} {
  func.func @kernel(%arg0: i32, %arg1: memref<1x288x128xbf16, #tpu.memory_space<vmem>>, %arg2: memref<1152x128xbf16, #tpu.memory_space<vmem>>, %arg3: memref<288x1xf32, #tpu.memory_space<vmem>>, %arg4: memref<1x128xf32, #tpu.memory_space<vmem>>, %arg5: memref<1x128xf32, #tpu.memory_space<vmem>>, %arg6: memref<1x288x128xbf16, #tpu.memory_space<vmem>>, %arg7: memref<1x2x128xf32, #tpu.memory_space<vmem>>) attributes {dimension_semantics = [#tpu.dimension_semantics<parallel>], iteration_bounds = array<i64: 2>, scalar_prefetch = 0 : i64, scratch_operands = 0 : i64, tpu.core_type = #tpu.core_type<tc>, window_params = [{transform_indices = @transform_0, window_bounds = array<i64: 1, 288, 128>}, {pipeline_mode = #tpu.pipeline_mode<synchronous>, transform_indices = @transform_1, window_bounds = array<i64: 1152, 128>}, {pipeline_mode = #tpu.pipeline_mode<synchronous>, transform_indices = @transform_2, window_bounds = array<i64: 288, 1>}, {pipeline_mode = #tpu.pipeline_mode<synchronous>, transform_indices = @transform_3, window_bounds = array<i64: 1, 128>}, {pipeline_mode = #tpu.pipeline_mode<synchronous>, transform_indices = @transform_4, window_bounds = array<i64: 1, 128>}, {transform_indices = @transform_5, window_bounds = array<i64: 1, 288, 128>}, {transform_indices = @transform_6, window_bounds = array<i64: 1, 2, 128>}]} {
    %c0 = arith.constant 0 : index
    %c0_0 = arith.constant 0 : index
    %0 = vector.load %arg3[%c0, %c0_0] : memref<288x1xf32, #tpu.memory_space<vmem>>, vector<288x1xf32>
    %c0_1 = arith.constant 0 : index
    %c0_2 = arith.constant 0 : index
    %c0_3 = arith.constant 0 : index
    %1 = vector.load %arg1[%c0_1, %c0_2, %c0_3] : memref<1x288x128xbf16, #tpu.memory_space<vmem>>, vector<1x288x128xbf16>
    %2 = vector.shape_cast %1 : vector<1x288x128xbf16> to vector<288x128xbf16>
    %3 = arith.extf %2 : vector<288x128xbf16> to vector<288x128xf32>
    %c0_4 = arith.constant 0 : index
    %c0_5 = arith.constant 0 : index
    %4 = vector.load %arg4[%c0_4, %c0_5] : memref<1x128xf32, #tpu.memory_space<vmem>>, vector<1x128xf32>
    %5 = vector.broadcast %4 : vector<1x128xf32> to vector<288x128xf32>
    %6 = arith.mulf %3, %5 : vector<288x128xf32>
    %c0_6 = arith.constant 0 : index
    %c0_7 = arith.constant 0 : index
    %7 = vector.load %arg5[%c0_6, %c0_7] : memref<1x128xf32, #tpu.memory_space<vmem>>, vector<1x128xf32>
    %8 = vector.broadcast %7 : vector<1x128xf32> to vector<288x128xf32>
    %9 = arith.addf %6, %8 : vector<288x128xf32>
    %cst = arith.constant 0.000000e+00 : f32
    %10 = vector.broadcast %cst : f32 to vector<288x128xf32>
    %11 = arith.maximumf %9, %10 : vector<288x128xf32>
    %12 = vector.broadcast %0 : vector<288x1xf32> to vector<288x128xf32>
    %13 = arith.mulf %11, %12 : vector<288x128xf32>
    %cst_8 = arith.constant 0.000000e+00 : bf16
    %14 = vector.broadcast %cst_8 : bf16 to vector<19x128xbf16>
    %15 = arith.truncf %13 : vector<288x128xf32> to vector<288x128xbf16>
    %16 = tpu.concatenate %14, %15, %14 in 0 : vector<19x128xbf16>, vector<288x128xbf16>, vector<19x128xbf16> -> vector<326x128xbf16>
    %17 = vector.extract_strided_slice %16 {offsets = [0, 0], sizes = [288, 128], strides = [1, 1]} : vector<326x128xbf16> to vector<288x128xbf16>
    %18 = vector.extract_strided_slice %16 {offsets = [1, 0], sizes = [288, 128], strides = [1, 1]} : vector<326x128xbf16> to vector<288x128xbf16>
    %19 = vector.extract_strided_slice %16 {offsets = [2, 0], sizes = [288, 128], strides = [1, 1]} : vector<326x128xbf16> to vector<288x128xbf16>
    %20 = vector.extract_strided_slice %16 {offsets = [18, 0], sizes = [288, 128], strides = [1, 1]} : vector<326x128xbf16> to vector<288x128xbf16>
    %21 = vector.extract_strided_slice %16 {offsets = [19, 0], sizes = [288, 128], strides = [1, 1]} : vector<326x128xbf16> to vector<288x128xbf16>
    %22 = vector.extract_strided_slice %16 {offsets = [20, 0], sizes = [288, 128], strides = [1, 1]} : vector<326x128xbf16> to vector<288x128xbf16>
    %23 = vector.extract_strided_slice %16 {offsets = [36, 0], sizes = [288, 128], strides = [1, 1]} : vector<326x128xbf16> to vector<288x128xbf16>
    %24 = vector.extract_strided_slice %16 {offsets = [37, 0], sizes = [288, 128], strides = [1, 1]} : vector<326x128xbf16> to vector<288x128xbf16>
    %25 = vector.extract_strided_slice %16 {offsets = [38, 0], sizes = [288, 128], strides = [1, 1]} : vector<326x128xbf16> to vector<288x128xbf16>
    %26 = tpu.concatenate %17, %18, %19, %20, %21, %22, %23, %24, %25 in 1 : vector<288x128xbf16>, vector<288x128xbf16>, vector<288x128xbf16>, vector<288x128xbf16>, vector<288x128xbf16>, vector<288x128xbf16>, vector<288x128xbf16>, vector<288x128xbf16>, vector<288x128xbf16> -> vector<288x1152xbf16>
    %c0_9 = arith.constant 0 : index
    %c0_10 = arith.constant 0 : index
    %27 = vector.load %arg2[%c0_9, %c0_10] : memref<1152x128xbf16, #tpu.memory_space<vmem>>, vector<1152x128xbf16>
    %cst_11 = arith.constant dense<0.000000e+00> : vector<288x128xf32>
    %28 = tpu.matmul %26, %27, %cst_11 {dimension_numbers = #tpu.dot_dimension_numbers<[1], [0], [0], [1], [0, 0, 1, 1], [], []>} : vector<288x1152xbf16>, vector<1152x128xbf16>, vector<288x128xf32> -> vector<288x128xf32>
    %29 = vector.broadcast %0 : vector<288x1xf32> to vector<288x128xf32>
    %30 = arith.mulf %28, %29 : vector<288x128xf32>
    %cst_12 = arith.constant dense<0.000000e+00> : vector<128xf32>
    %31 = vector.multi_reduction <add>, %30, %cst_12 [0] : vector<288x128xf32> to vector<128xf32>
    %32 = vector.shape_cast %31 : vector<128xf32> to vector<1x128xf32>
    %33 = arith.mulf %30, %30 : vector<288x128xf32>
    %cst_13 = arith.constant dense<0.000000e+00> : vector<128xf32>
    %34 = vector.multi_reduction <add>, %33, %cst_13 [0] : vector<288x128xf32> to vector<128xf32>
    %35 = vector.shape_cast %34 : vector<128xf32> to vector<1x128xf32>
    %36 = tpu.concatenate %32, %35 in 0 : vector<1x128xf32>, vector<1x128xf32> -> vector<2x128xf32>
    %c0_14 = arith.constant 0 : index
    %c0_15 = arith.constant 0 : index
    %c0_16 = arith.constant 0 : index
    %37 = vector.load %arg7[%c0_14, %c0_15, %c0_16] : memref<1x2x128xf32, #tpu.memory_space<vmem>>, vector<1x2x128xf32>
    %38 = vector.shape_cast %37 : vector<1x2x128xf32> to vector<2x128xf32>
    %39 = vector.shape_cast %36 : vector<2x128xf32> to vector<1x2x128xf32>
    tpu.vector_store %arg7[%c0_14, %c0_15, %c0_16], %39 {strides = array<i32>} : memref<1x2x128xf32, #tpu.memory_space<vmem>>, vector<1x2x128xf32>,
    %40 = arith.truncf %30 : vector<288x128xf32> to vector<288x128xbf16>
    %c0_17 = arith.constant 0 : index
    %c0_18 = arith.constant 0 : index
    %c0_19 = arith.constant 0 : index
    %41 = vector.load %arg6[%c0_17, %c0_18, %c0_19] : memref<1x288x128xbf16, #tpu.memory_space<vmem>>, vector<1x288x128xbf16>
    %42 = vector.shape_cast %41 : vector<1x288x128xbf16> to vector<288x128xbf16>
    %43 = vector.shape_cast %40 : vector<288x128xbf16> to vector<1x288x128xbf16>
    tpu.vector_store %arg6[%c0_17, %c0_18, %c0_19], %43 {strides = array<i32>} : memref<1x288x128xbf16, #tpu.memory_space<vmem>>, vector<1x288x128xbf16>,
    return
  }
  func.func @transform_0(%arg0: i32) -> (i32, i32, i32) {
    %c0_i32 = arith.constant 0 : i32
    %c0_i32_0 = arith.constant 0 : i32
    %c0_i32_1 = arith.constant 0 : i32
    return %arg0, %c0_i32, %c0_i32_0 : i32, i32, i32
  }
  func.func @transform_1(%arg0: i32) -> (i32, i32) {
    %c0_i32 = arith.constant 0 : i32
    %c0_i32_0 = arith.constant 0 : i32
    %c0_i32_1 = arith.constant 0 : i32
    return %c0_i32, %c0_i32_0 : i32, i32
  }
  func.func @transform_2(%arg0: i32) -> (i32, i32) {
    %c0_i32 = arith.constant 0 : i32
    %c0_i32_0 = arith.constant 0 : i32
    %c0_i32_1 = arith.constant 0 : i32
    return %c0_i32, %c0_i32_0 : i32, i32
  }
  func.func @transform_3(%arg0: i32) -> (i32, i32) {
    %c0_i32 = arith.constant 0 : i32
    %c0_i32_0 = arith.constant 0 : i32
    %c0_i32_1 = arith.constant 0 : i32
    return %c0_i32, %c0_i32_0 : i32, i32
  }
  func.func @transform_4(%arg0: i32) -> (i32, i32) {
    %c0_i32 = arith.constant 0 : i32
    %c0_i32_0 = arith.constant 0 : i32
    %c0_i32_1 = arith.constant 0 : i32
    return %c0_i32, %c0_i32_0 : i32, i32
  }
  func.func @transform_5(%arg0: i32) -> (i32, i32, i32) {
    %c0_i32 = arith.constant 0 : i32
    %c0_i32_0 = arith.constant 0 : i32
    %c0_i32_1 = arith.constant 0 : i32
    return %arg0, %c0_i32, %c0_i32_0 : i32, i32, i32
  }
  func.func @transform_6(%arg0: i32) -> (i32, i32, i32) {
    %c0_i32 = arith.constant 0 : i32
    %c0_i32_0 = arith.constant 0 : i32
    %c0_i32_1 = arith.constant 0 : i32
    return %arg0, %c0_i32, %c0_i32_0 : i32, i32, i32
  }
}

module attributes {stable_mosaic.version = 11 : i64} {
  func.func @kernel(%arg0: i32, %arg1: memref<1x342x128xbf16, #tpu.memory_space<vmem>>, %arg2: memref<1152x128xbf16, #tpu.memory_space<vmem>>, %arg3: memref<288x1xf32, #tpu.memory_space<vmem>>, %arg4: memref<1x288x128xbf16, #tpu.memory_space<vmem>>, %arg5: memref<1x2x128xf32, #tpu.memory_space<vmem>>) attributes {dimension_semantics = [#tpu.dimension_semantics<parallel>], iteration_bounds = array<i64: 2>, scalar_prefetch = 0 : i64, scratch_operands = 0 : i64, tpu.core_type = #tpu.core_type<tc>, window_params = [{transform_indices = @transform_0, window_bounds = array<i64: 1, 342, 128>}, {pipeline_mode = #tpu.pipeline_mode<synchronous>, transform_indices = @transform_1, window_bounds = array<i64: 1152, 128>}, {pipeline_mode = #tpu.pipeline_mode<synchronous>, transform_indices = @transform_2, window_bounds = array<i64: 288, 1>}, {transform_indices = @transform_3, window_bounds = array<i64: 1, 288, 128>}, {transform_indices = @transform_4, window_bounds = array<i64: 1, 2, 128>}]} {
    %c0 = arith.constant 0 : index
    %c0_0 = arith.constant 0 : index
    %0 = vector.load %arg3[%c0, %c0_0] : memref<288x1xf32, #tpu.memory_space<vmem>>, vector<288x1xf32>
    %c0_1 = arith.constant 0 : index
    %c0_2 = arith.constant 0 : index
    %c0_3 = arith.constant 0 : index
    %1 = vector.load %arg1[%c0_1, %c0_2, %c0_3] : memref<1x342x128xbf16, #tpu.memory_space<vmem>>, vector<1x342x128xbf16>
    %2 = vector.shape_cast %1 : vector<1x342x128xbf16> to vector<342x128xbf16>
    %3 = vector.extract_strided_slice %2 {offsets = [0, 0], sizes = [288, 128], strides = [1, 1]} : vector<342x128xbf16> to vector<288x128xbf16>
    %4 = vector.extract_strided_slice %2 {offsets = [1, 0], sizes = [288, 128], strides = [1, 1]} : vector<342x128xbf16> to vector<288x128xbf16>
    %5 = vector.extract_strided_slice %2 {offsets = [2, 0], sizes = [288, 128], strides = [1, 1]} : vector<342x128xbf16> to vector<288x128xbf16>
    %6 = vector.extract_strided_slice %2 {offsets = [18, 0], sizes = [288, 128], strides = [1, 1]} : vector<342x128xbf16> to vector<288x128xbf16>
    %7 = vector.extract_strided_slice %2 {offsets = [19, 0], sizes = [288, 128], strides = [1, 1]} : vector<342x128xbf16> to vector<288x128xbf16>
    %8 = vector.extract_strided_slice %2 {offsets = [20, 0], sizes = [288, 128], strides = [1, 1]} : vector<342x128xbf16> to vector<288x128xbf16>
    %9 = vector.extract_strided_slice %2 {offsets = [36, 0], sizes = [288, 128], strides = [1, 1]} : vector<342x128xbf16> to vector<288x128xbf16>
    %10 = vector.extract_strided_slice %2 {offsets = [37, 0], sizes = [288, 128], strides = [1, 1]} : vector<342x128xbf16> to vector<288x128xbf16>
    %11 = vector.extract_strided_slice %2 {offsets = [38, 0], sizes = [288, 128], strides = [1, 1]} : vector<342x128xbf16> to vector<288x128xbf16>
    %12 = tpu.concatenate %3, %4, %5, %6, %7, %8, %9, %10, %11 in 1 : vector<288x128xbf16>, vector<288x128xbf16>, vector<288x128xbf16>, vector<288x128xbf16>, vector<288x128xbf16>, vector<288x128xbf16>, vector<288x128xbf16>, vector<288x128xbf16>, vector<288x128xbf16> -> vector<288x1152xbf16>
    %c0_4 = arith.constant 0 : index
    %c0_5 = arith.constant 0 : index
    %13 = vector.load %arg2[%c0_4, %c0_5] : memref<1152x128xbf16, #tpu.memory_space<vmem>>, vector<1152x128xbf16>
    %cst = arith.constant dense<0.000000e+00> : vector<288x128xf32>
    %14 = tpu.matmul %12, %13, %cst {dimension_numbers = #tpu.dot_dimension_numbers<[1], [0], [0], [1], [0, 0, 1, 1], [], []>} : vector<288x1152xbf16>, vector<1152x128xbf16>, vector<288x128xf32> -> vector<288x128xf32>
    %15 = vector.broadcast %0 : vector<288x1xf32> to vector<288x128xf32>
    %16 = arith.mulf %14, %15 : vector<288x128xf32>
    %cst_6 = arith.constant dense<0.000000e+00> : vector<128xf32>
    %17 = vector.multi_reduction <add>, %16, %cst_6 [0] : vector<288x128xf32> to vector<128xf32>
    %18 = vector.shape_cast %17 : vector<128xf32> to vector<1x128xf32>
    %19 = arith.mulf %16, %16 : vector<288x128xf32>
    %cst_7 = arith.constant dense<0.000000e+00> : vector<128xf32>
    %20 = vector.multi_reduction <add>, %19, %cst_7 [0] : vector<288x128xf32> to vector<128xf32>
    %21 = vector.shape_cast %20 : vector<128xf32> to vector<1x128xf32>
    %22 = tpu.concatenate %18, %21 in 0 : vector<1x128xf32>, vector<1x128xf32> -> vector<2x128xf32>
    %c0_8 = arith.constant 0 : index
    %c0_9 = arith.constant 0 : index
    %c0_10 = arith.constant 0 : index
    %23 = vector.load %arg5[%c0_8, %c0_9, %c0_10] : memref<1x2x128xf32, #tpu.memory_space<vmem>>, vector<1x2x128xf32>
    %24 = vector.shape_cast %23 : vector<1x2x128xf32> to vector<2x128xf32>
    %25 = vector.shape_cast %22 : vector<2x128xf32> to vector<1x2x128xf32>
    tpu.vector_store %arg5[%c0_8, %c0_9, %c0_10], %25 {strides = array<i32>} : memref<1x2x128xf32, #tpu.memory_space<vmem>>, vector<1x2x128xf32>,
    %26 = arith.truncf %16 : vector<288x128xf32> to vector<288x128xbf16>
    %c0_11 = arith.constant 0 : index
    %c0_12 = arith.constant 0 : index
    %c0_13 = arith.constant 0 : index
    %27 = vector.load %arg4[%c0_11, %c0_12, %c0_13] : memref<1x288x128xbf16, #tpu.memory_space<vmem>>, vector<1x288x128xbf16>
    %28 = vector.shape_cast %27 : vector<1x288x128xbf16> to vector<288x128xbf16>
    %29 = vector.shape_cast %26 : vector<288x128xbf16> to vector<1x288x128xbf16>
    tpu.vector_store %arg4[%c0_11, %c0_12, %c0_13], %29 {strides = array<i32>} : memref<1x288x128xbf16, #tpu.memory_space<vmem>>, vector<1x288x128xbf16>,
    return
  }
  func.func @transform_0(%arg0: i32) -> (i32, i32, i32) {
    %c0_i32 = arith.constant 0 : i32
    %c0_i32_0 = arith.constant 0 : i32
    %c0_i32_1 = arith.constant 0 : i32
    return %arg0, %c0_i32, %c0_i32_0 : i32, i32, i32
  }
  func.func @transform_1(%arg0: i32) -> (i32, i32) {
    %c0_i32 = arith.constant 0 : i32
    %c0_i32_0 = arith.constant 0 : i32
    %c0_i32_1 = arith.constant 0 : i32
    return %c0_i32, %c0_i32_0 : i32, i32
  }
  func.func @transform_2(%arg0: i32) -> (i32, i32) {
    %c0_i32 = arith.constant 0 : i32
    %c0_i32_0 = arith.constant 0 : i32
    %c0_i32_1 = arith.constant 0 : i32
    return %c0_i32, %c0_i32_0 : i32, i32
  }
  func.func @transform_3(%arg0: i32) -> (i32, i32, i32) {
    %c0_i32 = arith.constant 0 : i32
    %c0_i32_0 = arith.constant 0 : i32
    %c0_i32_1 = arith.constant 0 : i32
    return %arg0, %c0_i32, %c0_i32_0 : i32, i32, i32
  }
  func.func @transform_4(%arg0: i32) -> (i32, i32, i32) {
    %c0_i32 = arith.constant 0 : i32
    %c0_i32_0 = arith.constant 0 : i32
    %c0_i32_1 = arith.constant 0 : i32
    return %arg0, %c0_i32, %c0_i32_0 : i32, i32, i32
  }
}

module attributes {stable_mosaic.version = 11 : i64} {
  func.func @kernel(%arg0: i32, %arg1: memref<1x288x128xbf16, #tpu.memory_space<vmem>>, %arg2: memref<1x342x128xbf16, #tpu.memory_space<vmem>>, %arg3: memref<1x128xf32, #tpu.memory_space<vmem>>, %arg4: memref<1x128xf32, #tpu.memory_space<vmem>>, %arg5: memref<1x288x128xf32, #tpu.memory_space<vmem>>) attributes {dimension_semantics = [#tpu.dimension_semantics<parallel>], iteration_bounds = array<i64: 2>, scalar_prefetch = 0 : i64, scratch_operands = 0 : i64, tpu.core_type = #tpu.core_type<tc>, window_params = [{transform_indices = @transform_0, window_bounds = array<i64: 1, 288, 128>}, {transform_indices = @transform_1, window_bounds = array<i64: 1, 342, 128>}, {pipeline_mode = #tpu.pipeline_mode<synchronous>, transform_indices = @transform_2, window_bounds = array<i64: 1, 128>}, {pipeline_mode = #tpu.pipeline_mode<synchronous>, transform_indices = @transform_3, window_bounds = array<i64: 1, 128>}, {transform_indices = @transform_4, window_bounds = array<i64: 1, 288, 128>}]} {
    %c0 = arith.constant 0 : index
    %c0_0 = arith.constant 0 : index
    %c0_1 = arith.constant 0 : index
    %0 = vector.load %arg1[%c0, %c0_0, %c0_1] : memref<1x288x128xbf16, #tpu.memory_space<vmem>>, vector<1x288x128xbf16>
    %1 = vector.shape_cast %0 : vector<1x288x128xbf16> to vector<288x128xbf16>
    %2 = arith.extf %1 : vector<288x128xbf16> to vector<288x128xf32>
    %c0_2 = arith.constant 0 : index
    %c19 = arith.constant 19 : index
    %c0_3 = arith.constant 0 : index
    %3 = vector.load %arg2[%c0_2, %c19, %c0_3] : memref<1x342x128xbf16, #tpu.memory_space<vmem>>, vector<1x288x128xbf16>
    %4 = vector.shape_cast %3 : vector<1x288x128xbf16> to vector<288x128xbf16>
    %5 = arith.extf %4 : vector<288x128xbf16> to vector<288x128xf32>
    %c0_4 = arith.constant 0 : index
    %c0_5 = arith.constant 0 : index
    %6 = vector.load %arg3[%c0_4, %c0_5] : memref<1x128xf32, #tpu.memory_space<vmem>>, vector<1x128xf32>
    %7 = vector.broadcast %6 : vector<1x128xf32> to vector<288x128xf32>
    %8 = arith.mulf %2, %7 : vector<288x128xf32>
    %c0_6 = arith.constant 0 : index
    %c0_7 = arith.constant 0 : index
    %9 = vector.load %arg4[%c0_6, %c0_7] : memref<1x128xf32, #tpu.memory_space<vmem>>, vector<1x128xf32>
    %10 = vector.broadcast %9 : vector<1x128xf32> to vector<288x128xf32>
    %11 = arith.addf %8, %10 : vector<288x128xf32>
    %12 = arith.addf %11, %5 : vector<288x128xf32>
    %c0_8 = arith.constant 0 : index
    %c0_9 = arith.constant 0 : index
    %c0_10 = arith.constant 0 : index
    %13 = vector.load %arg5[%c0_8, %c0_9, %c0_10] : memref<1x288x128xf32, #tpu.memory_space<vmem>>, vector<1x288x128xf32>
    %14 = vector.shape_cast %13 : vector<1x288x128xf32> to vector<288x128xf32>
    %15 = vector.shape_cast %12 : vector<288x128xf32> to vector<1x288x128xf32>
    tpu.vector_store %arg5[%c0_8, %c0_9, %c0_10], %15 {strides = array<i32>} : memref<1x288x128xf32, #tpu.memory_space<vmem>>, vector<1x288x128xf32>,
    return
  }
  func.func @transform_0(%arg0: i32) -> (i32, i32, i32) {
    %c0_i32 = arith.constant 0 : i32
    %c0_i32_0 = arith.constant 0 : i32
    %c0_i32_1 = arith.constant 0 : i32
    return %arg0, %c0_i32, %c0_i32_0 : i32, i32, i32
  }
  func.func @transform_1(%arg0: i32) -> (i32, i32, i32) {
    %c0_i32 = arith.constant 0 : i32
    %c0_i32_0 = arith.constant 0 : i32
    %c0_i32_1 = arith.constant 0 : i32
    return %arg0, %c0_i32, %c0_i32_0 : i32, i32, i32
  }
  func.func @transform_2(%arg0: i32) -> (i32, i32) {
    %c0_i32 = arith.constant 0 : i32
    %c0_i32_0 = arith.constant 0 : i32
    %c0_i32_1 = arith.constant 0 : i32
    return %c0_i32, %c0_i32_0 : i32, i32
  }
  func.func @transform_3(%arg0: i32) -> (i32, i32) {
    %c0_i32 = arith.constant 0 : i32
    %c0_i32_0 = arith.constant 0 : i32
    %c0_i32_1 = arith.constant 0 : i32
    return %c0_i32, %c0_i32_0 : i32, i32
  }
  func.func @transform_4(%arg0: i32) -> (i32, i32, i32) {
    %c0_i32 = arith.constant 0 : i32
    %c0_i32_0 = arith.constant 0 : i32
    %c0_i32_1 = arith.constant 0 : i32
    return %arg0, %c0_i32, %c0_i32_0 : i32, i32, i32
  }
}

</mosaic_0001>

<bundles_post_ra>
// kernel: resnet_block_forward.5
= control target key start
LH: loop header
LB: loop body
LE: loop exit
PB: predicated region body
PF: predicated region fallthrough
CT: control target
= control target key end

     0   :  { %s966_s15 = smov 0   ;;  %s1189_s0 = inlined_call_operand.vmem [shape: bf16[2,288,128], index: 0, kind: input, shape index: {}]   ;;  %s1190_s1 = inlined_call_operand.vmem [shape: bf16[2,342,128], index: 1, kind: input, shape index: {}]   ;;  %s1191_s2 = inlined_call_operand.vmem [shape: f32[1,128], index: 2, kind: input, shape index: {}]   ;;  %s1192_s3 = inlined_call_operand.vmem [shape: f32[1,128], index: 3, kind: input, shape index: {}]   ;;  %s1193_s4 = inlined_call_operand.vmem [shape: f32[2,288,128], index: 4, kind: output, shape index: {}]  }
   0x1 LB: > { %s736_s16 = sadd.s32 4294967295, %s939_s15   ;;  %p740_p0 = scmp.ge.s32.totalorder %s939_s15, 1  ;;  %s939_s15 = sphi %s966_s15, %s14_s15  }
   0x2   : > { %p172_p1 = scmp.lt.s32.totalorder %s939_s15, 3 }
   0x4   : > { %p173_p2 = pnand %p740_p0, %p172_p1 }
   0x5   : > { %p203_p3 = scmp.lt.s32.totalorder (!%p173_p2), %s736_s16, 1 }
   0x6   : > { %176 = sbr.rel (%p173_p2) target bundleno = 83 (0x53), region = 36 }
   0xb   : > { %s1195_s16 = smov (!%p203_p3, %s736_s16), 1  ;;  %v992_v1 = vld [vmem:[%s1191_s2] ss:$0 sm:$0xff]  ;;  %vm487_vm0 = vcmask 1044480  }
   0xc   : > { %s922_s17 = smul.u32 144, %s1195_s16  ;;  %v1002_v12 = vld [vmem:[%s1192_s3] ss:$0 sm:$0xff] }
   0xd   : > { %s923_s18 = smul.u32 172, %s1195_s16 }
   0xe   : > { %s981_s21 = scalar_lea.vmem %s1189_s0, %s922_s17  ;;  %s924_s27 = smul.u32 288, %s1195_s16 }
   0xf   : > { %s986_s24 = scalar_lea.vmem %s1190_s1, %s923_s18  ;;  %v749_v0 = vld [vmem:[%s981_s21] sm:$0xff]   ;;  %v888_v2 = vld [vmem:[%s981_s21 + $0x8] sm:$0xff]   ;;  %v889_v28 = vld [vmem:[%s981_s21 + $0x10] sm:$0xff]  }
  0x10   : > { %v750_v3 = vunpack.c.l.bf16 %v749_v0  ;;  %v290_v4 = vld [vmem:[%s986_s24 + $0x8] sm:$0xe]  ;;  %v291_v5 = vld [vmem:[%s986_s24 + $0xc] sm:$0xf]  ;;  %v751_v6 = vunpack.c.h.bf16 %v749_v0  ;;  %v905_v7 = vld [vmem:[%s986_s24 + $0x10] sm:$0xff]   ;;  %v754_v8 = vunpack.c.l.bf16 %v888_v2  ;;  %v755_v9 = vunpack.c.h.bf16 %v888_v2  ;;  %s1016_s6 = scalar_lea.vmem %s1193_s4, %s924_s27 }
  0x11   : > { %v327_v10 = vunpack.c.l.bf16 %v290_v4  ;;  %v328_v11 = vunpack.c.l.bf16 %v291_v5  ;;  %v822_v13 = vunpack.c.l.bf16 %v905_v7  ;;  %v823_v14 = vunpack.c.h.bf16 %v905_v7  ;;  %v906_v15 = vld [vmem:[%s986_s24 + $0x18] sm:$0xff]   ;;  %v907_v33 = vld [vmem:[%s986_s24 + $0x20] sm:$0xff]   ;;  %v908_v43 = vld [vmem:[%s986_s24 + $0x28] sm:$0xff]  }
  0x12   : > { %v371_v16 = vmul.f32 %v750_v3, %v992_v1  ;;  %v372_v17 = vmul.f32 %v751_v6, %v992_v1  ;;  %v373_v18 = vmul.f32 %v754_v8, %v992_v1  ;;  %v826_v19 = vunpack.c.l.bf16 %v906_v15  ;;  %v890_v34 = vld [vmem:[%s981_s21 + $0x18] sm:$0xff]   ;;  %v891_v56 = vld [vmem:[%s981_s21 + $0x20] sm:$0xff]   ;;  %v909_v2 = vld [vmem:[%s986_s24 + $0x30] sm:$0xff]  }
  0x13   : > { %v488_v20 = vrot.slane %v327_v10, 3  ;;  %v489_v21 = vrot.slane %v328_v11, 3  ;;  %v491_v22 = vrot.slane %v822_v13, 3  ;;  %v493_v23 = vrot.slane %v823_v14, 3  ;;  %v892_v3 = vld [vmem:[%s981_s21 + $0x28] sm:$0xff]   ;;  %v910_v13 = vld [vmem:[%s986_s24 + $0x38] sm:$0xff]  }
  0x14   : > { %v414_v24 = vadd.f32 %v1002_v12, %v371_v16  ;;  %v415_v25 = vadd.f32 %v1002_v12, %v372_v17  ;;  %v416_v26 = vadd.f32 %v1002_v12, %v373_v18  ;;  %v374_v27 = vmul.f32 %v755_v9, %v992_v1 }
  0x15   : > { %v490_v29 = vsel %vm487_vm0, %v488_v20, %v489_v21  ;;  %v492_v30 = vsel %vm487_vm0, %v489_v21, %v491_v22  ;;  %v494_v31 = vsel %vm487_vm0, %v491_v22, %v493_v23  ;;  %v495_v32 = vrot.slane %v826_v19, 3 }
  0x16   : > { %v597_v35 = vadd.f32 %v490_v29, %v414_v24  ;;  %v598_v36 = vadd.f32 %v492_v30, %v415_v25  ;;  %v599_v37 = vadd.f32 %v494_v31, %v416_v26  ;;  %v417_v38 = vadd.f32 %v1002_v12, %v374_v27  ;;  %v893_v26 = vld [vmem:[%s981_s21 + $0x30] sm:$0xff]  }
  0x17   : > { %v496_v39 = vsel %vm487_vm0, %v493_v23, %v495_v32  ;;  %v758_v40 = vunpack.c.l.bf16 %v889_v28  ;;  %v827_v41 = vunpack.c.h.bf16 %v906_v15  ;;  %v759_v42 = vunpack.c.h.bf16 %v889_v28 }
  0x18   : > { %633 = vst [vmem:[%s1016_s6] sm:$0xff] %v597_v35  ;;  %634 = vst [vmem:[%s1016_s6 + $0x8] sm:$0xff] %v598_v36  ;;  %v600_v44 = vadd.f32 %v496_v39, %v417_v38  ;;  %v830_v45 = vunpack.c.l.bf16 %v907_v33  ;;  %v762_v46 = vunpack.c.l.bf16 %v890_v34  ;;  %v831_v47 = vunpack.c.h.bf16 %v907_v33  ;;  %v911_v35 = vld [vmem:[%s986_s24 + $0x40] sm:$0xff]   ;;  %v894_v36 = vld [vmem:[%s981_s21 + $0x38] sm:$0xff]  }
  0x19   : > { %635 = vst [vmem:[%s1016_s6 + $0x10] sm:$0xff] %v599_v37  ;;  %v375_v48 = vmul.f32 %v758_v40, %v992_v1  ;;  %v497_v49 = vrot.slane %v827_v41, 3  ;;  %v376_v50 = vmul.f32 %v759_v42, %v992_v1  ;;  %v763_v51 = vunpack.c.h.bf16 %v890_v34 }
  0x1a   : > { %636 = vst [vmem:[%s1016_s6 + $0x18] sm:$0xff] %v600_v44  ;;  %v499_v52 = vrot.slane %v830_v45, 3  ;;  %v377_v53 = vmul.f32 %v762_v46, %v992_v1  ;;  %v501_v54 = vrot.slane %v831_v47, 3  ;;  %v834_v55 = vunpack.c.l.bf16 %v908_v43  ;;  %v912_v45 = vld [vmem:[%s986_s24 + $0x48] sm:$0xff]  }
  0x1b   : > { %v418_v57 = vadd.f32 %v1002_v12, %v375_v48  ;;  %v498_v58 = vsel %vm487_vm0, %v495_v32, %v497_v49  ;;  %v419_v59 = vadd.f32 %v1002_v12, %v376_v50  ;;  %v378_v60 = vmul.f32 %v763_v51, %v992_v1 }
  0x1c   : > { %v500_v61 = vsel %vm487_vm0, %v497_v49, %v499_v52  ;;  %v420_v62 = vadd.f32 %v1002_v12, %v377_v53  ;;  %v502_v63 = vsel %vm487_vm0, %v499_v52, %v501_v54  ;;  %v503_v0 = vrot.slane %v834_v55, 3 }
  0x1d   : > { %v601_v4 = vadd.f32 %v498_v58, %v418_v57  ;;  %v602_v5 = vadd.f32 %v500_v61, %v419_v59  ;;  %v421_v6 = vadd.f32 %v1002_v12, %v378_v60  ;;  %v766_v7 = vunpack.c.l.bf16 %v891_v56  ;;  %v895_v58 = vld [vmem:[%s981_s21 + $0x40] sm:$0xff]  }
  0x1e   : > { %v603_v8 = vadd.f32 %v502_v63, %v420_v62  ;;  %v504_v9 = vsel %vm487_vm0, %v501_v54, %v503_v0  ;;  %v835_v10 = vunpack.c.h.bf16 %v908_v43  ;;  %v767_v11 = vunpack.c.h.bf16 %v891_v56 }
  0x1f   : > { %637 = vst [vmem:[%s1016_s6 + $0x20] sm:$0xff] %v601_v4  ;;  %638 = vst [vmem:[%s1016_s6 + $0x28] sm:$0xff] %v602_v5  ;;  %v604_v14 = vadd.f32 %v504_v9, %v421_v6  ;;  %v379_v15 = vmul.f32 %v766_v7, %v992_v1  ;;  %v838_v16 = vunpack.c.l.bf16 %v909_v2  ;;  %v770_v17 = vunpack.c.l.bf16 %v892_v3  ;;  %v913_v4 = vld [vmem:[%s986_s24 + $0x50] sm:$0xff]   ;;  %v896_v5 = vld [vmem:[%s981_s21 + $0x48] sm:$0xff]  }
  0x20   : > { %639 = vst [vmem:[%s1016_s6 + $0x30] sm:$0xff] %v603_v8  ;;  %v505_v18 = vrot.slane %v835_v10, 3  ;;  %v380_v19 = vmul.f32 %v767_v11, %v992_v1  ;;  %v839_v20 = vunpack.c.h.bf16 %v909_v2  ;;  %v771_v21 = vunpack.c.h.bf16 %v892_v3 }
  0x21   : > { %640 = vst [vmem:[%s1016_s6 + $0x38] sm:$0xff] %v604_v14  ;;  %v422_v22 = vadd.f32 %v1002_v12, %v379_v15  ;;  %v507_v23 = vrot.slane %v838_v16, 3  ;;  %v381_v24 = vmul.f32 %v770_v17, %v992_v1  ;;  %v842_v25 = vunpack.c.l.bf16 %v910_v13  ;;  %v914_v15 = vld [vmem:[%s986_s24 + $0x58] sm:$0xff]  }
  0x22   : > { %v506_v27 = vsel %vm487_vm0, %v503_v0, %v505_v18  ;;  %v423_v28 = vadd.f32 %v1002_v12, %v380_v19  ;;  %v509_v29 = vrot.slane %v839_v20, 3  ;;  %v382_v30 = vmul.f32 %v771_v21, %v992_v1 }
  0x23   : > { %v605_v31 = vadd.f32 %v506_v27, %v422_v22  ;;  %v508_v32 = vsel %vm487_vm0, %v505_v18, %v507_v23  ;;  %v424_v33 = vadd.f32 %v1002_v12, %v381_v24  ;;  %v511_v34 = vrot.slane %v842_v25, 3 }
  0x24   : > { %v606_v37 = vadd.f32 %v508_v32, %v423_v28  ;;  %v510_v38 = vsel %vm487_vm0, %v507_v23, %v509_v29  ;;  %v425_v39 = vadd.f32 %v1002_v12, %v382_v30  ;;  %v774_v40 = vunpack.c.l.bf16 %v893_v26  ;;  %v897_v28 = vld [vmem:[%s981_s21 + $0x50] sm:$0xff]  }
  0x25   : > { %641 = vst [vmem:[%s1016_s6 + $0x40] sm:$0xff] %v605_v31  ;;  %v607_v41 = vadd.f32 %v510_v38, %v424_v33  ;;  %v512_v42 = vsel %vm487_vm0, %v509_v29, %v511_v34  ;;  %v843_v43 = vunpack.c.h.bf16 %v910_v13  ;;  %v775_v44 = vunpack.c.h.bf16 %v893_v26  ;;  %v898_v38 = vld [vmem:[%s981_s21 + $0x58] sm:$0xff]  }
  0x26   : > { %642 = vst [vmem:[%s1016_s6 + $0x48] sm:$0xff] %v606_v37  ;;  %v608_v46 = vadd.f32 %v512_v42, %v425_v39  ;;  %v383_v47 = vmul.f32 %v774_v40, %v992_v1  ;;  %v846_v48 = vunpack.c.l.bf16 %v911_v35  ;;  %v778_v49 = vunpack.c.l.bf16 %v894_v36  ;;  %v915_v37 = vld [vmem:[%s986_s24 + $0x60] sm:$0xff]  }
  0x27   : > { %643 = vst [vmem:[%s1016_s6 + $0x50] sm:$0xff] %v607_v41  ;;  %v513_v50 = vrot.slane %v843_v43, 3  ;;  %v384_v51 = vmul.f32 %v775_v44, %v992_v1  ;;  %v847_v52 = vunpack.c.h.bf16 %v911_v35  ;;  %v779_v53 = vunpack.c.h.bf16 %v894_v36 }
  0x28   : > { %644 = vst [vmem:[%s1016_s6 + $0x58] sm:$0xff] %v608_v46  ;;  %v426_v54 = vadd.f32 %v1002_v12, %v383_v47  ;;  %v515_v55 = vrot.slane %v846_v48, 3  ;;  %v385_v56 = vmul.f32 %v778_v49, %v992_v1  ;;  %v850_v57 = vunpack.c.l.bf16 %v912_v45  ;;  %v916_v47 = vld [vmem:[%s986_s24 + $0x68] sm:$0xff]  }
  0x29   : > { %v514_v59 = vsel %vm487_vm0, %v511_v34, %v513_v50  ;;  %v427_v60 = vadd.f32 %v1002_v12, %v384_v51  ;;  %v517_v61 = vrot.slane %v847_v52, 3  ;;  %v386_v62 = vmul.f32 %v779_v53, %v992_v1 }
  0x2a   : > { %v609_v63 = vadd.f32 %v514_v59, %v426_v54  ;;  %v516_v0 = vsel %vm487_vm0, %v513_v50, %v515_v55  ;;  %v428_v2 = vadd.f32 %v1002_v12, %v385_v56  ;;  %v519_v3 = vrot.slane %v850_v57, 3 }
  0x2b   : > { %v610_v6 = vadd.f32 %v516_v0, %v427_v60  ;;  %v518_v7 = vsel %vm487_vm0, %v515_v55, %v517_v61  ;;  %v429_v8 = vadd.f32 %v1002_v12, %v386_v62  ;;  %v782_v9 = vunpack.c.l.bf16 %v895_v58  ;;  %v899_v60 = vld [vmem:[%s981_s21 + $0x60] sm:$0xff]  }
  0x2c   : > { %645 = vst [vmem:[%s1016_s6 + $0x60] sm:$0xff] %v609_v63  ;;  %v611_v10 = vadd.f32 %v518_v7, %v428_v2  ;;  %v520_v11 = vsel %vm487_vm0, %v517_v61, %v519_v3  ;;  %v851_v13 = vunpack.c.h.bf16 %v912_v45  ;;  %v783_v14 = vunpack.c.h.bf16 %v895_v58  ;;  %v900_v7 = vld [vmem:[%s981_s21 + $0x68] sm:$0xff]  }
  0x2d   : > { %646 = vst [vmem:[%s1016_s6 + $0x68] sm:$0xff] %v610_v6  ;;  %v612_v16 = vadd.f32 %v520_v11, %v429_v8  ;;  %v387_v17 = vmul.f32 %v782_v9, %v992_v1  ;;  %v854_v18 = vunpack.c.l.bf16 %v913_v4  ;;  %v786_v19 = vunpack.c.l.bf16 %v896_v5  ;;  %v917_v6 = vld [vmem:[%s986_s24 + $0x70] sm:$0xff]  }
  0x2e   : > { %647 = vst [vmem:[%s1016_s6 + $0x70] sm:$0xff] %v611_v10  ;;  %v521_v20 = vrot.slane %v851_v13, 3  ;;  %v388_v21 = vmul.f32 %v783_v14, %v992_v1  ;;  %v855_v22 = vunpack.c.h.bf16 %v913_v4  ;;  %v787_v23 = vunpack.c.h.bf16 %v896_v5 }
  0x2f   : > { %648 = vst [vmem:[%s1016_s6 + $0x78] sm:$0xff] %v612_v16  ;;  %v430_v24 = vadd.f32 %v1002_v12, %v387_v17  ;;  %v523_v25 = vrot.slane %v854_v18, 3  ;;  %v389_v26 = vmul.f32 %v786_v19, %v992_v1  ;;  %v858_v27 = vunpack.c.l.bf16 %v914_v15  ;;  %v918_v17 = vld [vmem:[%s986_s24 + $0x78] sm:$0xff]  }
  0x30   : > { %v522_v29 = vsel %vm487_vm0, %v519_v3, %v521_v20  ;;  %v431_v30 = vadd.f32 %v1002_v12, %v388_v21  ;;  %v525_v31 = vrot.slane %v855_v22, 3  ;;  %v390_v32 = vmul.f32 %v787_v23, %v992_v1 }
  0x31   : > { %v613_v33 = vadd.f32 %v522_v29, %v430_v24  ;;  %v524_v34 = vsel %vm487_vm0, %v521_v20, %v523_v25  ;;  %v432_v35 = vadd.f32 %v1002_v12, %v389_v26  ;;  %v527_v36 = vrot.slane %v858_v27, 3 }
  0x32   : > { %v614_v39 = vadd.f32 %v524_v34, %v431_v30  ;;  %v526_v40 = vsel %vm487_vm0, %v523_v25, %v525_v31  ;;  %v433_v41 = vadd.f32 %v1002_v12, %v390_v32  ;;  %v790_v42 = vunpack.c.l.bf16 %v897_v28  ;;  %v901_v30 = vld [vmem:[%s981_s21 + $0x70] sm:$0xff]  }
  0x33   : > { %649 = vst [vmem:[%s1016_s6 + $0x80] sm:$0xff] %v613_v33  ;;  %v615_v43 = vadd.f32 %v526_v40, %v432_v35  ;;  %v528_v44 = vsel %vm487_vm0, %v525_v31, %v527_v36  ;;  %v859_v45 = vunpack.c.h.bf16 %v914_v15  ;;  %v791_v46 = vunpack.c.h.bf16 %v897_v28  ;;  %v902_v40 = vld [vmem:[%s981_s21 + $0x78] sm:$0xff]  }
  0x34   : > { %650 = vst [vmem:[%s1016_s6 + $0x88] sm:$0xff] %v614_v39  ;;  %v616_v48 = vadd.f32 %v528_v44, %v433_v41  ;;  %v391_v49 = vmul.f32 %v790_v42, %v992_v1  ;;  %v862_v50 = vunpack.c.l.bf16 %v915_v37  ;;  %v794_v51 = vunpack.c.l.bf16 %v898_v38  ;;  %v919_v39 = vld [vmem:[%s986_s24 + $0x80] sm:$0xff]  }
  0x35   : > { %651 = vst [vmem:[%s1016_s6 + $0x90] sm:$0xff] %v615_v43  ;;  %v529_v52 = vrot.slane %v859_v45, 3  ;;  %v392_v53 = vmul.f32 %v791_v46, %v992_v1  ;;  %v863_v54 = vunpack.c.h.bf16 %v915_v37  ;;  %v795_v55 = vunpack.c.h.bf16 %v898_v38 }
  0x36   : > { %652 = vst [vmem:[%s1016_s6 + $0x98] sm:$0xff] %v616_v48  ;;  %v434_v56 = vadd.f32 %v1002_v12, %v391_v49  ;;  %v531_v57 = vrot.slane %v862_v50, 3  ;;  %v393_v58 = vmul.f32 %v794_v51, %v992_v1  ;;  %v866_v59 = vunpack.c.l.bf16 %v916_v47  ;;  %v920_v49 = vld [vmem:[%s986_s24 + $0x88] sm:$0xff]  }
  0x37   : > { %v530_v61 = vsel %vm487_vm0, %v527_v36, %v529_v52  ;;  %v435_v62 = vadd.f32 %v1002_v12, %v392_v53  ;;  %v533_v63 = vrot.slane %v863_v54, 3  ;;  %v394_v0 = vmul.f32 %v795_v55, %v992_v1 }
  0x38   : > { %v617_v2 = vadd.f32 %v530_v61, %v434_v56  ;;  %v532_v3 = vsel %vm487_vm0, %v529_v52, %v531_v57  ;;  %v436_v4 = vadd.f32 %v1002_v12, %v393_v58  ;;  %v535_v5 = vrot.slane %v866_v59, 3 }
  0x39   : > { %v618_v8 = vadd.f32 %v532_v3, %v435_v62  ;;  %v534_v9 = vsel %vm487_vm0, %v531_v57, %v533_v63  ;;  %v437_v10 = vadd.f32 %v1002_v12, %v394_v0  ;;  %v798_v11 = vunpack.c.l.bf16 %v899_v60  ;;  %v903_v62 = vld [vmem:[%s981_s21 + $0x80] sm:$0xff]  }
  0x3a   : > { %653 = vst [vmem:[%s1016_s6 + $0xa0] sm:$0xff] %v617_v2  ;;  %v619_v13 = vadd.f32 %v534_v9, %v436_v4  ;;  %v536_v14 = vsel %vm487_vm0, %v533_v63, %v535_v5  ;;  %v867_v15 = vunpack.c.h.bf16 %v916_v47  ;;  %v799_v16 = vunpack.c.h.bf16 %v899_v60  ;;  %v904_v9 = vld [vmem:[%s981_s21 + $0x88] sm:$0xff]  }
  0x3b   : > { %654 = vst [vmem:[%s1016_s6 + $0xa8] sm:$0xff] %v618_v8  ;;  %v620_v18 = vadd.f32 %v536_v14, %v437_v10  ;;  %v395_v19 = vmul.f32 %v798_v11, %v992_v1  ;;  %v870_v20 = vunpack.c.l.bf16 %v917_v6  ;;  %v802_v21 = vunpack.c.l.bf16 %v900_v7  ;;  %v921_v8 = vld [vmem:[%s986_s24 + $0x90] sm:$0xff]  }
  0x3c   : > { %655 = vst [vmem:[%s1016_s6 + $0xb0] sm:$0xff] %v619_v13  ;;  %v537_v22 = vrot.slane %v867_v15, 3  ;;  %v396_v23 = vmul.f32 %v799_v16, %v992_v1  ;;  %v871_v24 = vunpack.c.h.bf16 %v917_v6  ;;  %v803_v25 = vunpack.c.h.bf16 %v900_v7 }
  0x3d   : > { %656 = vst [vmem:[%s1016_s6 + $0xb8] sm:$0xff] %v620_v18  ;;  %v438_v26 = vadd.f32 %v1002_v12, %v395_v19  ;;  %v539_v27 = vrot.slane %v870_v20, 3  ;;  %v397_v28 = vmul.f32 %v802_v21, %v992_v1  ;;  %v874_v29 = vunpack.c.l.bf16 %v918_v17  ;;  %v326_v19 = vld [vmem:[%s986_s24 + $0x98] sm:$0x3] }
  0x3e   : > { %v538_v31 = vsel %vm487_vm0, %v535_v5, %v537_v22  ;;  %v439_v32 = vadd.f32 %v1002_v12, %v396_v23  ;;  %v541_v33 = vrot.slane %v871_v24, 3  ;;  %v398_v34 = vmul.f32 %v803_v25, %v992_v1 }
  0x3f   : > { %v621_v35 = vadd.f32 %v538_v31, %v438_v26  ;;  %v540_v36 = vsel %vm487_vm0, %v537_v22, %v539_v27  ;;  %v440_v37 = vadd.f32 %v1002_v12, %v397_v28  ;;  %v543_v38 = vrot.slane %v874_v29, 3 }
  0x40   : > { %v622_v41 = vadd.f32 %v540_v36, %v439_v32  ;;  %v542_v42 = vsel %vm487_vm0, %v539_v27, %v541_v33  ;;  %v441_v43 = vadd.f32 %v1002_v12, %v398_v34  ;;  %v806_v44 = vunpack.c.l.bf16 %v901_v30 }
  0x41   : > { %657 = vst [vmem:[%s1016_s6 + $0xc0] sm:$0xff] %v621_v35  ;;  %v623_v45 = vadd.f32 %v542_v42, %v440_v37  ;;  %v544_v46 = vsel %vm487_vm0, %v541_v33, %v543_v38  ;;  %v875_v47 = vunpack.c.h.bf16 %v918_v17  ;;  %v807_v48 = vunpack.c.h.bf16 %v901_v30 }
  0x42   : > { %658 = vst [vmem:[%s1016_s6 + $0xc8] sm:$0xff] %v622_v41  ;;  %v624_v50 = vadd.f32 %v544_v46, %v441_v43  ;;  %v399_v51 = vmul.f32 %v806_v44, %v992_v1  ;;  %v878_v52 = vunpack.c.l.bf16 %v919_v39  ;;  %v810_v53 = vunpack.c.l.bf16 %v902_v40 }
  0x43   : > { %659 = vst [vmem:[%s1016_s6 + $0xd0] sm:$0xff] %v623_v45  ;;  %v545_v54 = vrot.slane %v875_v47, 3  ;;  %v400_v55 = vmul.f32 %v807_v48, %v992_v1  ;;  %v879_v56 = vunpack.c.h.bf16 %v919_v39  ;;  %v811_v57 = vunpack.c.h.bf16 %v902_v40 }
  0x44   : > { %660 = vst [vmem:[%s1016_s6 + $0xd8] sm:$0xff] %v624_v50  ;;  %v442_v58 = vadd.f32 %v1002_v12, %v399_v51  ;;  %v547_v59 = vrot.slane %v878_v52, 3  ;;  %v401_v60 = vmul.f32 %v810_v53, %v992_v1  ;;  %v882_v61 = vunpack.c.l.bf16 %v920_v49 }
  0x45   : > { %v546_v63 = vsel %vm487_vm0, %v543_v38, %v545_v54  ;;  %v443_v0 = vadd.f32 %v1002_v12, %v400_v55  ;;  %v549_v2 = vrot.slane %v879_v56, 3  ;;  %v402_v3 = vmul.f32 %v811_v57, %v992_v1 }
  0x46   : > { %v625_v4 = vadd.f32 %v546_v63, %v442_v58  ;;  %v548_v5 = vsel %vm487_vm0, %v545_v54, %v547_v59  ;;  %v444_v6 = vadd.f32 %v1002_v12, %v401_v60  ;;  %v551_v7 = vrot.slane %v882_v61, 3 }
  0x47   : > { %v626_v10 = vadd.f32 %v548_v5, %v443_v0  ;;  %v550_v11 = vsel %vm487_vm0, %v547_v59, %v549_v2  ;;  %v445_v13 = vadd.f32 %v1002_v12, %v402_v3  ;;  %v814_v14 = vunpack.c.l.bf16 %v903_v62 }
  0x48   : > { %661 = vst [vmem:[%s1016_s6 + $0xe0] sm:$0xff] %v625_v4  ;;  %v627_v15 = vadd.f32 %v550_v11, %v444_v6  ;;  %v552_v16 = vsel %vm487_vm0, %v549_v2, %v551_v7  ;;  %v883_v17 = vunpack.c.h.bf16 %v920_v49  ;;  %v815_v18 = vunpack.c.h.bf16 %v903_v62 }
  0x49   : > { %662 = vst [vmem:[%s1016_s6 + $0xe8] sm:$0xff] %v626_v10  ;;  %v628_v20 = vadd.f32 %v552_v16, %v445_v13  ;;  %v403_v21 = vmul.f32 %v814_v14, %v992_v1  ;;  %v886_v22 = vunpack.c.l.bf16 %v921_v8  ;;  %v818_v23 = vunpack.c.l.bf16 %v904_v9 }
  0x4a   : > { %663 = vst [vmem:[%s1016_s6 + $0xf0] sm:$0xff] %v627_v15  ;;  %v553_v24 = vrot.slane %v883_v17, 3  ;;  %v404_v25 = vmul.f32 %v815_v18, %v992_v1  ;;  %v887_v26 = vunpack.c.h.bf16 %v921_v8  ;;  %v819_v27 = vunpack.c.h.bf16 %v904_v9 }
  0x4b   : > { %664 = vst [vmem:[%s1016_s6 + $0xf8] sm:$0xff] %v628_v20  ;;  %v446_v28 = vadd.f32 %v1002_v12, %v403_v21  ;;  %v555_v29 = vrot.slane %v886_v22, 3  ;;  %v405_v30 = vmul.f32 %v818_v23, %v992_v1  ;;  %v363_v31 = vunpack.c.l.bf16 %v326_v19 }
  0x4c   : > { %v554_v32 = vsel %vm487_vm0, %v551_v7, %v553_v24  ;;  %v447_v33 = vadd.f32 %v1002_v12, %v404_v25  ;;  %v557_v34 = vrot.slane %v887_v26, 3  ;;  %v406_v35 = vmul.f32 %v819_v27, %v992_v1 }
  0x4d   : > { %v629_v36 = vadd.f32 %v554_v32, %v446_v28  ;;  %v556_v37 = vsel %vm487_vm0, %v553_v24, %v555_v29  ;;  %v448_v38 = vadd.f32 %v1002_v12, %v405_v30  ;;  %v559_v39 = vrot.slane %v363_v31, 3 }
  0x4e   : > { %v630_v40 = vadd.f32 %v556_v37, %v447_v33  ;;  %v558_v41 = vsel %vm487_vm0, %v555_v29, %v557_v34  ;;  %v449_v42 = vadd.f32 %v1002_v12, %v406_v35 }
  0x4f   : > { %665 = vst [vmem:[%s1016_s6 + $0x100] sm:$0xff] %v629_v36  ;;  %v631_v43 = vadd.f32 %v558_v41, %v448_v38  ;;  %v560_v44 = vsel %vm487_vm0, %v557_v34, %v559_v39 }
  0x50   : > { %666 = vst [vmem:[%s1016_s6 + $0x108] sm:$0xff] %v630_v40  ;;  %v632_v45 = vadd.f32 %v560_v44, %v449_v42 }
  0x51   : > { %667 = vst [vmem:[%s1016_s6 + $0x110] sm:$0xff] %v631_v43 }
  0x52   : > { %668 = vst [vmem:[%s1016_s6 + $0x118] sm:$0xff] %v632_v45 }
  0x53 PF: > { %s14_s15 = sadd.s32 1, %s939_s15  }
  0x54   : > { %p11_p4 = scmp.ge.s32.totalorder %s14_s15, 4  }
  0x56   :  { %13 = sbr.rel (!%p11_p4) target bundleno = 1 (0x1), region = 69 }

// kernel: resnet_block_forward.3
= control target key start
LH: loop header
LB: loop body
LE: loop exit
PB: predicated region body
PF: predicated region fallthrough
CT: control target
= control target key end

     0   :  { %s3566_s15 = smov 0   ;;  %s4985_s0 = inlined_call_operand.vmem [shape: bf16[2,342,128], index: 0, kind: input, shape index: {}]   ;;  %s4986_s1 = inlined_call_operand.vmem [shape: bf16[1152,128], index: 1, kind: input, shape index: {}]   ;;  %s4987_s2 = inlined_call_operand.vmem [shape: f32[288,1], index: 2, kind: input, shape index: {}]   ;;  %s4988_s3 = inlined_call_operand.vmem [shape: bf16[2,288,128], index: 3, kind: output, shape index: {0}]   ;;  %s4989_s4 = inlined_call_operand.vmem [shape: f32[2,2,128], index: 4, kind: output, shape index: {1}]  }
   0x1 LB: > { %s3029_s16 = sadd.s32 4294967295, %s3538_s15   ;;  %p3033_p0 = scmp.ge.s32.totalorder %s3538_s15, 1  ;;  %s3538_s15 = sphi %s3566_s15, %s15_s15  }
   0x2   : > { %p165_p1 = scmp.lt.s32.totalorder %s3538_s15, 3 }
   0x4   : > { %p166_p2 = pnand %p3033_p0, %p165_p1 }
   0x6   : > { %169 = sbr.rel (%p166_p2) target bundleno = 655 (0x28f), region = 32 }
   0xb   : > { %v3420_v0 = vld [vmem:[%s4986_s1 + $0x38] sm:$0xff]   ;;  %v3540_v1 = vmov 0   ;;  %v3422_v3 = vld [vmem:[%s4986_s1 + $0x30] sm:$0xff]   ;;  %v3424_v5 = vld [vmem:[%s4986_s1 + $0x28] sm:$0xff]   ;;  %p195_p3 = scmp.lt.s32.totalorder %s3029_s16, 1  ;;  %vm565_vm0 = vcmask 1046528  }
   0xc   : > { %1541 = vmatprep.subr.bf16.mxu0 %v3540_v1  ;;  %1718 = vmatprep.subr.bf16.mxu1 %v3540_v1  ;;  %v3421_v2 = vld [vmem:[%s4986_s1 + $0xb8] sm:$0xff]   ;;  %v3423_v4 = vld [vmem:[%s4986_s1 + $0xb0] sm:$0xff]   ;;  %v3425_v6 = vld [vmem:[%s4986_s1 + $0xa8] sm:$0xff]   ;;  %vm398_vm1 = vsmask.f32 7424  ;;  %vm737_vm4 = vcmask 1045504  }
   0xd   : > { %1542 = vmatpush1.bf16.msra.mxu0 %v3420_v0  ;;  %3418 = vset.pattern.permute.xlu0 %v3540_v1  ;;  %v3426_v7 = vld [vmem:[%s4986_s1 + $0x20] sm:$0xff]   ;;  %v3428_v9 = vld [vmem:[%s4986_s1 + $0x18] sm:$0xff]   ;;  %v3430_v11 = vld [vmem:[%s4986_s1 + $0x10] sm:$0xff]   ;;  %s5077_s16 = smov (!%p195_p3, %s3029_s16), 1  ;;  %vm805_vm2 = vsmask.f32 5376 }
   0xe   : > { %1719 = vmatpush1.bf16.msra.mxu1 %v3421_v2  ;;  %1543 = vmatprep.subr.bf16.mxu0 %v3540_v1  ;;  %v3427_v8 = vld [vmem:[%s4986_s1 + $0xa0] sm:$0xff]   ;;  %v3429_v10 = vld [vmem:[%s4986_s1 + $0x98] sm:$0xff]   ;;  %v3431_v12 = vld [vmem:[%s4986_s1 + $0x90] sm:$0xff]   ;;  %s3407_s23 = smul.u32 172, %s5077_s16  ;;  %vm633_vm3 = vsmask.f32 6400 }
   0xf   : > { %1720 = vmatprep.subr.bf16.mxu1 %v3540_v1  ;;  %3419 = vset.pattern.permute.xlu1 %v3540_v1  ;;  %v3432_v13 = vld [vmem:[%s4986_s1 + $0x8] sm:$0xff]   ;;  %v3434_v15 = vld [vmem:[%s4986_s1] sm:$0xff]   ;;  %v3436_v17 = vld [vmem:[%s4986_s1 + $0x78] sm:$0xff]   ;;  %vm909_vm5 = vcmask 1044480   ;;  %s3036_s6 = sshll.u32 %s5077_s16, 1  ;;  %vm2760_vm6 = vcmask 1040384  }
  0x10   : > { %v3433_v14 = vld [vmem:[%s4986_s1 + $0x88] sm:$0xff]   ;;  %v3435_v16 = vld [vmem:[%s4986_s1 + $0x80] sm:$0xff]   ;;  %s3653_s30 = scalar_lea.vmem %s4985_s0, %s3407_s23  ;;  %v3437_v18 = vld [vmem:[%s4986_s1 + $0xf8] sm:$0xff]   ;;  %s208_s9 = scalar_lea.vmem %s4989_s4, %s3036_s6 }
  0x11   : > { %1544 = vmatpush1.bf16.msra.mxu0 %v3422_v3  ;;  %v3438_v19 = vld [vmem:[%s4986_s1 + $0x70] sm:$0xff]   ;;  %v3667_v21 = vld [vmem:[%s3653_s30] sm:$0xff]   ;;  %v3670_v22 = vld [vmem:[%s3653_s30 + $0x8] sm:$0xff]  }
  0x12   : > { %1721 = vmatpush1.bf16.msra.mxu1 %v3423_v4  ;;  %1545 = vmatprep.subr.bf16.mxu0 %v3540_v1  ;;  %v3439_v20 = vld [vmem:[%s4986_s1 + $0xf0] sm:$0xff]   ;;  %v400_v24 = vshrl.u32 %v3667_v21, 16  ;;  %v402_v25 = vshll.u32 %v3667_v21, 16  ;;  %v407_v26 = vshll.u32 %v3670_v22, 16  ;;  %v567_v27 = vrot.slane %v3670_v22, 1  ;;  %v3440_v29 = vld [vmem:[%s4986_s1 + $0x68] sm:$0xff]  }
  0x13   : > { %1722 = vmatprep.subr.bf16.mxu1 %v3540_v1  ;;  %v3673_v23 = vld [vmem:[%s3653_s30 + $0x10] sm:$0xff]   ;;  %v3441_v33 = vld [vmem:[%s4986_s1 + $0xe8] sm:$0xff]   ;;  %v3442_v36 = vld [vmem:[%s4986_s1 + $0x60] sm:$0xff]   ;;  %v411_v44 = vshrl.u32 %v3670_v22, 16  ;;  %v566_v49 = vrot.slane %v3667_v21, 1 }
  0x14   : > { %v569_v28 = vrot.slane %v3673_v23, 1  ;;  %v404_v30 = vrot.slane %v402_v25, 1  ;;  %v409_v31 = vrot.slane %v407_v26, 1  ;;  %v3443_v37 = vld [vmem:[%s4986_s1 + $0xe0] sm:$0xff]   ;;  %v3444_v38 = vld [vmem:[%s4986_s1 + $0x58] sm:$0xff]   ;;  %v3446_v40 = vld [vmem:[%s4986_s1 + $0x50] sm:$0xff]  }
  0x15   : > { %1546 = vmatpush1.bf16.msra.mxu0 %v3424_v5  ;;  %v3445_v39 = vld [vmem:[%s4986_s1 + $0xd8] sm:$0xff]   ;;  %v3447_v41 = vld [vmem:[%s4986_s1 + $0xd0] sm:$0xff]   ;;  %v3448_v42 = vld [vmem:[%s4986_s1 + $0x48] sm:$0xff]   ;;  %v3731_v45 = vshll.u32 %v3673_v23, 16  ;;  %v3751_v54 = vshrl.u32 %v3673_v23, 16  ;;  %v568_v55 = vsel %vm565_vm0, %v566_v49, %v567_v27  ;;  %v3781_v3 = vrot.slane %v407_v26, 2 }
  0x16   : > { %1723 = vmatpush1.bf16.msra.mxu1 %v3425_v6  ;;  %1547 = vmatprep.subr.bf16.mxu0 %v3540_v1  ;;  %v3688_v32 = vsel %vm565_vm0, %v567_v27, %v569_v28  ;;  %v405_v34 = vor.u32 %v404_v30, %v400_v24  ;;  %v3449_v43 = vld [vmem:[%s4986_s1 + $0xc8] sm:$0xff]   ;;  %v3734_v46 = vld [vmem:[%s3653_s30 + $0x18] sm:$0xff]   ;;  %v3450_v47 = vld [vmem:[%s4986_s1 + $0x40] sm:$0xff]   ;;  %v413_v50 = vor.u32 %v411_v44, %v409_v31 }
  0x17   : > { %1724 = vmatprep.subr.bf16.mxu1 %v3540_v1  ;;  %1750 = vmatprep.mubr.bf16.mxu1 %v3688_v32  ;;  %v3451_v48 = vld [vmem:[%s4986_s1 + $0xc0] sm:$0xff]   ;;  %v417_v51 = vrot.slane %v3731_v45, 1  ;;  %v571_v52 = vrot.slane %v3734_v46, 1  ;;  %v3455_v53 = vld [vmem:[%s4986_s1 + $0x138] sm:$0xff]   ;;  %v3756_v56 = vshll.u32 %v3734_v46, 16  ;;  %v3457_v61 = vld [vmem:[%s4986_s1 + $0x130] sm:$0xff]  }
  0x18   : > { %v410_v35 = vsel %vm398_vm1, %v405_v34, %v409_v31  ;;  %v3759_v57 = vld [vmem:[%s3653_s30 + $0x20] sm:$0xff]   ;;  %v3465_v60 = vld [vmem:[%s4986_s1 + $0x1b8] sm:$0xff]   ;;  %v3468_v2 = vld [vmem:[%s4986_s1 + $0x1b0] sm:$0xff]   ;;  %v3787_v5 = vshrl.u32 %v3734_v46, 16  ;;  %v637_v49 = vrot.slane %v3751_v54, 1 }
  0x19   : > { %1548 = vmatpush1.bf16.msra.mxu0 %v3426_v7  ;;  %1573 = vmatprep.mubr.bf16.mxu0 %v410_v35  ;;  %v418_v58 = vsel %vm398_vm1, %v413_v50, %v417_v51  ;;  %v572_v59 = vsel %vm565_vm0, %v569_v28, %v571_v52  ;;  %v421_v62 = vor.u32 %v3751_v54, %v417_v51  ;;  %v425_v63 = vrot.slane %v3756_v56, 1  ;;  %v3459_v4 = vld [vmem:[%s4986_s1 + $0x128] sm:$0xff]   ;;  %v3477_v25 = vld [vmem:[%s4986_s1 + $0x198] sm:$0xff]   ;;  %v3466_v28 = vld [vmem:[%s4986_s1 + $0x110] sm:$0xff]  }
  0x1a   : > { %1725 = vmatpush1.bf16.msra.mxu1 %v3427_v8  ;;  %1549 = vmatprep.subr.bf16.mxu0 %v3540_v1  ;;  %v573_v0 = vrot.slane %v3759_v57, 1  ;;  %v3792_v7 = vshll.u32 %v3759_v57, 16  ;;  %v3795_v8 = vld [vmem:[%s3653_s30 + $0x28] sm:$0xff]   ;;  %v3856_v31 = vld [vmem:[%s3653_s30 + $0x38] sm:$0xff]   ;;  %v638_v50 = vrot.slane %v3731_v45, 2 }
  0x1b   : > { %1726 = vmatprep.subr.bf16.mxu1 %v3540_v1  ;;  %v426_v6 = vsel %vm398_vm1, %v421_v62, %v425_v63 }
  0x1d   : > { %1550 = vmatpush1.bf16.msra.mxu0 %v3428_v9  ;;  %v3797_v9 = vrot.slane %v411_v44, 1  ;;  %v810_v44 = vrot.slane %v3756_v56, 3 }
  0x1e   : > { %1727 = vmatpush1.bf16.msra.mxu1 %v3429_v10  ;;  %1551 = vmatprep.subr.bf16.mxu0 %v3540_v1  ;;  %v574_v10 = vsel %vm565_vm0, %v571_v52, %v573_v0 }
  0x1f   : > { %1728 = vmatprep.subr.bf16.mxu1 %v3540_v1 }
  0x21   : > { %1552 = vmatpush1.bf16.msra.mxu0 %v3430_v11  ;;  %v3471_v11 = vld [vmem:[%s4986_s1 + $0x1a8] sm:$0xff]  }
  0x22   : > { %1729 = vmatpush1.bf16.msra.mxu1 %v3431_v12  ;;  %1553 = vmatprep.subr.bf16.mxu0 %v3540_v1  ;;  %v429_v12 = vor.u32 %v3787_v5, %v425_v63 }
  0x23   : > { %1730 = vmatprep.subr.bf16.mxu1 %v3540_v1 }
  0x25   : > { %1554 = vmatpush1.bf16.msra.mxu0 %v3432_v13  ;;  %v433_v13 = vrot.slane %v3792_v7, 1 }
  0x26   : > { %1731 = vmatpush1.bf16.msra.mxu1 %v3433_v14  ;;  %1555 = vmatprep.subr.bf16.mxu0 %v3540_v1  ;;  %v3461_v14 = vld [vmem:[%s4986_s1 + $0x120] sm:$0xff]  }
  0x27   : > { %1732 = vmatprep.subr.bf16.mxu1 %v3540_v1 }
  0x29   : > { %1556 = vmatpush1.bf16.msra.mxu0 %v3434_v15  ;;  %v575_v15 = vrot.slane %v3795_v8, 1 }
  0x2a   : > { %1733 = vmatpush1.bf16.msra.mxu1 %v3435_v16  ;;  %1557 = vmatprep.subr.bf16.mxu0 %v3540_v1  ;;  %v3474_v16 = vld [vmem:[%s4986_s1 + $0x1a0] sm:$0xff]  }
  0x2b   : > { %1734 = vmatprep.subr.bf16.mxu1 %v3540_v1  ;;  %v3833_v24 = vsel %vm565_vm0, %v573_v0, %v575_v15  ;;  %v3476_v0 = vld [vmem:[%s4986_s1 + $0x178] sm:$0xff]  }
  0x2d   : > { %1558 = vmatpush2.bf16.msra.mxu0 %v3436_v17  ;;  %v636_v17 = vor.u32 %v3781_v3, %v3797_v9  ;;  %v3490_v3 = vld [vmem:[%s4986_s1 + $0x1f8] sm:$0xff]  }
  0x2e   : > { %1735 = vmatpush2.bf16.msra.mxu1 %v3437_v18  ;;  %1559 = vmatprep.subr.bf16.mxu0 %v3540_v1  ;;  %v3820_v18 = vshrl.u32 %v3759_v57, 16 }
  0x2f   : > { %1736 = vmatprep.subr.bf16.mxu1 %v3540_v1 }
  0x30   : > { %v437_v26 = vor.u32 %v3820_v18, %v433_v13  ;;  %v813_v52 = vrot.slane %v3820_v18, 2 }
  0x31   : > { %1560 = vmatpush2.bf16.msra.mxu0 %v3438_v19  ;;  %v3823_v19 = vld [vmem:[%s3653_s30 + $0x30] sm:$0xff]  }
  0x32   : > { %1737 = vmatpush2.bf16.msra.mxu1 %v3439_v20  ;;  %1561 = vmatprep.subr.bf16.mxu0 %v3540_v1  ;;  %v434_v20 = vsel %vm398_vm1, %v429_v12, %v433_v13  ;;  %v3853_v30 = vshll.u32 %v3823_v19, 16 }
  0x33   : > { %1738 = vmatprep.subr.bf16.mxu1 %v3540_v1 }
  0x35   : > { %1562 = vmatpush2.bf16.msra.mxu0 %v3440_v29  ;;  %v577_v29 = vrot.slane %v3823_v19, 1 }
  0x36   : > { %1739 = vmatpush2.bf16.msra.mxu1 %v3441_v33  ;;  %1563 = vmatprep.subr.bf16.mxu0 %v3540_v1  ;;  %v3470_v33 = vld [vmem:[%s4986_s1 + $0x108] sm:$0xff]  }
  0x37   : > { %1740 = vmatprep.subr.bf16.mxu1 %v3540_v1  ;;  %v3867_v35 = vsel %vm565_vm0, %v575_v15, %v577_v29  ;;  %v3479_v15 = vld [vmem:[%s4986_s1 + $0x170] sm:$0xff]  }
  0x39   : > { %1564 = vmatpush2.bf16.msra.mxu0 %v3442_v36  ;;  %v3484_v36 = vld [vmem:[%s4986_s1 + $0x188] sm:$0xff]  }
  0x3a   : > { %1741 = vmatpush2.bf16.msra.mxu1 %v3443_v37  ;;  %1565 = vmatprep.subr.bf16.mxu0 %v3540_v1  ;;  %v449_v37 = vrot.slane %v3853_v30, 1 }
  0x3b   : > { %1742 = vmatprep.subr.bf16.mxu1 %v3540_v1 }
  0x3d   : > { %1566 = vmatpush2.bf16.msra.mxu0 %v3444_v38  ;;  %v579_v38 = vrot.slane %v3856_v31, 1 }
  0x3e   : > { %1743 = vmatpush2.bf16.msra.mxu1 %v3445_v39  ;;  %1567 = vmatprep.subr.bf16.mxu0 %v3540_v1  ;;  %v3473_v39 = vld [vmem:[%s4986_s1 + $0x100] sm:$0xff]  }
  0x3f   : > { %1744 = vmatprep.subr.bf16.mxu1 %v3540_v1 }
  0x41   : > { %1568 = vmatpush2.bf16.msra.mxu0 %v3446_v40  ;;  %v806_v40 = vrot.slane %v3751_v54, 2  ;;  %v641_v54 = vrot.slane %v3787_v5, 1 }
  0x42   : > { %1745 = vmatpush2.bf16.msra.mxu1 %v3447_v41  ;;  %1569 = vmatprep.subr.bf16.mxu0 %v3540_v1  ;;  %v807_v41 = vrot.slane %v3731_v45, 3  ;;  %v642_v45 = vrot.slane %v3756_v56, 2 }
  0x43   : > { %1746 = vmatprep.subr.bf16.mxu1 %v3540_v1 }
  0x45   : > { %1570 = vmatpush2.bf16.msra.mxu0 %v3448_v42  ;;  %v3487_v42 = vld [vmem:[%s4986_s1 + $0x180] sm:$0xff]  }
  0x46   : > { %1747 = vmatpush2.bf16.msra.mxu1 %v3449_v43  ;;  %1571 = vmatprep.subr.bf16.mxu0 %v3540_v1  ;;  %v809_v43 = vrot.slane %v3787_v5, 2  ;;  %v3921_v5 = vsel %vm565_vm0, %v577_v29, %v579_v38 }
  0x47   : > { %1748 = vmatprep.subr.bf16.mxu1 %v3540_v1 }
  0x48   : > { %v811_v51 = vor.u32 %v810_v44, %v809_v43  ;;  %v3485_v44 = vld [vmem:[%s4986_s1 + $0x160] sm:$0xff]  }
  0x49   : > { %1572 = vmatpush2.bf16.msra.mxu0 %v3450_v47 }
  0x4a   : > { %1749 = vmatpush2.bf16.msra.mxu1 %v3451_v48  ;;  %1895 = vmatprep.subr.bf16.mxu0 %v3540_v1  ;;  %v808_v48 = vor.u32 %v807_v41, %v806_v40  ;;  %v3494_v40 = vld [vmem:[%s4986_s1 + $0x1e8] sm:$0xff]  }
  0x4b   : > { %2072 = vmatprep.subr.bf16.mxu1 %v3540_v1 }
  0x4c   : > { %1574 = vmatmul.mubr.bf16.vlgmr.msra.gmra.mxu0 %v3667_v21  ;;  %v3827_v21 = vshll.u32 %v3795_v8, 16 }
  0x4d   : > { %1751 = vmatmul.mubr.bf16.vlgmr.msra.gmra.mxu1 %v568_v55  ;;  %1896 = vmatpush1.bf16.msra.mxu0 %v3455_v53  ;;  %v814_v53 = vrot.slane %v3792_v7, 3  ;;  %v3895_v55 = vshrl.u32 %v3823_v19, 16 }
  0x4e   : > { %1581 = vmatprep.mubr.bf16.mxu0 %v418_v58  ;;  %1758 = vmatprep.mubr.bf16.mxu1 %v572_v59  ;;  %v441_v27 = vrot.slane %v3827_v21, 1  ;;  %v639_v58 = vor.u32 %v638_v50, %v637_v49  ;;  %v3495_v49 = vld [vmem:[%s4986_s1 + $0x1e0] sm:$0xff]  }
  0x4f   : > { %1897 = vmatprep.subr.bf16.mxu0 %v3540_v1  ;;  %2073 = vmatpush1.bf16.msra.mxu1 %v3465_v60  ;;  %v3904_v60 = vsel %vm805_vm2, %v808_v48, %v811_v51  ;;  %v654_v48 = vrot.slane %v3853_v30, 2 }
  0x50   : > { %2074 = vmatprep.subr.bf16.mxu1 %v3540_v1  ;;  %v442_v34 = vsel %vm398_vm1, %v437_v26, %v441_v27  ;;  %v3915_v56 = vsel %vm633_vm3, %v636_v17, %v639_v58  ;;  %v822_v17 = vrot.slane %v3853_v30, 3  ;;  %v3491_v26 = vld [vmem:[%s4986_s1 + $0x1f0] sm:$0xff]  }
  0x51   : > { %1898 = vmatpush1.bf16.msra.mxu0 %v3457_v61  ;;  %v815_v61 = vor.u32 %v814_v53, %v813_v52 }
  0x52   : > { %1899 = vmatprep.subr.bf16.mxu0 %v3540_v1 }
  0x53   : > { %2075 = vmatpush1.bf16.msra.mxu1 %v3468_v2  ;;  %v643_v2 = vor.u32 %v642_v45, %v641_v54  ;;  %v3931_v9 = vsel %vm805_vm2, %v811_v51, %v815_v61 }
  0x54   : > { %1582 = vmatmul.mubr.bf16.gmra.mxu0 %v3670_v22  ;;  %2076 = vmatprep.subr.bf16.mxu1 %v3540_v1  ;;  %v3463_v22 = vld [vmem:[%s4986_s1 + $0x118] sm:$0xff]  }
  0x55   : > { %1759 = vmatmul.mubr.bf16.gmra.mxu1 %v3688_v32  ;;  %1589 = vmatprep.mubr.bf16.mxu0 %v426_v6  ;;  %v3860_v32 = vshrl.u32 %v3795_v8, 16  ;;  %v3924_v6 = vld [vmem:[%s3653_s30 + $0x40] sm:$0xff]   ;;  %v3938_v12 = vsel %vm633_vm3, %v639_v58, %v643_v2  ;;  %v3488_v58 = vld [vmem:[%s4986_s1 + $0x158] sm:$0xff]  }
  0x56   : > { %1766 = vmatprep.mubr.bf16.mxu1 %v574_v10  ;;  %1900 = vmatpush1.bf16.msra.mxu0 %v3459_v4  ;;  %v818_v4 = vrot.slane %v3827_v21, 3  ;;  %v4014_v53 = vshrl.u32 %v3924_v6, 16 }
  0x57   : > { %1901 = vmatprep.subr.bf16.mxu0 %v3540_v1  ;;  %2077 = vmatpush1.bf16.msra.mxu1 %v3471_v11  ;;  %v445_v47 = vor.u32 %v3860_v32, %v441_v27  ;;  %v817_v62 = vrot.slane %v3860_v32, 2  ;;  %v646_v11 = vrot.slane %v3792_v7, 2  ;;  %v821_v7 = vrot.slane %v3895_v55, 2 }
  0x58   : > { %2078 = vmatprep.subr.bf16.mxu1 %v3540_v1 }
  0x59   : > { %v450_v63 = vsel %vm398_vm1, %v445_v47, %v449_v37  ;;  %v819_v13 = vor.u32 %v818_v4, %v817_v62  ;;  %v653_v47 = vrot.slane %v3895_v55, 1  ;;  %v3498_v62 = vld [vmem:[%s4986_s1 + $0x1d8] sm:$0xff]  }
  0x5a   : > { %1902 = vmatpush1.bf16.msra.mxu0 %v3461_v14 }
  0x5b   : > { %1903 = vmatprep.subr.bf16.mxu0 %v3540_v1  ;;  %2079 = vmatpush1.bf16.msra.mxu1 %v3474_v16  ;;  %v655_v51 = vor.u32 %v654_v48, %v653_v47  ;;  %v4117_v48 = vld [vmem:[%s3653_s30 + $0x68] sm:$0xff]  }
  0x5c   : > { %1590 = vmatmul.mubr.bf16.gmra.mxu0 %v3673_v23  ;;  %2080 = vmatprep.subr.bf16.mxu1 %v3540_v1  ;;  %v3480_v23 = vld [vmem:[%s4986_s1 + $0x190] sm:$0xff]  }
  0x5d   : > { %1767 = vmatmul.mubr.bf16.gmra.mxu1 %v572_v59  ;;  %1597 = vmatprep.mubr.bf16.mxu0 %v434_v20  ;;  %v3901_v59 = vshll.u32 %v3856_v31, 16  ;;  %v3950_v20 = vsel %vm805_vm2, %v815_v61, %v819_v13  ;;  %v4027_v61 = vld [vmem:[%s3653_s30 + $0x50] sm:$0xff]  }
  0x5e   : > { %1774 = vmatprep.mubr.bf16.mxu1 %v3833_v24  ;;  %1904 = vmatpush1.bf16.msra.mxu0 %v3463_v22  ;;  %v649_v22 = vrot.slane %v3860_v32, 1  ;;  %v459_v32 = vshrl.u32 %v3856_v31, 16 }
  0x5f   : > { %1905 = vmatprep.subr.bf16.mxu0 %v3540_v1  ;;  %2081 = vmatpush1.bf16.msra.mxu1 %v3477_v25  ;;  %v457_v14 = vrot.slane %v3901_v59, 1  ;;  %v581_v25 = vrot.slane %v3924_v6, 1 }
  0x60   : > { %2082 = vmatprep.subr.bf16.mxu1 %v3540_v1  ;;  %v825_v41 = vrot.slane %v459_v32, 2  ;;  %v657_v4 = vrot.slane %v459_v32, 1 }
  0x62   : > { %1906 = vmatpush1.bf16.msra.mxu0 %v3466_v28  ;;  %v823_v28 = vor.u32 %v822_v17, %v821_v7  ;;  %v4066_v17 = vld [vmem:[%s3653_s30 + $0x58] sm:$0xff]  }
  0x63   : > { %1907 = vmatprep.subr.bf16.mxu0 %v3540_v1  ;;  %2083 = vmatpush1.bf16.msra.mxu1 %v3480_v23 }
  0x64   : > { %1598 = vmatmul.mubr.bf16.gmra.mxu0 %v3734_v46  ;;  %2084 = vmatprep.subr.bf16.mxu1 %v3540_v1  ;;  %v3964_v23 = vsel %vm805_vm2, %v819_v13, %v823_v28 }
  0x65   : > { %1775 = vmatmul.mubr.bf16.gmra.mxu1 %v574_v10  ;;  %1605 = vmatprep.mubr.bf16.mxu0 %v442_v34  ;;  %v645_v10 = vrot.slane %v3820_v18, 1  ;;  %v453_v18 = vor.u32 %v3895_v55, %v449_v37  ;;  %v3482_v34 = vld [vmem:[%s4986_s1 + $0x168] sm:$0xff]   ;;  %v3980_v37 = vsel %vm565_vm0, %v579_v38, %v581_v25  ;;  %v826_v38 = vrot.slane %v3901_v59, 3 }
  0x66   : > { %1782 = vmatprep.mubr.bf16.mxu1 %v3867_v35  ;;  %1908 = vmatpush1.bf16.msra.mxu0 %v3470_v33  ;;  %v3969_v33 = vshll.u32 %v3924_v6, 16 }
  0x67   : > { %1909 = vmatprep.subr.bf16.mxu0 %v3540_v1  ;;  %2085 = vmatpush1.bf16.msra.mxu1 %v3484_v36  ;;  %v647_v16 = vor.u32 %v646_v11, %v645_v10  ;;  %v4005_v50 = vor.u32 %v826_v38, %v825_v41  ;;  %v585_v10 = vrot.slane %v4027_v61, 1 }
  0x68   : > { %2086 = vmatprep.subr.bf16.mxu1 %v3540_v1  ;;  %v465_v43 = vrot.slane %v3969_v33, 1 }
  0x69   : > { %v3960_v27 = vsel %vm633_vm3, %v643_v2, %v647_v16  ;;  %v4010_v52 = vsel %vm805_vm2, %v823_v28, %v4005_v50  ;;  %v3492_v2 = vld [vmem:[%s4986_s1 + $0x150] sm:$0xff]   ;;  %v3505_v28 = vld [vmem:[%s4986_s1 + $0x1c0] sm:$0xff]  }
  0x6a   : > { %1910 = vmatpush1.bf16.msra.mxu0 %v3473_v39  ;;  %v3983_v39 = vld [vmem:[%s3653_s30 + $0x48] sm:$0xff]  }
  0x6b   : > { %1911 = vmatprep.subr.bf16.mxu0 %v3540_v1  ;;  %2087 = vmatpush1.bf16.msra.mxu1 %v3487_v42  ;;  %v461_v42 = vor.u32 %v459_v32, %v457_v14  ;;  %v4017_v55 = vshll.u32 %v3983_v39, 16  ;;  %v4093_v32 = vshrl.u32 %v4027_v61, 16 }
  0x6c   : > { %1606 = vmatmul.mubr.bf16.gmra.mxu0 %v3759_v57  ;;  %2088 = vmatprep.subr.bf16.mxu1 %v3540_v1 }
  0x6d   : > { %1783 = vmatmul.mubr.bf16.gmra.mxu1 %v3833_v24  ;;  %1613 = vmatprep.mubr.bf16.mxu0 %v450_v63  ;;  %v650_v24 = vrot.slane %v3827_v21, 2  ;;  %v458_v21 = vsel %vm398_vm1, %v453_v18, %v457_v14  ;;  %v466_v30 = vsel %vm398_vm1, %v461_v42, %v465_v43  ;;  %v469_v63 = vor.u32 %v4014_v53, %v465_v43  ;;  %v3504_v18 = vld [vmem:[%s4986_s1 + $0x1c8] sm:$0xff]  }
  0x6e   : > { %1790 = vmatprep.mubr.bf16.mxu1 %v3921_v5  ;;  %1912 = vmatpush2.bf16.msra.mxu0 %v3476_v0  ;;  %v473_v0 = vrot.slane %v4017_v55, 1  ;;  %v4052_v14 = vshrl.u32 %v3983_v39, 16  ;;  %v4110_v43 = vshrl.u32 %v4066_v17, 16 }
  0x6f   : > { %1913 = vmatprep.subr.bf16.mxu0 %v3540_v1  ;;  %2089 = vmatpush2.bf16.msra.mxu1 %v3490_v3  ;;  %v651_v29 = vor.u32 %v650_v24, %v649_v22  ;;  %v658_v3 = vrot.slane %v3901_v59, 2  ;;  %v4055_v59 = vshll.u32 %v4027_v61, 16 }
  0x70   : > { %2090 = vmatprep.subr.bf16.mxu1 %v3540_v1  ;;  %v474_v13 = vsel %vm398_vm1, %v469_v63, %v473_v0  ;;  %v477_v22 = vor.u32 %v4052_v14, %v473_v0  ;;  %v4132_v63 = vld [vmem:[%s3653_s30 + $0x70] sm:$0xff]  }
  0x71   : > { %v3975_v36 = vsel %vm633_vm3, %v647_v16, %v651_v29  ;;  %v4023_v54 = vsel %vm633_vm3, %v651_v29, %v655_v51  ;;  %v4048_v11 = vor.u32 %v658_v3, %v657_v4  ;;  %v481_v24 = vrot.slane %v4055_v59, 1  ;;  %v4088_v29 = vld [vmem:[%s4986_s1 + $0x238] sm:$0xff]  }
  0x72   : > { %1914 = vmatpush2.bf16.msra.mxu0 %v3479_v15  ;;  %v3497_v15 = vld [vmem:[%s4986_s1 + $0x148] sm:$0xff]   ;;  %v593_v4 = vrot.slane %v4132_v63, 1 }
  0x73   : > { %1915 = vmatprep.subr.bf16.mxu0 %v3540_v1  ;;  %2091 = vmatpush2.bf16.msra.mxu1 %v3491_v26  ;;  %v4062_v16 = vsel %vm633_vm3, %v655_v51, %v4048_v11  ;;  %v587_v26 = vrot.slane %v4066_v17, 1  ;;  %v591_v51 = vrot.slane %v4117_v48, 1 }
  0x74   : > { %1614 = vmatmul.mubr.bf16.gmra.mxu0 %v3795_v8  ;;  %2092 = vmatprep.subr.bf16.mxu1 %v3540_v1 }
  0x75   : > { %1791 = vmatmul.mubr.bf16.gmra.mxu1 %v3867_v35  ;;  %1621 = vmatprep.mubr.bf16.mxu0 %v458_v21  ;;  %v583_v35 = vrot.slane %v3983_v39, 1  ;;  %v482_v21 = vsel %vm398_vm1, %v477_v22, %v481_v24 }
  0x76   : > { %1798 = vmatprep.mubr.bf16.mxu1 %v3980_v37  ;;  %1916 = vmatpush2.bf16.msra.mxu0 %v3482_v34  ;;  %v4096_v34 = vshll.u32 %v4066_v17, 16 }
  0x77   : > { %1917 = vmatprep.subr.bf16.mxu0 %v3540_v1  ;;  %2093 = vmatpush2.bf16.msra.mxu1 %v3494_v40  ;;  %v584_v45 = vsel %vm565_vm0, %v581_v25, %v583_v35  ;;  %v586_v7 = vsel %vm565_vm0, %v583_v35, %v585_v10  ;;  %v3503_v25 = vld [vmem:[%s4986_s1 + $0x140] sm:$0xff]  }
  0x78   : > { %2094 = vmatprep.subr.bf16.mxu1 %v3540_v1  ;;  %v4100_v40 = vld [vmem:[%s3653_s30 + $0x60] sm:$0xff]   ;;  %v489_v41 = vrot.slane %v4096_v34, 1 }
  0x79   : > { %v589_v38 = vrot.slane %v4100_v40, 1 }
  0x7a   : > { %1918 = vmatpush2.bf16.msra.mxu0 %v3485_v44  ;;  %v4113_v44 = vshll.u32 %v4100_v40, 16  ;;  %v493_v35 = vor.u32 %v4110_v43, %v489_v41 }
  0x7b   : > { %1919 = vmatprep.subr.bf16.mxu0 %v3540_v1  ;;  %2095 = vmatpush2.bf16.msra.mxu1 %v3495_v49  ;;  %v590_v47 = vsel %vm565_vm0, %v587_v26, %v589_v38 }
  0x7c   : > { %1622 = vmatmul.mubr.bf16.gmra.mxu0 %v3823_v19  ;;  %2096 = vmatprep.subr.bf16.mxu1 %v3540_v1  ;;  %v497_v49 = vrot.slane %v4113_v44, 1 }
  0x7d   : > { %1799 = vmatmul.mubr.bf16.gmra.mxu1 %v3921_v5  ;;  %1629 = vmatprep.mubr.bf16.mxu0 %v466_v30  ;;  %v3499_v5 = vld [vmem:[%s4986_s1 + $0x1d0] sm:$0xff]  }
  0x7e   : > { %1806 = vmatprep.mubr.bf16.mxu1 %v584_v45  ;;  %1920 = vmatpush2.bf16.msra.mxu0 %v3488_v58  ;;  %v498_v30 = vsel %vm398_vm1, %v493_v35, %v497_v49  ;;  %v4125_v58 = vshrl.u32 %v4100_v40, 16 }
  0x7f   : > { %1921 = vmatprep.subr.bf16.mxu0 %v3540_v1  ;;  %2097 = vmatpush2.bf16.msra.mxu1 %v3498_v62  ;;  %v592_v62 = vsel %vm565_vm0, %v589_v38, %v591_v51 }
  0x80   : > { %2098 = vmatprep.subr.bf16.mxu1 %v3540_v1  ;;  %v501_v0 = vor.u32 %v4125_v58, %v497_v49  ;;  %v4177_v49 = vld [vmem:[%s3653_s30 + $0x88] sm:$0xff]  }
  0x82   : > { %1922 = vmatpush2.bf16.msra.mxu0 %v3492_v2 }
  0x83   : > { %1923 = vmatprep.subr.bf16.mxu0 %v3540_v1  ;;  %2099 = vmatpush2.bf16.msra.mxu1 %v3499_v5  ;;  %v4143_v5 = vshll.u32 %v4132_v63, 16 }
  0x84   : > { %1630 = vmatmul.mubr.bf16.gmra.mxu0 %v3856_v31  ;;  %2100 = vmatprep.subr.bf16.mxu1 %v3540_v1 }
  0x85   : > { %1807 = vmatmul.mubr.bf16.gmra.mxu1 %v3980_v37  ;;  %1637 = vmatprep.mubr.bf16.mxu0 %v474_v13  ;;  %v588_v37 = vsel %vm565_vm0, %v585_v10, %v587_v26  ;;  %v4140_v10 = vshrl.u32 %v4117_v48, 16  ;;  %v594_v13 = vsel %vm565_vm0, %v591_v51, %v593_v4 }
  0x86   : > { %1814 = vmatprep.mubr.bf16.mxu1 %v586_v7  ;;  %1924 = vmatpush2.bf16.msra.mxu0 %v3497_v15  ;;  %v4147_v15 = vld [vmem:[%s3653_s30 + $0x78] sm:$0xff]  }
  0x87   : > { %1925 = vmatprep.subr.bf16.mxu0 %v3540_v1  ;;  %2101 = vmatpush2.bf16.msra.mxu1 %v3504_v18  ;;  %4998 = vst [vmem:[#allocation2_spill] sm:$0xff] %v4147_v15  ;;  %v513_v18 = vrot.slane %v4143_v5, 1  ;;  %v595_v22 = vrot.slane %v4147_v15, 1  ;;  %v4158_v26 = vshll.u32 %v4147_v15, 16 }
  0x88   : > { %2102 = vmatprep.subr.bf16.mxu1 %v3540_v1  ;;  %v485_v1 = vor.u32 %v4093_v32, %v481_v24 }
  0x8a   : > { %1926 = vmatpush2.bf16.msra.mxu0 %v3503_v25  ;;  %v490_v42 = vsel %vm398_vm1, %v485_v1, %v489_v41  ;;  %v4155_v25 = vshrl.u32 %v4132_v63, 16  ;;  %v521_v1 = vrot.slane %v4158_v26, 1 }
  0x8b   : > { %2103 = vmatpush2.bf16.msra.mxu1 %v3505_v28  ;;  %3339 = vmatprep.subr.bf16.mxu0 %v4088_v29  ;;  %v596_v28 = vsel %vm565_vm0, %v593_v4, %v595_v22 }
  0x8c   : > { %1638 = vmatmul.mubr.bf16.gmra.mxu0 %v3924_v6  ;;  %3391 = vmatprep.subr.bf16.mxu1 %v4088_v29 }
  0x8d   : > { %1815 = vmatmul.mubr.bf16.gmra.mxu1 %v584_v45  ;;  %1645 = vmatprep.mubr.bf16.mxu0 %v482_v21  ;;  %v4128_v45 = vshll.u32 %v4117_v48, 16  ;;  %v4162_v21 = vld [vmem:[%s3653_s30 + $0x80] sm:$0xff]  }
  0x8e   : > { %1822 = vmatprep.mubr.bf16.mxu1 %v588_v37  ;;  %v597_v41 = vrot.slane %v4162_v21, 1 }
  0x8f   : > { %v505_v2 = vrot.slane %v4128_v45, 1 }
  0x90   : > { %v598_v35 = vsel %vm565_vm0, %v595_v22, %v597_v41 }
  0x91   : > { %v506_v3 = vsel %vm398_vm1, %v501_v0, %v505_v2  ;;  %v282_v0 = vld [vmem:[%s3653_s30 + $0x90] sm:$0xf] }
  0x94   : > { %1646 = vmatmul.mubr.bf16.gmra.mxu0 %v3983_v39 }
  0x95   : > { %1823 = vmatmul.mubr.bf16.gmra.mxu1 %v586_v7  ;;  %1653 = vmatprep.mubr.bf16.mxu0 %v490_v42  ;;  %v509_v7 = vor.u32 %v4140_v10, %v505_v2  ;;  %v4170_v42 = vshrl.u32 %v4147_v15, 16  ;;  %v283_v2 = vld [vmem:[%s3653_s30 + $0x94] sm:$0xf] }
  0x96   : > { %1830 = vmatprep.mubr.bf16.mxu1 %v590_v47 }
  0x97   : > { %v514_v24 = vsel %vm398_vm1, %v509_v7, %v513_v18  ;;  %v525_v51 = vor.u32 %v4170_v42, %v521_v1  ;;  %v4190_v7 = vshll.u32 %v4177_v49, 16 }
  0x99   : > { %5000 = vst [vmem:[#allocation4_spill] sm:$0xff] %v4190_v7 }
  0x9c   : > { %1654 = vmatmul.mubr.bf16.gmra.mxu0 %v4027_v61 }
  0x9d   : > { %1831 = vmatmul.mubr.bf16.gmra.mxu1 %v588_v37  ;;  %1661 = vmatprep.mubr.bf16.mxu0 %v498_v30  ;;  %v517_v37 = vor.u32 %v4155_v25, %v513_v18  ;;  %v4193_v18 = vcombine.low %v282_v0, %v283_v2 }
  0x9e   : > { %1838 = vmatprep.mubr.bf16.mxu1 %v592_v62 }
  0x9f   : > { %v522_v38 = vsel %vm398_vm1, %v517_v37, %v521_v1  ;;  %5001 = vst [vmem:[#allocation5_spill] sm:$0xff] %v4193_v18  ;;  %v3055_v37 = vcombine.low %v282_v0, %v282_v0  ;;  %v627_v1 = vrot.slane %v4193_v18, 1 }
  0xa1   : > { %v543_v2 = vshll.u32 %v3055_v37, 16 }
  0xa3   : > { %v545_v0 = vrot.slane %v543_v2, 1  ;;  %v211_v2 = vld [vmem:[%s4987_s2 + $0x8] sm:$0xff] }
  0xa4   : > { %1662 = vmatmul.mubr.bf16.gmra.mxu0 %v4066_v17 }
  0xa5   : > { %1839 = vmatmul.mubr.bf16.gmra.mxu1 %v590_v47  ;;  %1669 = vmatprep.mubr.bf16.mxu0 %v506_v3  ;;  %v4173_v47 = vshll.u32 %v4162_v21, 16  ;;  %v4187_v3 = vshrl.u32 %v4162_v21, 16 }
  0xa6   : > { %1846 = vmatprep.mubr.bf16.mxu1 %v594_v13 }
  0xa7   : > { %4999 = vst [vmem:[#allocation3_spill] sm:$0xff] %v4173_v47  ;;  %v529_v30 = vrot.slane %v4173_v47, 1 }
  0xa9   : > { %v530_v4 = vsel %vm398_vm1, %v525_v51, %v529_v30  ;;  %v533_v22 = vor.u32 %v4187_v3, %v529_v30 }
  0xac   : > { %1670 = vmatmul.mubr.bf16.gmra.mxu0 %v4100_v40 }
  0xad   : > { %1847 = vmatmul.mubr.bf16.gmra.mxu1 %v592_v62  ;;  %1677 = vmatprep.mubr.bf16.mxu0 %v514_v24  ;;  %v599_v62 = vrot.slane %v4177_v49, 1  ;;  %v537_v24 = vrot.slane %v4190_v7, 1  ;;  %v3515_v7 = vld [vmem:[%s3653_s30 + $0x8] sm:$0xff]  }
  0xae   : > { %1854 = vmatprep.mubr.bf16.mxu1 %v596_v28 }
  0xaf   : > { %v538_v51 = vsel %vm398_vm1, %v533_v22, %v537_v24  ;;  %v628_v47 = vsel %vm565_vm0, %v599_v62, %v627_v1 }
  0xb4   : > { %1678 = vmatmul.mubr.bf16.gmra.mxu0 %v4117_v48 }
  0xb5   : > { %1855 = vmatmul.mubr.bf16.gmra.mxu1 %v594_v13  ;;  %1685 = vmatprep.mubr.bf16.mxu0 %v522_v38  ;;  %v600_v13 = vsel %vm565_vm0, %v597_v41, %v599_v62  ;;  %v4200_v38 = vld [vmem:[%s3653_s30 + $0x98] sm:$0xf]  ;;  %v4204_v41 = vshrl.u32 %v4177_v49, 16 }
  0xb6   : > { %1862 = vmatprep.mubr.bf16.mxu1 %v598_v35  ;;  %5002 = vst [vmem:[#allocation6_spill] sm:$0xff] %v4200_v38 }
  0xb7   : > { %v541_v30 = vor.u32 %v4204_v41, %v537_v24 }
  0xb9   : > { %v546_v22 = vsel %vm398_vm1, %v541_v30, %v545_v0 }
  0xbc   : > { %1686 = vmatmul.mubr.bf16.gmra.mxu0 %v4132_v63 }
  0xbd   : > { %1863 = vmatmul.mubr.bf16.gmra.mxu1 %v596_v28  ;;  %1693 = vmatprep.mubr.bf16.mxu0 %v530_v4  ;;  %v4209_v28 = vcombine.low %v4200_v38, %v4200_v38  ;;  %v601_v38 = vrot.slane %v3055_v37, 1  ;;  %v3513_v37 = vld [vmem:[%s4986_s1 + $0x200] sm:$0xff]  }
  0xbe   : > { %1870 = vmatprep.mubr.bf16.mxu1 %v600_v13 }
  0xbf   : > { %v629_v4 = vrot.slane %v4209_v28, 1  ;;  %v602_v24 = vsel %vm565_vm0, %v599_v62, %v601_v38  ;;  %v210_v62 = vld [vmem:[%s4987_s2] sm:$0xff]  ;;  %v749_v38 = vrot.slane %v3856_v31, 2 }
  0xc0   : > { %2428 = vperm.xlu0 %3418, %v210_v62   ;;  %v841_v62 = vrot.slane %v4110_v43, 2 }
  0xc1   : > { %v630_v18 = vsel %vm565_vm0, %v627_v1, %v629_v4  ;;  %v212_v1 = vld [vmem:[%s4987_s2 + $0x10] sm:$0xff]  ;;  %v834_v4 = vrot.slane %v4017_v55, 3 }
  0xc2   : > { %2438 = vperm.xlu1 %3419, %v212_v1  }
  0xc4   : > { %1694 = vmatmul.mubr.bf16.gmra.mxu0 %v4147_v15  ;;  %v738_v15 = vrot.slane %v3515_v7, 2  ;;  %v3507_v7 = vld [vmem:[%s4986_s1 + $0x230] sm:$0xff]   ;;  %2433 = vperm.xlu0 %3418, %v211_v2  }
  0xc5   : > { %1871 = vmatmul.mubr.bf16.gmra.mxu1 %v598_v35  ;;  %1701 = vmatprep.mubr.bf16.mxu0 %v538_v51  ;;  %v4219_v35 = vld [vmem:[%s3653_s30 + $0x10] sm:$0xff]  }
  0xc6   : > { %1878 = vmatprep.mubr.bf16.mxu1 %v628_v47  ;;  %v739_v47 = vrot.slane %v4219_v35, 2 }
  0xc8   : > { %v740_v51 = vsel %vm737_vm4, %v738_v15, %v739_v47  ;;  %v743_v15 = vrot.slane %v3759_v57, 2  ;;  %v745_v57 = vrot.slane %v3795_v8, 2  ;;  %v747_v8 = vrot.slane %v3823_v19, 2 }
  0xc9   : > { %v830_v19 = vrot.slane %v3969_v33, 3 }
  0xca   : > { %v750_v0 = vsel %vm737_vm4, %v747_v8, %v749_v38 }
  0xcc   : > { %1702 = vmatmul.mubr.bf16.gmra.mxu0 %v4162_v21 }
  0xcd   : > { %1879 = vmatmul.mubr.bf16.gmra.mxu1 %v600_v13  ;;  %1709 = vmatprep.mubr.bf16.mxu0 %v546_v22  ;;  %v741_v13 = vrot.slane %v3734_v46, 2  ;;  %v3508_v46 = vld [vmem:[%s4986_s1 + $0x228] sm:$0xff]   ;;  %v214_v22 = vld [vmem:[%s4987_s2 + $0x20] sm:$0xff] }
  0xce   : > { %1886 = vmatprep.mubr.bf16.mxu1 %v630_v18  ;;  %2448 = vperm.xlu0 %3418, %v214_v22   ;;  %v670_v22 = vrot.slane %v4055_v59, 2 }
  0xcf   : > { %v742_v18 = vsel %vm737_vm4, %v739_v47, %v741_v13  ;;  %v215_v47 = vld [vmem:[%s4987_s2 + $0x28] sm:$0xff] }
  0xd4   : > { %1710 = vmatmul.mubr.bf16.gmra.mxu0 %v4177_v49 }
  0xd5   : > { %1887 = vmatmul.mubr.bf16.gmra.mxu1 %v602_v24  ;;  %1927 = vmatprep.mubr.bf16.mxu0 %v740_v51  ;;  %v216_v51 = vld [vmem:[%s4987_s2 + $0x30] sm:$0xff] }
  0xd6   : > { %2104 = vmatprep.mubr.bf16.mxu1 %v3904_v60  ;;  %v744_v60 = vsel %vm737_vm4, %v741_v13, %v743_v15  ;;  %v661_v13 = vrot.slane %v4014_v53, 1  ;;  %2458 = vperm.xlu0 %3418, %v216_v51  }
  0xdc   : > { %1928 = vmatmul.mubr.bf16.vlgmr.msra.gmra.mxu0 %v3915_v56  ;;  %v3509_v56 = vld [vmem:[%s4986_s1 + $0x220] sm:$0xff]  }
  0xdd   : > { %2105 = vmatmul.mubr.bf16.vlgmr.msra.gmra.mxu1 %v742_v18  ;;  %3340 = vmatpush3.bf16.msra.mxu0 %v4088_v29 }
  0xde   : > { %1935 = vmatprep.mubr.bf16.mxu0 %v742_v18  ;;  %2112 = vmatprep.mubr.bf16.mxu1 %v3931_v9  ;;  %v3510_v9 = vld [vmem:[%s4986_s1 + $0x218] sm:$0xff]  }
  0xdf   : > { %3341 = vmatprep.subr.bf16.mxu0 %v3507_v7  ;;  %3399 = vmatpush3.bf16.msra.mxu1 %v4088_v29  ;;  %v746_v29 = vsel %vm737_vm4, %v743_v15, %v745_v57  ;;  %v217_v18 = vld [vmem:[%s4987_s2 + $0x38] sm:$0xff]  ;;  %v837_v15 = vrot.slane %v4093_v32, 2 }
  0xe0   : > { %3392 = vmatprep.subr.bf16.mxu1 %v3507_v7 }
  0xe1   : > { %3342 = vmatpush3.bf16.msra.mxu0 %v3507_v7 }
  0xe2   : > { %3343 = vmatprep.subr.bf16.mxu0 %v3508_v46 }
  0xe3   : > { %3400 = vmatpush3.bf16.msra.mxu1 %v3507_v7 }
  0xe4   : > { %1936 = vmatmul.mubr.bf16.gmra.mxu0 %v3938_v12  ;;  %3393 = vmatprep.subr.bf16.mxu1 %v3508_v46  ;;  %v3511_v12 = vld [vmem:[%s4986_s1 + $0x210] sm:$0xff]  }
  0xe5   : > { %2113 = vmatmul.mubr.bf16.gmra.mxu1 %v744_v60  ;;  %1943 = vmatprep.mubr.bf16.mxu0 %v744_v60  ;;  %v218_v60 = vld [vmem:[%s4987_s2 + $0x40] sm:$0xff] }
  0xe6   : > { %2120 = vmatprep.mubr.bf16.mxu1 %v3950_v20  ;;  %3344 = vmatpush3.bf16.msra.mxu0 %v3508_v46  ;;  %v3512_v20 = vld [vmem:[%s4986_s1 + $0x208] sm:$0xff]  }
  0xe7   : > { %3345 = vmatprep.subr.bf16.mxu0 %v3509_v56  ;;  %3401 = vmatpush3.bf16.msra.mxu1 %v3508_v46  ;;  %v838_v46 = vrot.slane %v4055_v59, 3  ;;  %v226_v59 = vld [vmem:[%s4987_s2 + $0x80] sm:$0xff] }
  0xe8   : > { %3394 = vmatprep.subr.bf16.mxu1 %v3509_v56  ;;  %2468 = vperm.xlu0 %3418, %v218_v60  }
  0xea   : > { %3346 = vmatpush3.bf16.msra.mxu0 %v3509_v56 }
  0xeb   : > { %3347 = vmatprep.subr.bf16.mxu0 %v3510_v9  ;;  %3402 = vmatpush3.bf16.msra.mxu1 %v3509_v56  ;;  %v753_v56 = vrot.slane %v3983_v39, 2 }
  0xec   : > { %1944 = vmatmul.mubr.bf16.gmra.mxu0 %v3960_v27  ;;  %3395 = vmatprep.subr.bf16.mxu1 %v3510_v9  ;;  %v748_v27 = vsel %vm737_vm4, %v745_v57, %v747_v8  ;;  %v839_v57 = vor.u32 %v838_v46, %v837_v15  ;;  %v221_v8 = vld [vmem:[%s4987_s2 + $0x58] sm:$0xff]  ;;  %v227_v15 = vld [vmem:[%s4987_s2 + $0x88] sm:$0xff] }
  0xed   : > { %2121 = vmatmul.mubr.bf16.gmra.mxu1 %v746_v29  ;;  %1951 = vmatprep.mubr.bf16.mxu0 %v746_v29  ;;  %v665_v29 = vrot.slane %v4052_v14, 1 }
  0xee   : > { %2128 = vmatprep.mubr.bf16.mxu1 %v3964_v23  ;;  %3348 = vmatpush3.bf16.msra.mxu0 %v3510_v9  ;;  %v829_v23 = vrot.slane %v4014_v53, 2  ;;  %v219_v53 = vld [vmem:[%s4987_s2 + $0x48] sm:$0xff] }
  0xef   : > { %3349 = vmatprep.subr.bf16.mxu0 %v3511_v12  ;;  %3403 = vmatpush3.bf16.msra.mxu1 %v3510_v9  ;;  %v220_v9 = vld [vmem:[%s4987_s2 + $0x50] sm:$0xff] }
  0xf0   : > { %3396 = vmatprep.subr.bf16.mxu1 %v3511_v12  ;;  %v831_v30 = vor.u32 %v830_v19, %v829_v23  ;;  %2478 = vperm.xlu0 %3418, %v220_v9   ;;  %v223_v19 = vld [vmem:[%s4987_s2 + $0x68] sm:$0xff] }
  0xf2   : > { %3350 = vmatpush3.bf16.msra.mxu0 %v3511_v12  ;;  %v832_v31 = vsel %vm805_vm2, %v4005_v50, %v831_v30  ;;  %v751_v50 = vrot.slane %v3924_v6, 2 }
  0xf3   : > { %3351 = vmatprep.subr.bf16.mxu0 %v3512_v20  ;;  %3404 = vmatpush3.bf16.msra.mxu1 %v3511_v12  ;;  %v666_v12 = vrot.slane %v4017_v55, 2 }
  0xf4   : > { %1952 = vmatmul.mubr.bf16.gmra.mxu0 %v3975_v36  ;;  %3397 = vmatprep.subr.bf16.mxu1 %v3512_v20  ;;  %v213_v36 = vld [vmem:[%s4987_s2 + $0x18] sm:$0xff]  ;;  %v752_v7 = vsel %vm737_vm4, %v749_v38, %v751_v50  ;;  %v754_v39 = vsel %vm737_vm4, %v751_v50, %v753_v56  ;;  %v755_v38 = vrot.slane %v4027_v61, 2 }
  0xf5   : > { %2129 = vmatmul.mubr.bf16.gmra.mxu1 %v748_v27  ;;  %1959 = vmatprep.mubr.bf16.mxu0 %v748_v27  ;;  %v842_v27 = vrot.slane %v4096_v34, 3  ;;  %v667_v23 = vor.u32 %v666_v12, %v665_v29  ;;  %v225_v61 = vld [vmem:[%s4987_s2 + $0x78] sm:$0xff]  ;;  %v673_v12 = vrot.slane %v4110_v43, 1 }
  0xf6   : > { %2136 = vmatprep.mubr.bf16.mxu1 %v4010_v52  ;;  %3352 = vmatpush3.bf16.msra.mxu0 %v3512_v20  ;;  %v833_v52 = vrot.slane %v4052_v14, 2 }
  0xf7   : > { %3353 = vmatprep.subr.bf16.mxu0 %v3513_v37  ;;  %3405 = vmatpush3.bf16.msra.mxu1 %v3512_v20 }
  0xf8   : > { %3398 = vmatprep.subr.bf16.mxu1 %v3513_v37  ;;  %2443 = vperm.xlu1 %3419, %v213_v36   ;;  %v835_v24 = vor.u32 %v834_v4, %v833_v52  ;;  %v224_v36 = vld [vmem:[%s4987_s2 + $0x70] sm:$0xff]  ;;  %v669_v4 = vrot.slane %v4093_v32, 1 }
  0xfa   : > { %3354 = vmatpush3.bf16.msra.mxu0 %v3513_v37  ;;  %v836_v6 = vsel %vm805_vm2, %v831_v30, %v835_v24  ;;  %v840_v20 = vsel %vm805_vm2, %v835_v24, %v839_v57  ;;  %v843_v30 = vor.u32 %v842_v27, %v841_v62  ;;  %v756_v24 = vsel %vm737_vm4, %v753_v56, %v755_v38 }
  0xfb   : > { %3406 = vmatpush3.bf16.msra.mxu1 %v3513_v37 }
  0xfc   : > { %1960 = vmatmul.mubr.bf16.gmra.mxu0 %v4023_v54  ;;  %2453 = vperm.xlu1 %3419, %v215_v47   ;;  %v662_v54 = vrot.slane %v3969_v33, 2 }
  0xfd   : > { %2137 = vmatmul.mubr.bf16.gmra.mxu1 %v750_v0  ;;  %1967 = vmatprep.mubr.bf16.mxu0 %v750_v0 }
  0xfe   : > { %2144 = vmatprep.mubr.bf16.mxu1 %v832_v31  ;;  %v663_v33 = vor.u32 %v662_v54, %v661_v13  ;;  %v844_v13 = vsel %vm805_vm2, %v839_v57, %v843_v30  ;;  %v845_v54 = vrot.slane %v4125_v58, 2  ;;  %v228_v57 = vld [vmem:[%s4987_s2 + $0x90] sm:$0xff] }
 0x100   : > { %2463 = vperm.xlu1 %3419, %v217_v18   ;;  %v668_v52 = vsel %vm633_vm3, %v663_v33, %v667_v23  ;;  %v846_v18 = vrot.slane %v4113_v44, 3 }
 0x102   : > { %v847_v56 = vor.u32 %v846_v18, %v845_v54 }
 0x104   : > { %1968 = vmatmul.mubr.bf16.gmra.mxu0 %v4062_v16  ;;  %2473 = vperm.xlu1 %3419, %v219_v53   ;;  %v664_v16 = vsel %vm633_vm3, %v4048_v11, %v663_v33  ;;  %v222_v11 = vld [vmem:[%s4987_s2 + $0x60] sm:$0xff]  ;;  %v757_v33 = vrot.slane %v4066_v17, 2  ;;  %v229_v17 = vld [vmem:[%s4987_s2 + $0x98] sm:$0xff] }
 0x105   : > { %2145 = vmatmul.mubr.bf16.gmra.mxu1 %v752_v7  ;;  %1975 = vmatprep.mubr.bf16.mxu0 %v752_v7 }
 0x106   : > { %2152 = vmatprep.mubr.bf16.mxu1 %v836_v6  ;;  %2488 = vperm.xlu0 %3418, %v222_v11   ;;  %v671_v6 = vor.u32 %v670_v22, %v669_v4  ;;  %v758_v62 = vsel %vm737_vm4, %v755_v38, %v757_v33  ;;  %v848_v11 = vsel %vm805_vm2, %v843_v30, %v847_v56  ;;  %v759_v30 = vrot.slane %v4100_v40, 2  ;;  %v233_v40 = vld [vmem:[%s4987_s2 + $0xb8] sm:$0xff] }
 0x108   : > { %2483 = vperm.xlu1 %3419, %v221_v8   ;;  %v672_v29 = vsel %vm633_vm3, %v667_v23, %v671_v6  ;;  %v674_v8 = vrot.slane %v4096_v34, 2  ;;  %v230_v34 = vld [vmem:[%s4987_s2 + $0xa0] sm:$0xff] }
 0x10a   : > { %2498 = vperm.xlu0 %3418, %v224_v36  }
 0x10c   : > { %v1575_v14 = vpop.f32.mrf.mxu0  ;;  %1976 = vmatmul.mubr.bf16.gmra.mxu0 %v664_v16  ;;  %2493 = vperm.xlu1 %3419, %v223_v19   ;;  %v675_v19 = vor.u32 %v674_v8, %v673_v12  ;;  %v681_v8 = vrot.slane %v4140_v10, 1 }
 0x10d   : > { %v1752_v55 = vpop.f32.mrf.mxu1  ;;  %2153 = vmatmul.mubr.bf16.gmra.mxu1 %v754_v39  ;;  %1983 = vmatprep.mubr.bf16.mxu0 %v754_v39 }
 0x10e   : > { %v4333_v37 = vadd.f32 %v1752_v55, %v1575_v14  ;;  %v1577_v1 = vpop.f32.mrf.mxu0  ;;  %2160 = vmatprep.mubr.bf16.mxu1 %v840_v20  ;;  %2508 = vperm.xlu0 %3418, %v226_v59   ;;  %v849_v14 = vrot.slane %v4140_v10, 2  ;;  %v850_v55 = vrot.slane %v4128_v45, 3  ;;  %v676_v22 = vsel %vm633_vm3, %v671_v6, %v675_v19 }
 0x10f   : > { %v1754_v2 = vpop.f32.mrf.mxu1  ;;  %v231_v1 = vld [vmem:[%s4987_s2 + $0xa8] sm:$0xff]  ;;  %v853_v59 = vrot.slane %v4155_v25, 2 }
 0x110   : > { %v1578_v0 = vpop.f32.mrf.mxu0  ;;  %2503 = vperm.xlu1 %3419, %v225_v61   ;;  %v677_v61 = vrot.slane %v4125_v58, 1 }
 0x111   : > { %v1755_v31 = vpop.f32.mrf.mxu1 }
 0x112   : > { %v4345_v47 = vadd.f32 %v1755_v31, %v1578_v0  ;;  %v1580_v50 = vpop.f32.mrf.mxu0  ;;  %2518 = vperm.xlu0 %3418, %v228_v57   ;;  %v851_v0 = vor.u32 %v850_v55, %v849_v14  ;;  %v232_v31 = vld [vmem:[%s4987_s2 + $0xb0] sm:$0xff]  ;;  %v857_v55 = vrot.slane %v4170_v42, 2 }
 0x113   : > { %v1757_v51 = vpop.f32.mrf.mxu1  ;;  %v678_v50 = vrot.slane %v4113_v44, 2  ;;  %v234_v44 = vld [vmem:[%s4987_s2 + $0xc0] sm:$0xff] }
 0x114   : > { %v1583_v32 = vpop.f32.mrf.mxu0  ;;  %1984 = vmatmul.mubr.bf16.gmra.mxu0 %v668_v52  ;;  %2513 = vperm.xlu1 %3419, %v227_v15   ;;  %v852_v18 = vsel %vm805_vm2, %v847_v56, %v851_v0  ;;  %v235_v15 = vld [vmem:[%s4987_s2 + $0xc8] sm:$0xff] }
 0x115   : > { %v1760_v7 = vpop.f32.mrf.mxu1  ;;  %2161 = vmatmul.mubr.bf16.gmra.mxu1 %v756_v24  ;;  %1991 = vmatprep.mubr.bf16.mxu0 %v756_v24  ;;  %v679_v6 = vor.u32 %v678_v50, %v677_v61  ;;  %v685_v61 = vrot.slane %v4155_v25, 1  ;;  %v686_v50 = vrot.slane %v4143_v5, 2 }
 0x116   : > { %v4357_v46 = vadd.f32 %v1760_v7, %v1583_v32  ;;  %v1585_v60 = vpop.f32.mrf.mxu0  ;;  %2168 = vmatprep.mubr.bf16.mxu1 %v844_v13  ;;  %2528 = vperm.xlu0 %3418, %v230_v34   ;;  %v760_v13 = vsel %vm737_vm4, %v757_v33, %v759_v30  ;;  %v854_v32 = vrot.slane %v4143_v5, 3  ;;  %v858_v34 = vrot.slane %v4158_v26, 3  ;;  %v242_v5 = vld [vmem:[%s4987_s2 + $0x100] sm:$0xff] }
 0x117   : > { %v1762_v53 = vpop.f32.mrf.mxu1  ;;  %v680_v12 = vsel %vm633_vm3, %v675_v19, %v679_v6  ;;  %v239_v19 = vld [vmem:[%s4987_s2 + $0xe8] sm:$0xff] }
 0x118   : > { %v1586_v9 = vpop.f32.mrf.mxu0  ;;  %2523 = vperm.xlu1 %3419, %v229_v17   ;;  %v761_v53 = vrot.slane %v4117_v48, 2  ;;  %v855_v57 = vor.u32 %v854_v32, %v853_v59  ;;  %v682_v17 = vrot.slane %v4128_v45, 2  ;;  %v237_v48 = vld [vmem:[%s4987_s2 + $0xd8] sm:$0xff]  ;;  %v238_v45 = vld [vmem:[%s4987_s2 + $0xe0] sm:$0xff]  ;;  %v861_v59 = vrot.slane %v4187_v3, 2  ;;  %v5003_v32 = vld [vmem:[#allocation3_spill] sm:$0xff] }
 0x119   : > { %v1763_v16 = vpop.f32.mrf.mxu1 }
 0x11a   : > { %v4369_v39 = vadd.f32 %v1763_v16, %v1586_v9  ;;  %v1588_v20 = vpop.f32.mrf.mxu0  ;;  %2538 = vperm.xlu0 %3418, %v232_v31   ;;  %v236_v9 = vld [vmem:[%s4987_s2 + $0xd0] sm:$0xff]  ;;  %v856_v14 = vsel %vm805_vm2, %v851_v0, %v855_v57  ;;  %v859_v0 = vor.u32 %v858_v34, %v857_v55 }
 0x11b   : > { %v1765_v27 = vpop.f32.mrf.mxu1  ;;  %v240_v31 = vld [vmem:[%s4987_s2 + $0xf0] sm:$0xff] }
 0x11c   : > { %v1591_v43 = vpop.f32.mrf.mxu0  ;;  %1992 = vmatmul.mubr.bf16.gmra.mxu0 %v672_v29  ;;  %2533 = vperm.xlu1 %3419, %v231_v1   ;;  %v762_v27 = vsel %vm737_vm4, %v759_v30, %v761_v53  ;;  %v763_v30 = vrot.slane %v4132_v63, 2  ;;  %v241_v63 = vld [vmem:[%s4987_s2 + $0xf8] sm:$0xff] }
 0x11d   : > { %v1768_v23 = vpop.f32.mrf.mxu1  ;;  %2169 = vmatmul.mubr.bf16.gmra.mxu1 %v758_v62  ;;  %1999 = vmatprep.mubr.bf16.mxu0 %v758_v62 }
 0x11e   : > { %v4381_v38 = vadd.f32 %v1768_v23, %v1591_v43  ;;  %v1593_v2 = vpop.f32.mrf.mxu0  ;;  %2176 = vmatprep.mubr.bf16.mxu1 %v848_v11  ;;  %2548 = vperm.xlu0 %3418, %v234_v44   ;;  %v683_v23 = vor.u32 %v682_v17, %v681_v8  ;;  %v862_v44 = vrot.slane %v5003_v32, 3  ;;  %v689_v17 = vrot.slane %v4170_v42, 1 }
 0x11f   : > { %v1770_v36 = vpop.f32.mrf.mxu1 }
 0x120   : > { %v1594_v52 = vpop.f32.mrf.mxu0  ;;  %2543 = vperm.xlu1 %3419, %v233_v40  }
 0x121   : > { %v1771_v4 = vpop.f32.mrf.mxu1 }
 0x122   : > { %v4393_v24 = vadd.f32 %v1771_v4, %v1594_v52  ;;  %v1596_v51 = vpop.f32.mrf.mxu0  ;;  %2558 = vperm.xlu0 %3418, %v236_v9   ;;  %v863_v9 = vor.u32 %v862_v44, %v861_v59  ;;  %v5007_v59 = vld [vmem:[#allocation6_spill] sm:$0xff] }
 0x123   : > { %v1773_v54 = vpop.f32.mrf.mxu1 }
 0x124   : > { %v1599_v58 = vpop.f32.mrf.mxu0  ;;  %2000 = vmatmul.mubr.bf16.gmra.mxu0 %v676_v22  ;;  %2553 = vperm.xlu1 %3419, %v235_v15   ;;  %v684_v22 = vsel %vm633_vm3, %v679_v6, %v683_v23  ;;  %v243_v6 = vld [vmem:[%s4987_s2 + $0x108] sm:$0xff]  ;;  %v864_v34 = vsel %vm805_vm2, %v859_v0, %v863_v9 }
 0x125   : > { %v1776_v7 = vpop.f32.mrf.mxu1  ;;  %2177 = vmatmul.mubr.bf16.gmra.mxu1 %v760_v13  ;;  %2007 = vmatprep.mubr.bf16.mxu0 %v760_v13  ;;  %v764_v13 = vsel %vm737_vm4, %v761_v53, %v763_v30  ;;  %v5004_v53 = vld [vmem:[#allocation2_spill] sm:$0xff] }
 0x126   : > { %v4405_v60 = vadd.f32 %v1776_v7, %v1599_v58  ;;  %v1601_v33 = vpop.f32.mrf.mxu0  ;;  %2184 = vmatprep.mubr.bf16.mxu1 %v852_v18  ;;  %2568 = vperm.xlu0 %3418, %v238_v45   ;;  %v860_v18 = vsel %vm805_vm2, %v855_v57, %v859_v0  ;;  %v687_v7 = vor.u32 %v686_v50, %v685_v61  ;;  %v865_v45 = vrot.slane %v4204_v41, 2 }
 0x127   : > { %v1778_v56 = vpop.f32.mrf.mxu1 }
 0x128   : > { %v1602_v16 = vpop.f32.mrf.mxu0  ;;  %2563 = vperm.xlu1 %3419, %v237_v48   ;;  %v765_v56 = vrot.slane %v5004_v53, 2  ;;  %v688_v8 = vsel %vm633_vm3, %v683_v23, %v687_v7  ;;  %v690_v48 = vrot.slane %v4158_v26, 2 }
 0x129   : > { %v1779_v29 = vpop.f32.mrf.mxu1 }
 0x12a   : > { %v4417_v20 = vadd.f32 %v1779_v29, %v1602_v16  ;;  %v1604_v62 = vpop.f32.mrf.mxu0  ;;  %2578 = vperm.xlu0 %3418, %v240_v31   ;;  %v244_v16 = vld [vmem:[%s4987_s2 + $0x110] sm:$0xff]  ;;  %v691_v23 = vor.u32 %v690_v48, %v689_v17  ;;  %v5006_v31 = vld [vmem:[#allocation5_spill] sm:$0xff]  ;;  %v697_v48 = vrot.slane %v4204_v41, 1 }
 0x12b   : > { %v1781_v11 = vpop.f32.mrf.mxu1  ;;  %v245_v62 = vld [vmem:[%s4987_s2 + $0x118] sm:$0xff] }
 0x12c   : > { %v1607_v10 = vpop.f32.mrf.mxu0  ;;  %2008 = vmatmul.mubr.bf16.gmra.mxu0 %v680_v12  ;;  %2573 = vperm.xlu1 %3419, %v239_v19  }
 0x12d   : > { %v1784_v43 = vpop.f32.mrf.mxu1  ;;  %2185 = vmatmul.mubr.bf16.gmra.mxu1 %v762_v27  ;;  %2015 = vmatprep.mubr.bf16.mxu0 %v762_v27 }
 0x12e   : > { %v4429_v1 = vadd.f32 %v1784_v43, %v1607_v10  ;;  %v1609_v2 = vpop.f32.mrf.mxu0  ;;  %2192 = vmatprep.mubr.bf16.mxu1 %v856_v14  ;;  %2588 = vperm.xlu0 %3418, %v242_v5   ;;  %v766_v14 = vsel %vm737_vm4, %v763_v30, %v765_v56  ;;  %v5005_v10 = vld [vmem:[#allocation4_spill] sm:$0xff]  ;;  %v767_v30 = vrot.slane %v4162_v21, 2 }
 0x12f   : > { %v1786_v36 = vpop.f32.mrf.mxu1  ;;  %v866_v43 = vrot.slane %v5005_v10, 3 }
 0x130   : > { %v1610_v52 = vpop.f32.mrf.mxu0  ;;  %2583 = vperm.xlu1 %3419, %v241_v63   ;;  %v692_v63 = vsel %vm633_vm3, %v687_v7, %v691_v23  ;;  %v768_v21 = vsel %vm737_vm4, %v765_v56, %v767_v30  ;;  %v769_v56 = vrot.slane %v4177_v49, 2 }
 0x131   : > { %v1787_v4 = vpop.f32.mrf.mxu1  ;;  %v867_v0 = vor.u32 %v866_v43, %v865_v45 }
 0x132   : > { %v4441_v40 = vadd.f32 %v1787_v4, %v1610_v52  ;;  %v1612_v51 = vpop.f32.mrf.mxu0  ;;  %2598 = vperm.xlu0 %3418, %v244_v16   ;;  %v702_v52 = vshrl.u32 %v5006_v31, 16  ;;  %v705_v4 = vshll.u32 %v5006_v31, 16  ;;  %v770_v49 = vsel %vm737_vm4, %v767_v30, %v769_v56 }
 0x133   : > { %v1789_v54 = vpop.f32.mrf.mxu1  ;;  %v693_v51 = vrot.slane %v4187_v3, 1 }
 0x134   : > { %v1615_v25 = vpop.f32.mrf.mxu0  ;;  %2016 = vmatmul.mubr.bf16.gmra.mxu0 %v684_v22  ;;  %2593 = vperm.xlu1 %3419, %v243_v6   ;;  %v285_v22 = vld [vmem:[%s3653_s30 + $0x9c] sm:$0xf]  ;;  %v870_v6 = vrot.slane %v705_v4, 3 }
 0x135   : > { %v1792_v58 = vpop.f32.mrf.mxu1  ;;  %2193 = vmatmul.mubr.bf16.gmra.mxu1 %v764_v13  ;;  %2023 = vmatprep.mubr.bf16.mxu0 %v764_v13  ;;  %v694_v13 = vrot.slane %v5003_v32, 2  ;;  %v4484_v44 = vcombine.low %v5007_v59, %v285_v22 }
 0x136   : > { %v4453_v15 = vadd.f32 %v1792_v58, %v1615_v25  ;;  %v1617_v33 = vpop.f32.mrf.mxu0  ;;  %2200 = vmatprep.mubr.bf16.mxu1 %v860_v18  ;;  %v868_v25 = vsel %vm805_vm2, %v863_v9, %v867_v0  ;;  %v869_v58 = vrot.slane %v702_v52, 2 }
 0x137   : > { %v1794_v57 = vpop.f32.mrf.mxu1  ;;  %v695_v3 = vor.u32 %v694_v13, %v693_v51  ;;  %v877_v9 = vshll.u32 %v4484_v44, 16  ;;  %v704_v13 = vrot.slane %v702_v52, 1  ;;  %v714_v52 = vshll.u32 %v4209_v28, 16 }
 0x138   : > { %v1618_v29 = vpop.f32.mrf.mxu0  ;;  %2603 = vperm.xlu1 %3419, %v245_v62   ;;  %v871_v16 = vor.u32 %v870_v6, %v869_v58  ;;  %v698_v62 = vrot.slane %v5005_v10, 2 }
 0x139   : > { %v1795_v12 = vpop.f32.mrf.mxu1  ;;  %v696_v17 = vsel %vm633_vm3, %v691_v23, %v695_v3  ;;  %v879_v43 = vrot.slane %v877_v9, 3 }
 0x13a   : > { %v4465_v27 = vadd.f32 %v1795_v12, %v1618_v29  ;;  %v1620_v11 = vpop.f32.mrf.mxu0  ;;  %v874_v29 = vshrl.u32 %v4484_v44, 16  ;;  %v699_v41 = vor.u32 %v698_v62, %v697_v48 }
 0x13b   : > { %v1797_v55 = vpop.f32.mrf.mxu1 }
 0x13c   : > { %v1623_v42 = vpop.f32.mrf.mxu0  ;;  %2024 = vmatmul.mubr.bf16.gmra.mxu0 %v688_v8  ;;  %v876_v45 = vrot.slane %v874_v29, 2  ;;  %v700_v51 = vsel %vm633_vm3, %v695_v3, %v699_v41  ;;  %v711_v3 = vshrl.u32 %v4209_v28, 16 }
 0x13d   : > { %v1800_v26 = vpop.f32.mrf.mxu1  ;;  %2201 = vmatmul.mubr.bf16.gmra.mxu1 %v766_v14  ;;  %2031 = vmatprep.mubr.bf16.mxu0 %v766_v14 }
 0x13e   : > { %v4471_v19 = vadd.f32 %v1800_v26, %v1623_v42  ;;  %v1625_v2 = vpop.f32.mrf.mxu0  ;;  %2208 = vmatprep.mubr.bf16.mxu1 %v864_v34  ;;  %v872_v34 = vsel %vm805_vm2, %v867_v0, %v871_v16  ;;  %v4500_v42 = vld [vmem:[%s3653_s30 + $0xa0] ss:$0 sps:$4 sm:$0xff]   ;;  %v880_v22 = vor.u32 %v879_v43, %v876_v45  ;;  %v713_v62 = vrot.slane %v711_v3, 1 }
 0x13f   : > { %v1802_v36 = vpop.f32.mrf.mxu1  ;;  %v883_v0 = vshrl.u32 %v4500_v42, 16 }
 0x140   : > { %v1626_v61 = vpop.f32.mrf.mxu0  ;;  %v771_v36 = vrot.slane %v5006_v31, 2  ;;  %v881_v58 = vsel %vm805_vm2, %v871_v16, %v880_v22  ;;  %v773_v16 = vrot.slane %v4209_v28, 2 }
 0x141   : > { %v1803_v50 = vpop.f32.mrf.mxu1  ;;  %v885_v6 = vrot.slane %v883_v0, 2  ;;  %v801_v0 = vrot.slane %v4500_v42, 2 }
 0x142   : > { %v4480_v54 = vadd.f32 %v1803_v50, %v1626_v61  ;;  %v1628_v18 = vpop.f32.mrf.mxu0  ;;  %v886_v61 = vshll.u32 %v4500_v42, 16  ;;  %v774_v45 = vsel %vm737_vm4, %v771_v36, %v773_v16 }
 0x143   : > { %v1805_v5 = vpop.f32.mrf.mxu1  ;;  %v707_v18 = vrot.slane %v705_v4, 2 }
 0x144   : > { %v1631_v33 = vpop.f32.mrf.mxu0  ;;  %2032 = vmatmul.mubr.bf16.gmra.mxu0 %v692_v63  ;;  %v772_v5 = vsel %vm737_vm4, %v769_v56, %v771_v36  ;;  %v799_v56 = vrot.slane %v4484_v44, 2 }
 0x145   : > { %v1808_v7 = vpop.f32.mrf.mxu1  ;;  %2209 = vmatmul.mubr.bf16.gmra.mxu1 %v768_v21  ;;  %2039 = vmatprep.mubr.bf16.mxu0 %v768_v21 }
 0x146   : > { %v4487_v32 = vadd.f32 %v1808_v7, %v1631_v33  ;;  %v1633_v53 = vpop.f32.mrf.mxu0  ;;  %2216 = vmatprep.mubr.bf16.mxu1 %v868_v25  ;;  %v888_v33 = vrot.slane %v886_v61, 3  ;;  %v910_v61 = vrot.slane %v4219_v35, 3  ;;  %v802_v35 = vsel %vm737_vm4, %v799_v56, %v801_v0 }
 0x147   : > { %v1810_v57 = vpop.f32.mrf.mxu1 }
 0x148   : > { %v1634_v12 = vpop.f32.mrf.mxu0  ;;  %v708_v57 = vor.u32 %v707_v18, %v704_v13  ;;  %v3519_v13 = vld [vmem:[%s3653_s30 + $0x68] sm:$0xff]  }
 0x149   : > { %v1811_v8 = vpop.f32.mrf.mxu1  ;;  %v931_v18 = vrot.slane %v3519_v13, 3 }
 0x14a   : > { %v4495_v11 = vadd.f32 %v1811_v8, %v1634_v12  ;;  %v1636_v14 = vpop.f32.mrf.mxu0  ;;  %v889_v12 = vor.u32 %v888_v33, %v885_v6  ;;  %v709_v48 = vsel %vm633_vm3, %v699_v41, %v708_v57 }
 0x14b   : > { %v1813_v55 = vpop.f32.mrf.mxu1  ;;  %v716_v14 = vrot.slane %v714_v52, 2 }
 0x14c   : > { %v1639_v26 = vpop.f32.mrf.mxu0  ;;  %2040 = vmatmul.mubr.bf16.gmra.mxu0 %v696_v17 }
 0x14d   : > { %v1816_v2 = vpop.f32.mrf.mxu1  ;;  %2217 = vmatmul.mubr.bf16.gmra.mxu1 %v770_v49  ;;  %2047 = vmatprep.mubr.bf16.mxu0 %v770_v49  ;;  %v717_v41 = vor.u32 %v716_v14, %v713_v62  ;;  %v3523_v62 = vld [vmem:[%s3653_s30 + $0x78] sm:$0xff]  }
 0x14e   : > { %v4502_v23 = vadd.f32 %v1816_v2, %v1639_v26  ;;  %v1641_v10 = vpop.f32.mrf.mxu0  ;;  %2224 = vmatprep.mubr.bf16.mxu1 %v872_v34  ;;  %v800_v34 = vsel %vm737_vm4, %v771_v36, %v799_v56  ;;  %v890_v26 = vsel %vm805_vm2, %v880_v22, %v889_v12  ;;  %v3517_v36 = vld [vmem:[%s3653_s30 + $0x18] sm:$0xff]   ;;  %v4530_v22 = vld [vmem:[%s3653_s30 + $0x60] sm:$0xff]   ;;  %v3521_v56 = vld [vmem:[%s3653_s30 + $0x70] sm:$0xff]   ;;  %v935_v14 = vrot.slane %v3523_v62, 3 }
 0x14f   : > { %v1818_v30 = vpop.f32.mrf.mxu1  ;;  %v933_v12 = vrot.slane %v3521_v56, 3  ;;  %v3528_v62 = vld [vmem:[%s3653_s30 + $0x40] sm:$0xff]  }
 0x150   : > { %v1642_v50 = vpop.f32.mrf.mxu0 }
 0x151   : > { %v1819_v63 = vpop.f32.mrf.mxu1 }
 0x152   : > { %v4508_v21 = vadd.f32 %v1819_v63, %v1642_v50  ;;  %v1644_v59 = vpop.f32.mrf.mxu0  ;;  %v911_v50 = vrot.slane %v3517_v36, 3  ;;  %v3524_v36 = vld [vmem:[%s3653_s30 + $0x30] sm:$0xff]  }
 0x153   : > { %v1821_v25 = vpop.f32.mrf.mxu1 }
 0x154   : > { %v1647_v7 = vpop.f32.mrf.mxu0  ;;  %2048 = vmatmul.mubr.bf16.gmra.mxu0 %v700_v51  ;;  %v929_v51 = vrot.slane %v4530_v22, 3  ;;  %v718_v25 = vsel %vm633_vm3, %v708_v57, %v717_v41  ;;  %v912_v33 = vsel %vm909_vm5, %v910_v61, %v911_v50  ;;  %v3520_v57 = vld [vmem:[%s3653_s30 + $0x20] sm:$0xff]  }
 0x155   : > { %v1824_v53 = vpop.f32.mrf.mxu1  ;;  %2225 = vmatmul.mubr.bf16.gmra.mxu1 %v772_v5  ;;  %2055 = vmatprep.mubr.bf16.mxu0 %v772_v5 }
 0x156   : > { %v4514_v4 = vadd.f32 %v1824_v53, %v1647_v7  ;;  %v1649_v29 = vpop.f32.mrf.mxu0  ;;  %2232 = vmatprep.mubr.bf16.mxu1 %v881_v58  ;;  %v932_v53 = vsel %vm909_vm5, %v929_v51, %v931_v18 }
 0x157   : > { %v1826_v9 = vpop.f32.mrf.mxu1  ;;  %v913_v29 = vrot.slane %v3520_v57, 3 }
 0x158   : > { %v1650_v8 = vpop.f32.mrf.mxu0 }
 0x159   : > { %v1827_v17 = vpop.f32.mrf.mxu1 }
 0x15a   : > { %v4519_v49 = vadd.f32 %v1827_v17, %v1650_v8  ;;  %v1652_v55 = vpop.f32.mrf.mxu0  ;;  %v3522_v8 = vld [vmem:[%s3653_s30 + $0x28] sm:$0xff]  }
 0x15b   : > { %v1829_v43 = vpop.f32.mrf.mxu1  ;;  %v915_v17 = vrot.slane %v3522_v8, 3 }
 0x15c   : > { %v1655_v28 = vpop.f32.mrf.mxu0  ;;  %2056 = vmatmul.mubr.bf16.gmra.mxu0 %v709_v48 }
 0x15d   : > { %v1832_v2 = vpop.f32.mrf.mxu1  ;;  %2233 = vmatmul.mubr.bf16.gmra.mxu1 %v800_v34  ;;  %2063 = vmatprep.mubr.bf16.mxu0 %v774_v45  ;;  %v914_v45 = vsel %vm909_vm5, %v911_v50, %v913_v29  ;;  %v917_v50 = vrot.slane %v3524_v36, 3 }
 0x15e   : > { %v4524_v10 = vadd.f32 %v1832_v2, %v1655_v28  ;;  %v1657_v30 = vpop.f32.mrf.mxu0  ;;  %2240 = vmatprep.mubr.bf16.mxu1 %v890_v26  ;;  %v934_v28 = vsel %vm909_vm5, %v931_v18, %v933_v12  ;;  %v916_v2 = vsel %vm909_vm5, %v913_v29, %v915_v17 }
 0x15f   : > { %v1834_v63 = vpop.f32.mrf.mxu1  ;;  %v936_v30 = vsel %vm909_vm5, %v933_v12, %v935_v14 }
 0x160   : > { %v1658_v59 = vpop.f32.mrf.mxu0 }
 0x161   : > { %v1835_v5 = vpop.f32.mrf.mxu1 }
 0x162   : > { %v4535_v58 = vadd.f32 %v1835_v5, %v1658_v59  ;;  %v1660_v6 = vpop.f32.mrf.mxu0  ;;  %v3525_v59 = vld [vmem:[%s3653_s30 + $0x80] sm:$0xff]   ;;  %v3526_v5 = vld [vmem:[%s3653_s30 + $0x38] sm:$0xff]  }
 0x163   : > { %v1837_v7 = vpop.f32.mrf.mxu1  ;;  %v937_v18 = vrot.slane %v3525_v59, 3 }
 0x164   : > { %v1663_v3 = vpop.f32.mrf.mxu0  ;;  %2064 = vmatmul.mubr.bf16.gmra.mxu0 %v718_v25  ;;  %v919_v25 = vrot.slane %v3526_v5, 3 }
 0x165   : > { %v1840_v52 = vpop.f32.mrf.mxu1  ;;  %2241 = vmatmul.mubr.bf16.gmra.mxu1 %v802_v35  ;;  %3355 = vmatprep.mubr.bf16.mxu0 %v912_v33  ;;  %v3527_v35 = vld [vmem:[%s3653_s30 + $0x88] sm:$0xff]   ;;  %v938_v29 = vsel %vm909_vm5, %v935_v14, %v937_v18 }
 0x166   : > { %v4543_v16 = vadd.f32 %v1840_v52, %v1663_v3  ;;  %v1665_v9 = vpop.f32.mrf.mxu0  ;;  %3375 = vmatprep.mubr.bf16.mxu1 %v932_v53  ;;  %v939_v33 = vrot.slane %v3527_v35, 3  ;;  %v918_v3 = vsel %vm909_vm5, %v915_v17, %v917_v50 }
 0x167   : > { %v1842_v48 = vpop.f32.mrf.mxu1  ;;  %v920_v9 = vsel %vm909_vm5, %v917_v50, %v919_v25 }
 0x168   : > { %v1666_v55 = vpop.f32.mrf.mxu0  ;;  %v940_v12 = vsel %vm909_vm5, %v937_v18, %v939_v33 }
 0x169   : > { %v1843_v34 = vpop.f32.mrf.mxu1 }
 0x16a   : > { %v4549_v43 = vadd.f32 %v1843_v34, %v1666_v55  ;;  %v1668_v26 = vpop.f32.mrf.mxu0  ;;  %v921_v55 = vrot.slane %v3528_v62, 3 }
 0x16b   : > { %v1845_v41 = vpop.f32.mrf.mxu1  ;;  %v3529_v26 = vld [vmem:[%s3653_s30 + $0x48] sm:$0xff]  }
 0x16c   : > { %v1671_v0 = vpop.f32.mrf.mxu0  ;;  %3356 = vmatmul.mubr.bf16.vlgmr.msra.gmra.mxu0 %v914_v45  ;;  %v941_v45 = vrot.slane %v5006_v31, 3  ;;  %v923_v14 = vrot.slane %v3529_v26, 3 }
 0x16d   : > { %v1848_v61 = vpop.f32.mrf.mxu1  ;;  %3376 = vmatmul.mubr.bf16.vlgmr.msra.gmra.mxu1 %v934_v28  ;;  %3359 = vmatprep.mubr.bf16.mxu0 %v916_v2  ;;  %v943_v2 = vrot.slane %v4484_v44, 3  ;;  %v3530_v44 = vld [vmem:[%s3653_s30 + $0x50] sm:$0xff]  }
 0x16e   : > { %v4555_v63 = vadd.f32 %v1848_v61, %v1671_v0  ;;  %v1673_v13 = vpop.f32.mrf.mxu0  ;;  %3379 = vmatprep.mubr.bf16.mxu1 %v936_v30  ;;  %v922_v0 = vsel %vm909_vm5, %v919_v25, %v921_v55  ;;  %v942_v50 = vsel %vm909_vm5, %v939_v33, %v941_v45 }
 0x16f   : > { %v1850_v6 = vpop.f32.mrf.mxu1  ;;  %v924_v13 = vsel %vm909_vm5, %v921_v55, %v923_v14  ;;  %v944_v31 = vsel %vm909_vm5, %v941_v45, %v943_v2 }
 0x170   : > { %v1674_v7 = vpop.f32.mrf.mxu0  ;;  %v925_v6 = vrot.slane %v3530_v44, 3 }
 0x171   : > { %v1851_v53 = vpop.f32.mrf.mxu1 }
 0x172   : > { %v4561_v52 = vadd.f32 %v1851_v53, %v1674_v7  ;;  %v1676_v57 = vpop.f32.mrf.mxu0  ;;  %v945_v7 = vrot.slane %v4500_v42, 3  ;;  %v3531_v53 = vld [vmem:[%s3653_s30 + $0x58] sm:$0xff]   ;;  %s3408_s30 = smul.u32 144, %s5077_s16 }
 0x173   : > { %v1853_v56 = vpop.f32.mrf.mxu1  ;;  %v927_v33 = vrot.slane %v3531_v53, 3 }
 0x174   : > { %v1679_v8 = vpop.f32.mrf.mxu0  ;;  %3360 = vmatmul.mubr.bf16.gmra.mxu0 %v918_v3  ;;  %s4798_s5 = scalar_lea.vmem %s4988_s3, %s3408_s30 }
 0x175   : > { %v1856_v48 = vpop.f32.mrf.mxu1  ;;  %3380 = vmatmul.mubr.bf16.gmra.mxu1 %v938_v29  ;;  %3363 = vmatprep.mubr.bf16.mxu0 %v920_v9  ;;  %v926_v9 = vsel %vm909_vm5, %v923_v14, %v925_v6  ;;  %v930_v14 = vsel %vm909_vm5, %v927_v33, %v929_v51 }
 0x176   : > { %v4567_v34 = vadd.f32 %v1856_v48, %v1679_v8  ;;  %v1681_v17 = vpop.f32.mrf.mxu0  ;;  %3383 = vmatprep.mubr.bf16.mxu1 %v940_v12  ;;  %v946_v8 = vsel %vm909_vm5, %v943_v2, %v945_v7  ;;  %v928_v48 = vsel %vm909_vm5, %v925_v6, %v927_v33 }
 0x177   : > { %v1858_v28 = vpop.f32.mrf.mxu1 }
 0x178   : > { %v1682_v41 = vpop.f32.mrf.mxu0 }
 0x179   : > { %v1859_v30 = vpop.f32.mrf.mxu1 }
 0x17a   : > { %v4573_v61 = vadd.f32 %v1859_v30, %v1682_v41  ;;  %v1684_v36 = vpop.f32.mrf.mxu0 }
 0x17b   : > { %v1861_v59 = vpop.f32.mrf.mxu1 }
 0x17c   : > { %v1687_v18 = vpop.f32.mrf.mxu0  ;;  %3364 = vmatmul.mubr.bf16.gmra.mxu0 %v922_v0 }
 0x17d   : > { %v1864_v5 = vpop.f32.mrf.mxu1  ;;  %3384 = vmatmul.mubr.bf16.gmra.mxu1 %v942_v50  ;;  %3367 = vmatprep.mubr.bf16.mxu0 %v924_v13 }
 0x17e   : > { %v4579_v35 = vadd.f32 %v1864_v5, %v1687_v18  ;;  %v1689_v25 = vpop.f32.mrf.mxu0  ;;  %3387 = vmatprep.mubr.bf16.mxu1 %v944_v31 }
 0x17f   : > { %v1866_v3 = vpop.f32.mrf.mxu1 }
 0x180   : > { %v1690_v57 = vpop.f32.mrf.mxu0 }
 0x181   : > { %v1867_v29 = vpop.f32.mrf.mxu1 }
 0x182   : > { %v4584_v56 = vadd.f32 %v1867_v29, %v1690_v57  ;;  %v1692_v12 = vpop.f32.mrf.mxu0 }
 0x183   : > { %v1869_v62 = vpop.f32.mrf.mxu1 }
 0x184   : > { %v1695_v55 = vpop.f32.mrf.mxu0  ;;  %3368 = vmatmul.mubr.bf16.gmra.mxu0 %v926_v9 }
 0x185   : > { %v1872_v17 = vpop.f32.mrf.mxu1  ;;  %3388 = vmatmul.mubr.bf16.gmra.mxu1 %v946_v8  ;;  %3371 = vmatprep.mubr.bf16.mxu0 %v928_v48 }
 0x186   : > { %v4588_v42 = vadd.f32 %v1872_v17, %v1695_v55  ;;  %v1697_v45 = vpop.f32.mrf.mxu0 }
 0x187   : > { %v1874_v26 = vpop.f32.mrf.mxu1 }
 0x188   : > { %v1698_v28 = vpop.f32.mrf.mxu0 }
 0x189   : > { %v1875_v41 = vpop.f32.mrf.mxu1 }
 0x18a   : > { %v4593_v30 = vadd.f32 %v1875_v41, %v1698_v28  ;;  %v1700_v2 = vpop.f32.mrf.mxu0 }
 0x18b   : > { %v1877_v0 = vpop.f32.mrf.mxu1 }
 0x18c   : > { %v1703_v36 = vpop.f32.mrf.mxu0  ;;  %3372 = vmatmul.mubr.bf16.gmra.mxu0 %v930_v14 }
 0x18d   : > { %v1880_v50 = vpop.f32.mrf.mxu1 }
 0x18e   : > { %v4595_v13 = vadd.f32 %v1880_v50, %v1703_v36  ;;  %v1705_v59 = vpop.f32.mrf.mxu0 }
 0x18f   : > { %v1882_v31 = vpop.f32.mrf.mxu1 }
 0x190   : > { %5008 = vst [vmem:[#allocation3_spill] sm:$0xff] %v4595_v13  ;;  %v1706_v18 = vpop.f32.mrf.mxu0 }
 0x191   : > { %v1883_v5 = vpop.f32.mrf.mxu1 }
 0x192   : > { %v4597_v44 = vadd.f32 %v1883_v5, %v1706_v18  ;;  %v1708_v6 = vpop.f32.mrf.mxu0 }
 0x193   : > { %v1885_v25 = vpop.f32.mrf.mxu1 }
 0x194   : > { %5009 = vst [vmem:[#allocation2_spill] sm:$0xff] %v4597_v44  ;;  %v1711_v22 = vpop.f32.mrf.mxu0 }
 0x195   : > { %v1888_v7 = vpop.f32.mrf.mxu1 }
 0x196   : > { %v4599_v51 = vadd.f32 %v1888_v7, %v1711_v22  ;;  %v1713_v53 = vpop.f32.mrf.mxu0 }
 0x197   : > { %v1890_v33 = vpop.f32.mrf.mxu1 }
 0x198   : > { %5010 = vst [vmem:[#allocation4_spill] sm:$0xff] %v4599_v51  ;;  %v1714_v3 = vpop.f32.mrf.mxu0 }
 0x199   : > { %v1891_v57 = vpop.f32.mrf.mxu1 }
 0x19a   : > { %v4601_v29 = vadd.f32 %v1891_v57, %v1714_v3  ;;  %v1716_v9 = vpop.f32.mrf.mxu0 }
 0x19b   : > { %v1893_v12 = vpop.f32.mrf.mxu1 }
 0x19c   : > { %5011 = vst [vmem:[#allocation5_spill] sm:$0xff] %v4601_v29  ;;  %v1929_v8 = vpop.f32.mrf.mxu0 }
 0x19d   : > { %v1930_v48 = vadd.f32 %v1929_v8, %v4333_v37  ;;  %v2106_v62 = vpop.f32.mrf.mxu1 }
 0x19e   : > { %v1931_v55 = vpop.f32.mrf.mxu0 }
 0x19f   : > { %v4604_v17 = vadd.f32 %v2106_v62, %v1930_v48  ;;  %v2108_v45 = vpop.f32.mrf.mxu1 }
 0x1a0   : > { %v1932_v26 = vpop.f32.mrf.mxu0 }
 0x1a1   : > { %v1933_v28 = vadd.f32 %v1932_v26, %v4345_v47  ;;  %v2109_v41 = vpop.f32.mrf.mxu1 }
 0x1a2   : > { %v1934_v14 = vpop.f32.mrf.mxu0 }
 0x1a3   : > { %v4607_v2 = vadd.f32 %v2109_v41, %v1933_v28  ;;  %v2111_v0 = vpop.f32.mrf.mxu1 }
 0x1a4   : > { %v1937_v36 = vpop.f32.mrf.mxu0 }
 0x1a5   : > { %v1938_v50 = vadd.f32 %v1937_v36, %v4357_v46  ;;  %v2114_v59 = vpop.f32.mrf.mxu1 }
 0x1a6   : > { %v1939_v31 = vpop.f32.mrf.mxu0 }
 0x1a7   : > { %v4610_v18 = vadd.f32 %v2114_v59, %v1938_v50  ;;  %v2116_v37 = vpop.f32.mrf.mxu1 }
 0x1a8   : > { %v1940_v5 = vpop.f32.mrf.mxu0 }
 0x1a9   : > { %v1941_v6 = vadd.f32 %v1940_v5, %v4369_v39  ;;  %v2117_v25 = vpop.f32.mrf.mxu1 }
 0x1aa   : > { %v1942_v22 = vpop.f32.mrf.mxu0 }
 0x1ab   : > { %v4613_v7 = vadd.f32 %v2117_v25, %v1941_v6  ;;  %v2119_v47 = vpop.f32.mrf.mxu1 }
 0x1ac   : > { %v1945_v53 = vpop.f32.mrf.mxu0 }
 0x1ad   : > { %v1946_v33 = vadd.f32 %v1945_v53, %v4381_v38  ;;  %v2122_v3 = vpop.f32.mrf.mxu1 }
 0x1ae   : > { %v1947_v57 = vpop.f32.mrf.mxu0 }
 0x1af   : > { %v4616_v9 = vadd.f32 %v2122_v3, %v1946_v33  ;;  %v2124_v46 = vpop.f32.mrf.mxu1 }
 0x1b0   : > { %v1948_v12 = vpop.f32.mrf.mxu0 }
 0x1b1   : > { %v1949_v8 = vadd.f32 %v1948_v12, %v4393_v24  ;;  %v2125_v48 = vpop.f32.mrf.mxu1 }
 0x1b2   : > { %v1950_v62 = vpop.f32.mrf.mxu0 }
 0x1b3   : > { %v4619_v55 = vadd.f32 %v2125_v48, %v1949_v8  ;;  %v2127_v39 = vpop.f32.mrf.mxu1 }
 0x1b4   : > { %v1953_v45 = vpop.f32.mrf.mxu0 }
 0x1b5   : > { %v1954_v26 = vadd.f32 %v1953_v45, %v4405_v60  ;;  %v2130_v28 = vpop.f32.mrf.mxu1 }
 0x1b6   : > { %v1955_v41 = vpop.f32.mrf.mxu0 }
 0x1b7   : > { %v4622_v14 = vadd.f32 %v2130_v28, %v1954_v26  ;;  %v2132_v38 = vpop.f32.mrf.mxu1 }
 0x1b8   : > { %v1956_v0 = vpop.f32.mrf.mxu0 }
 0x1b9   : > { %v1957_v36 = vadd.f32 %v1956_v0, %v4417_v20  ;;  %v2133_v50 = vpop.f32.mrf.mxu1 }
 0x1ba   : > { %v1958_v59 = vpop.f32.mrf.mxu0 }
 0x1bb   : > { %v4625_v31 = vadd.f32 %v2133_v50, %v1957_v36  ;;  %v2135_v24 = vpop.f32.mrf.mxu1 }
 0x1bc   : > { %v1961_v37 = vpop.f32.mrf.mxu0 }
 0x1bd   : > { %v1962_v5 = vadd.f32 %v1961_v37, %v4429_v1  ;;  %v2138_v6 = vpop.f32.mrf.mxu1 }
 0x1be   : > { %v1963_v25 = vpop.f32.mrf.mxu0 }
 0x1bf   : > { %v4628_v22 = vadd.f32 %v2138_v6, %v1962_v5  ;;  %v2140_v60 = vpop.f32.mrf.mxu1 }
 0x1c0   : > { %v1964_v47 = vpop.f32.mrf.mxu0 }
 0x1c1   : > { %5012 = vst [vmem:[#allocation6_spill] sm:$0xff] %v4628_v22  ;;  %v1965_v53 = vadd.f32 %v1964_v47, %v4441_v40  ;;  %v2141_v33 = vpop.f32.mrf.mxu1 }
 0x1c2   : > { %v1966_v3 = vpop.f32.mrf.mxu0 }
 0x1c3   : > { %v4631_v57 = vadd.f32 %v2141_v33, %v1965_v53  ;;  %v2143_v20 = vpop.f32.mrf.mxu1 }
 0x1c4   : > { %v1969_v46 = vpop.f32.mrf.mxu0 }
 0x1c5   : > { %5013 = vst [vmem:[#allocation7_spill] sm:$0xff] %v4631_v57  ;;  %v1970_v12 = vadd.f32 %v1969_v46, %v4453_v15  ;;  %v2146_v8 = vpop.f32.mrf.mxu1 }
 0x1c6   : > { %v1971_v48 = vpop.f32.mrf.mxu0 }
 0x1c7   : > { %v4634_v62 = vadd.f32 %v2146_v8, %v1970_v12  ;;  %v2148_v1 = vpop.f32.mrf.mxu1 }
 0x1c8   : > { %v1972_v39 = vpop.f32.mrf.mxu0 }
 0x1c9   : > { %v1973_v45 = vadd.f32 %v1972_v39, %v4465_v27  ;;  %v2149_v26 = vpop.f32.mrf.mxu1 }
 0x1ca   : > { %v1974_v28 = vpop.f32.mrf.mxu0 }
 0x1cb   : > { %v4637_v41 = vadd.f32 %v2149_v26, %v1973_v45  ;;  %v2151_v40 = vpop.f32.mrf.mxu1 }
 0x1cc   : > { %v1977_v38 = vpop.f32.mrf.mxu0 }
 0x1cd   : > { %5014 = vst [vmem:[#allocation8_spill] sm:$0xff] %v4637_v41  ;;  %v1978_v0 = vadd.f32 %v1977_v38, %v4471_v19  ;;  %v2154_v36 = vpop.f32.mrf.mxu1 }
 0x1ce   : > { %v1979_v50 = vpop.f32.mrf.mxu0 }
 0x1cf   : > { %v4640_v59 = vadd.f32 %v2154_v36, %v1978_v0  ;;  %v2156_v15 = vpop.f32.mrf.mxu1 }
 0x1d0   : > { %v1980_v24 = vpop.f32.mrf.mxu0 }
 0x1d1   : > { %5015 = vst [vmem:[#allocation9_spill] sm:$0xff] %v4640_v59  ;;  %v1981_v37 = vadd.f32 %v1980_v24, %v4480_v54  ;;  %v2157_v5 = vpop.f32.mrf.mxu1 }
 0x1d2   : > { %v1982_v6 = vpop.f32.mrf.mxu0 }
 0x1d3   : > { %v4643_v25 = vadd.f32 %v2157_v5, %v1981_v37  ;;  %v2159_v27 = vpop.f32.mrf.mxu1 }
 0x1d4   : > { %v1985_v60 = vpop.f32.mrf.mxu0  ;;  %v4660_v27 = vpop.permute.xlu0 %2428 }
 0x1d5   : > { %5016 = vst [vmem:[#allocation10_spill] sm:$0xff] %v4643_v25  ;;  %v1986_v47 = vadd.f32 %v1985_v60, %v4487_v32  ;;  %v2162_v53 = vpop.f32.mrf.mxu1 }
 0x1d6   : > { %v1987_v33 = vpop.f32.mrf.mxu0 }
 0x1d7   : > { %v4646_v3 = vadd.f32 %v2162_v53, %v1986_v47  ;;  %v2164_v19 = vpop.f32.mrf.mxu1  ;;  %v4662_v47 = vpop.permute.xlu1 %2438 }
 0x1d8   : > { %v1988_v20 = vpop.f32.mrf.mxu0 }
 0x1d9   : > { %5017 = vst [vmem:[#allocation11_spill] sm:$0xff] %v4646_v3  ;;  %v1989_v46 = vadd.f32 %v1988_v20, %v4495_v11  ;;  %v2165_v12 = vpop.f32.mrf.mxu1 }
 0x1da   : > { %v1990_v8 = vpop.f32.mrf.mxu0 }
 0x1db   : > { %v4649_v48 = vadd.f32 %v2165_v12, %v1989_v46  ;;  %v2167_v54 = vpop.f32.mrf.mxu1  ;;  %v4668_v8 = vpop.permute.xlu0 %2433 }
 0x1dc   : > { %v1993_v1 = vpop.f32.mrf.mxu0 }
 0x1dd   : > { %5018 = vst [vmem:[#allocation12_spill] sm:$0xff] %v4649_v48  ;;  %v1994_v39 = vadd.f32 %v1993_v1, %v4502_v23  ;;  %v2170_v45 = vpop.f32.mrf.mxu1  ;;  %v4670_v1 = vpop.permute.xlu1 %2443 }
 0x1de   : > { %v1995_v26 = vpop.f32.mrf.mxu0 }
 0x1df   : > { %v4652_v28 = vadd.f32 %v2170_v45, %v1994_v39  ;;  %v2172_v32 = vpop.f32.mrf.mxu1 }
 0x1e0   : > { %v1996_v40 = vpop.f32.mrf.mxu0 }
 0x1e1   : > { %5019 = vst [vmem:[#allocation13_spill] sm:$0xff] %v4652_v28  ;;  %v1997_v38 = vadd.f32 %v1996_v40, %v4508_v21  ;;  %v2173_v0 = vpop.f32.mrf.mxu1 }
 0x1e2   : > { %v1998_v36 = vpop.f32.mrf.mxu0 }
 0x1e3   : > { %v4655_v50 = vadd.f32 %v2173_v0, %v1997_v38  ;;  %v2175_v11 = vpop.f32.mrf.mxu1  ;;  %v4677_v36 = vpop.permute.xlu0 %2448 }
 0x1e4   : > { %v2001_v15 = vpop.f32.mrf.mxu0  ;;  %v4681_v11 = vpop.permute.xlu1 %2453 }
 0x1e5   : > { %5020 = vst [vmem:[#allocation14_spill] sm:$0xff] %v4655_v50  ;;  %v2002_v24 = vadd.f32 %v2001_v15, %v4514_v4  ;;  %v2178_v37 = vpop.f32.mrf.mxu1 }
 0x1e6   : > { %v2003_v5 = vpop.f32.mrf.mxu0 }
 0x1e7   : > { %v4658_v6 = vadd.f32 %v2178_v37, %v2002_v24  ;;  %v2180_v23 = vpop.f32.mrf.mxu1 }
 0x1e8   : > { %v2004_v60 = vpop.f32.mrf.mxu0 }
 0x1e9   : > { %5021 = vst [vmem:[#allocation15_spill] sm:$0xff] %v4658_v6  ;;  %v2005_v21 = vadd.f32 %v2004_v60, %v4519_v49  ;;  %v2181_v53 = vpop.f32.mrf.mxu1 }
 0x1ea   : > { %v2006_v33 = vpop.f32.mrf.mxu0 }
 0x1eb   : > { %v4665_v19 = vadd.f32 %v2181_v53, %v2005_v21  ;;  %v2183_v20 = vpop.f32.mrf.mxu1  ;;  %v4691_v21 = vpop.permute.xlu1 %2463 }
 0x1ec   : > { %v2009_v46 = vpop.f32.mrf.mxu0 }
 0x1ed   : > { %5022 = vst [vmem:[#allocation16_spill] sm:$0xff] %v4665_v19  ;;  %v2010_v4 = vadd.f32 %v2009_v46, %v4524_v10  ;;  %v2186_v12 = vpop.f32.mrf.mxu1 }
 0x1ee   : > { %v2011_v54 = vpop.f32.mrf.mxu0 }
 0x1ef   : > { %v4672_v39 = vadd.f32 %v2186_v12, %v2010_v4  ;;  %v2188_v45 = vpop.f32.mrf.mxu1 }
 0x1f0   : > { %v2012_v26 = vpop.f32.mrf.mxu0  ;;  %v4701_v45 = vpop.permute.xlu1 %2473 }
 0x1f1   : > { %v2013_v49 = vadd.f32 %v2012_v26, %v4535_v58  ;;  %v2189_v32 = vpop.f32.mrf.mxu1  ;;  %v4689_v58 = vpop.permute.xlu0 %2458  ;;  %5024 = vst [vmem:[#allocation18_spill] sm:$0xff] %v4701_v45 }
 0x1f2   : > { %v2014_v40 = vpop.f32.mrf.mxu0 }
 0x1f3   : > { %v4675_v38 = vadd.f32 %v2189_v32, %v2013_v49  ;;  %v2191_v0 = vpop.f32.mrf.mxu1 }
 0x1f4   : > { %v4679_v10 = vpop.f32.mrf.mxu0 }
 0x1f5   : > { %v4683_v15 = vpop.f32.mrf.mxu1  ;;  %v4697_v4 = vpop.permute.xlu0 %2468 }
 0x1f6   : > { %v2019_v24 = vpop.f32.mrf.mxu0  ;;  %5023 = vst [vmem:[#allocation17_spill] sm:$0xff] %v4697_v4 }
 0x1f7   : > { %v2196_v37 = vpop.f32.mrf.mxu1 }
 0x1f8   : > { %v4685_v5 = vpop.f32.mrf.mxu0  ;;  %v4709_v37 = vpop.permute.xlu1 %2483 }
 0x1f9   : > { %v4687_v23 = vpop.f32.mrf.mxu1  ;;  %v4705_v0 = vpop.permute.xlu0 %2478  ;;  %5026 = vst [vmem:[#allocation20_spill] sm:$0xff] %v4709_v37 }
 0x1fa   : > { %v2022_v60 = vpop.f32.mrf.mxu0  ;;  %5025 = vst [vmem:[#allocation19_spill] sm:$0xff] %v4705_v0 }
 0x1fb   : > { %v2199_v53 = vpop.f32.mrf.mxu1 }
 0x1fc   : > { %v4693_v33 = vpop.f32.mrf.mxu0  ;;  %v4715_v28 = vpop.permute.xlu1 %2493 }
 0x1fd   : > { %v4695_v20 = vpop.f32.mrf.mxu1  ;;  %v4713_v19 = vpop.permute.xlu0 %2488  ;;  %5028 = vst [vmem:[#allocation22_spill] sm:$0xff] %v4715_v28 }
 0x1fe   : > { %v2027_v46 = vpop.f32.mrf.mxu0  ;;  %5027 = vst [vmem:[#allocation21_spill] sm:$0xff] %v4713_v19 }
 0x1ff   : > { %v2204_v12 = vpop.f32.mrf.mxu1 }
 0x200   : > { %v4699_v54 = vpop.f32.mrf.mxu0 }
 0x201   : > { %v4703_v26 = vpop.f32.mrf.mxu1  ;;  %v4719_v59 = vpop.permute.xlu0 %2498 }
 0x202   : > { %v2030_v49 = vpop.f32.mrf.mxu0  ;;  %5029 = vst [vmem:[#allocation23_spill] sm:$0xff] %v4719_v59 }
 0x203   : > { %v2207_v32 = vpop.f32.mrf.mxu1 }
 0x204   : > { %v2033_v40 = vpop.f32.mrf.mxu0 }
 0x205   : > { %v4707_v24 = vpop.f32.mrf.mxu1  ;;  %v4729_v28 = vpop.permute.xlu0 %2508 }
 0x206   : > { %v2035_v60 = vpop.f32.mrf.mxu0  ;;  %5031 = vst [vmem:[#allocation25_spill] sm:$0xff] %v4729_v28 }
 0x207   : > { %v2212_v53 = vpop.f32.mrf.mxu1  ;;  %v4723_v60 = vpop.permute.xlu1 %2503 }
 0x208   : > { %v2036_v46 = vpop.f32.mrf.mxu0  ;;  %5030 = vst [vmem:[#allocation24_spill] sm:$0xff] %v4723_v60 }
 0x209   : > { %v4711_v50 = vpop.f32.mrf.mxu1 }
 0x20a   : > { %v2038_v12 = vpop.f32.mrf.mxu0 }
 0x20b   : > { %v2215_v6 = vpop.f32.mrf.mxu1  ;;  %v4731_v37 = vpop.permute.xlu1 %2513 }
 0x20c   : > { %v2041_v49 = vpop.f32.mrf.mxu0  ;;  %5032 = vst [vmem:[#allocation26_spill] sm:$0xff] %v4731_v37 }
 0x20d   : > { %v4717_v32 = vpop.f32.mrf.mxu1 }
 0x20e   : > { %v2043_v25 = vpop.f32.mrf.mxu0 }
 0x20f   : > { %v2220_v48 = vpop.f32.mrf.mxu1  ;;  %v4743_v60 = vpop.permute.xlu1 %2523 }
 0x210   : > { %v2044_v3 = vpop.f32.mrf.mxu0  ;;  %5036 = vst [vmem:[#allocation30_spill] sm:$0xff] %v4743_v60 }
 0x211   : > { %v4721_v45 = vpop.f32.mrf.mxu1 }
 0x212   : > { %v2046_v53 = vpop.f32.mrf.mxu0 }
 0x213   : > { %v2223_v29 = vpop.f32.mrf.mxu1  ;;  %v4739_v53 = vpop.permute.xlu0 %2518 }
 0x214   : > { %v4725_v12 = vpop.f32.mrf.mxu0  ;;  %5034 = vst [vmem:[#allocation28_spill] sm:$0xff] %v4739_v53  ;;  %v2534_v41 = vpop.permute.xlu1 %2533 }
 0x215   : > { %v4727_v19 = vpop.f32.mrf.mxu1 }
 0x216   : > { %v2051_v6 = vpop.f32.mrf.mxu0 }
 0x217   : > { %v2228_v57 = vpop.f32.mrf.mxu1  ;;  %v2529_v44 = vpop.permute.xlu0 %2528 }
 0x218   : > { %v4733_v25 = vpop.f32.mrf.mxu0 }
 0x219   : > { %v4735_v48 = vpop.f32.mrf.mxu1 }
 0x21a   : > { %v2054_v59 = vpop.f32.mrf.mxu0 }
 0x21b   : > { %v2231_v0 = vpop.f32.mrf.mxu1 }
 0x21c   : > { %v4737_v51 = vpop.f32.mrf.mxu0 }
 0x21d   : > { %5033 = vst [vmem:[#allocation27_spill] sm:$0xff] %v4737_v51  ;;  %v4741_v29 = vpop.f32.mrf.mxu1 }
 0x21e   : > { %5035 = vst [vmem:[#allocation29_spill] sm:$0xff] %v4741_v29  ;;  %v2059_v6 = vpop.f32.mrf.mxu0  ;;  %v2539_v29 = vpop.permute.xlu0 %2538 }
 0x21f   : > { %v2236_v4 = vpop.f32.mrf.mxu1  ;;  %v2544_v6 = vpop.permute.xlu1 %2543 }
 0x220   : > { %v4745_v28 = vpop.f32.mrf.mxu0  ;;  %v2018_v4 = vadd.f32 %v4679_v10, %v4543_v16  ;;  %v2037_v10 = vadd.f32 %v2036_v46, %v4573_v61  ;;  %v2045_v61 = vadd.f32 %v2044_v3, %v4584_v56 }
 0x221   : > { %5037 = vst [vmem:[#allocation31_spill] sm:$0xff] %v4745_v28  ;;  %v4747_v57 = vpop.f32.mrf.mxu1 }
 0x222   : > { %5038 = vst [vmem:[#allocation32_spill] sm:$0xff] %v4747_v57  ;;  %v2062_v37 = vpop.f32.mrf.mxu0 }
 0x223   : > { %v2239_v13 = vpop.f32.mrf.mxu1 }
 0x224   : > { %v4749_v59 = vpop.f32.mrf.mxu0  ;;  %v2021_v13 = vadd.f32 %v4685_v5, %v4549_v43 }
 0x225   : > { %v4751_v0 = vpop.f32.mrf.mxu1 }
 0x226   : > { %5039 = vst [vmem:[#allocation33_spill] sm:$0xff] %v4751_v0  ;;  %v2067_v51 = vpop.f32.mrf.mxu0  ;;  %v2195_v0 = vadd.f32 %v4683_v15, %v2018_v4  ;;  %v4774_v15 = vpop.permute.xlu1 %2553 }
 0x227   : > { %v2244_v53 = vpop.f32.mrf.mxu1  ;;  %v2026_v51 = vadd.f32 %v4693_v33, %v4555_v63  ;;  %v2198_v63 = vadd.f32 %v4687_v23, %v2021_v13  ;;  %v2042_v33 = vadd.f32 %v2041_v49, %v4579_v35  ;;  %v2214_v49 = vadd.f32 %v4711_v50, %v2037_v10 }
 0x228   : > { %v4753_v22 = vpop.f32.mrf.mxu0  ;;  %v2050_v10 = vadd.f32 %v4725_v12, %v4588_v42 }
 0x229   : > { %5040 = vst [vmem:[#allocation34_spill] sm:$0xff] %v4753_v22  ;;  %v4755_v60 = vpop.f32.mrf.mxu1  ;;  %v2034_v22 = vadd.f32 %v2033_v40, %v4567_v34  ;;  %v4778_v34 = vadd.f32 %v4695_v20, %v2026_v51 }
 0x22a   : > { %5041 = vst [vmem:[#allocation35_spill] sm:$0xff] %v4755_v60  ;;  %v2070_v57 = vpop.f32.mrf.mxu0  ;;  %v2029_v60 = vadd.f32 %v4699_v54, %v4561_v52 }
 0x22b   : > { %v2247_v37 = vpop.f32.mrf.mxu1  ;;  %v4768_v57 = vpop.permute.xlu0 %2548  ;;  %v2211_v23 = vadd.f32 %v4707_v24, %v2034_v22 }
 0x22c   : > { %v3357_v28 = vpop.f32.mrf.mxu0 }
 0x22d   : > { %v3377_v53 = vpop.f32.mrf.mxu1  ;;  %v2292_v43 = vadd.f32 %v3357_v28, %v4610_v18  ;;  %v2206_v28 = vadd.f32 %v4703_v26, %v2029_v60  ;;  %v2564_v60 = vpop.permute.xlu1 %2563 }
 0x22e   : > { %v2283_v16 = vpop.f32.mrf.mxu0  ;;  %v2372_v4 = vadd.f32 %v3377_v53, %v2195_v0 }
 0x22f   : > { %v2284_v5 = vadd.f32 %v2283_v16, %v4604_v17  ;;  %v2363_v37 = vpop.f32.mrf.mxu1  ;;  %v2608_v20 = vmul.f32 %v4662_v47, %v2292_v43  ;;  %v4804_v47 = vadd.f32 %v4721_v45, %v2045_v61  ;;  %v2053_v43 = vadd.f32 %v4733_v25, %v4593_v30 }
 0x230   : > { %v3358_v52 = vpop.f32.mrf.mxu0  ;;  %v2364_v54 = vadd.f32 %v2363_v37, %v4672_v39  ;;  %v4793_v39 = vmul.f32 %v2539_v29, %v2372_v4 }
 0x231   : > { %v2295_v18 = vadd.f32 %v3358_v52, %v4613_v7  ;;  %v3378_v17 = vpop.f32.mrf.mxu1  ;;  %v2606_v35 = vmul.f32 %v4660_v27, %v2284_v5  ;;  %v4791_v7 = vadd.f32 %v4717_v32, %v2042_v33  ;;  %v2685_v37 = vmul.f32 %v2608_v20, %v2608_v20 }
 0x232   : > { %v2375_v40 = vadd.f32 %v3378_v17, %v2198_v63  ;;  %v2286_v46 = vpop.f32.mrf.mxu0 }
 0x233   : > { %v2609_v0 = vmul.f32 %v4670_v1, %v2295_v18  ;;  %v2287_v56 = vadd.f32 %v2286_v46, %v4607_v2  ;;  %v2366_v3 = vpop.f32.mrf.mxu1  ;;  %v2559_v2 = vpop.permute.xlu0 %2558  ;;  %v4806_v1 = vmul.f32 %v2529_v44, %v2364_v54  ;;  %v2683_v29 = vmul.f32 %v2606_v35, %v2606_v35 }
 0x234   : > { %v4800_v22 = vmul.f32 %v2544_v6, %v2375_v40  ;;  %v2367_v50 = vadd.f32 %v2366_v3, %v4675_v38  ;;  %v3361_v27 = vpop.f32.mrf.mxu0  ;;  %v4833_v40 = vpop.permute.xlu1 %2573 }
 0x235   : > { %v3214_v26 = vpack.c.bf16 %v2609_v0, %v2608_v20  ;;  %v2607_v24 = vmul.f32 %v4668_v8, %v2287_v56  ;;  %v3381_v32 = vpop.f32.mrf.mxu1  ;;  %v2308_v38 = vadd.f32 %v3361_v27, %v4622_v14  ;;  %v2686_v63 = vmul.f32 %v2609_v0, %v2609_v0 }
 0x236   : > { %v3264_v6 = vpack.c.bf16 %v4800_v22, %v4793_v39  ;;  %v4811_v13 = vmul.f32 %v2534_v41, %v2367_v50  ;;  %v2299_v51 = vpop.f32.mrf.mxu0  ;;  %v2388_v16 = vadd.f32 %v3381_v32, %v2211_v23  ;;  %v2230_v27 = vadd.f32 %v4735_v48, %v2053_v43  ;;  %v5042_v48 = vld [vmem:[#allocation6_spill] sm:$0xff]  ;;  %v5045_v43 = vld [vmem:[#allocation27_spill] sm:$0xff] }
 0x237   : > { %3296 = vst [vmem:[%s4798_s5 + $0x8] sm:$0xff] %v3214_v26   ;;  %v2642_v45 = vadd.f32 %v2607_v24, %v2606_v35  ;;  %v2684_v44 = vmul.f32 %v2607_v24, %v2607_v24  ;;  %v3209_v53 = vpack.c.bf16 %v2607_v24, %v2606_v35  ;;  %v2379_v8 = vpop.f32.mrf.mxu1  ;;  %v2300_v14 = vadd.f32 %v2299_v51, %v4616_v9  ;;  %v4828_v54 = vpop.permute.xlu0 %2568 }
 0x238   : > { %3306 = vst [vmem:[%s4798_s5 + $0x58] sm:$0xff] %v3264_v6   ;;  %v3259_v41 = vpack.c.bf16 %v4811_v13, %v4806_v1  ;;  %v3362_v5 = vpop.f32.mrf.mxu0  ;;  %v2612_v61 = vmul.f32 %v4689_v58, %v2308_v38  ;;  %v4830_v9 = vmul.f32 %v2559_v2, %v2388_v16  ;;  %v2380_v46 = vadd.f32 %v2379_v8, %v4778_v34  ;;  %v5043_v16 = vld [vmem:[#allocation8_spill] sm:$0xff] }
 0x239   : > { %v2643_v33 = vadd.f32 %v2642_v45, %v2608_v20  ;;  %v2719_v4 = vadd.f32 %v2684_v44, %v2683_v29  ;;  %3210 = vst [vmem:[%s4798_s5] sm:$0xff] %v3209_v53   ;;  %v3382_v52 = vpop.f32.mrf.mxu1  ;;  %v2610_v42 = vmul.f32 %v4677_v36, %v2300_v14  ;;  %v2311_v30 = vadd.f32 %v3362_v5, %v4625_v31  ;;  %v5046_v14 = vld [vmem:[#allocation2_spill] sm:$0xff] }
 0x23a   : > { %3305 = vst [vmem:[%s4798_s5 + $0x50] sm:$0xff] %v3259_v41   ;;  %v2391_v12 = vadd.f32 %v3382_v52, %v2214_v49  ;;  %v2302_v25 = vpop.f32.mrf.mxu0  ;;  %v4845_v29 = vmul.f32 %v4768_v57, %v2380_v46  ;;  %v2689_v45 = vmul.f32 %v2612_v61, %v2612_v61 }
 0x23b   : > { %v2720_v18 = vadd.f32 %v2719_v4, %v2685_v37  ;;  %v2644_v17 = vadd.f32 %v2643_v33, %v2609_v0  ;;  %v2303_v23 = vadd.f32 %v2302_v25, %v4619_v55  ;;  %v2382_v35 = vpop.f32.mrf.mxu1  ;;  %v2613_v58 = vmul.f32 %v4691_v21, %v2311_v30  ;;  %v2579_v51 = vpop.permute.xlu0 %2578  ;;  %v5049_v25 = vld [vmem:[#allocation4_spill] sm:$0xff] }
 0x23c   : > { %v4837_v36 = vmul.f32 %v2564_v60, %v2391_v12  ;;  %v2383_v31 = vadd.f32 %v2382_v35, %v2206_v28  ;;  %v3365_v49 = vpop.f32.mrf.mxu0  ;;  %v2687_v56 = vmul.f32 %v2610_v42, %v2610_v42  ;;  %v2227_v55 = vadd.f32 %v4727_v19, %v2050_v10  ;;  %v5044_v10 = vld [vmem:[#allocation3_spill] sm:$0xff]  ;;  %v2584_v37 = vpop.permute.xlu1 %2583  ;;  %v5051_v35 = vld [vmem:[#allocation20_spill] sm:$0xff] }
 0x23d   : > { %v2645_v20 = vadd.f32 %v2644_v17, %v2610_v42  ;;  %v2721_v3 = vadd.f32 %v2720_v18, %v2686_v63  ;;  %v2611_v0 = vmul.f32 %v4681_v11, %v2303_v23  ;;  %v3385_v50 = vpop.f32.mrf.mxu1  ;;  %v3224_v2 = vpack.c.bf16 %v2613_v58, %v2612_v61  ;;  %v5050_v17 = vld [vmem:[#allocation19_spill] sm:$0xff] }
 0x23e   : > { %v3274_v21 = vpack.c.bf16 %v4837_v36, %v4830_v9  ;;  %v2315_v34 = vpop.f32.mrf.mxu0  ;;  %v4850_v19 = vmul.f32 %v4774_v15, %v2383_v31  ;;  %v2324_v11 = vadd.f32 %v3365_v49, %v4634_v62  ;;  %v2058_v41 = vadd.f32 %v5045_v43, %v5044_v10  ;;  %v5047_v15 = vld [vmem:[#allocation31_spill] sm:$0xff]  ;;  %v5059_v10 = vld [vmem:[#allocation32_spill] sm:$0xff] }
 0x23f   : > { %v2722_v26 = vadd.f32 %v2721_v3, %v2687_v56  ;;  %v2646_v28 = vadd.f32 %v2645_v20, %v2611_v0  ;;  %v2688_v24 = vmul.f32 %v2611_v0, %v2611_v0  ;;  %v3219_v32 = vpack.c.bf16 %v2611_v0, %v2610_v42  ;;  %v2395_v60 = vpop.f32.mrf.mxu1  ;;  %3298 = vst [vmem:[%s4798_s5 + $0x18] sm:$0xff] %v3224_v2  }
 0x240   : > { %3308 = vst [vmem:[%s4798_s5 + $0x68] sm:$0xff] %v3274_v21   ;;  %v2316_v6 = vadd.f32 %v2315_v34, %v5042_v48  ;;  %v3366_v38 = vpop.f32.mrf.mxu0  ;;  %v2061_v5 = vadd.f32 %v5047_v15, %v5046_v14  ;;  %v3269_v62 = vpack.c.bf16 %v4850_v19, %v4845_v29  ;;  %v2404_v63 = vadd.f32 %v3385_v50, %v2227_v55  ;;  %v5060_v14 = vld [vmem:[#allocation11_spill] sm:$0xff] }
 0x241   : > { %v2647_v44 = vadd.f32 %v2646_v28, %v2612_v61  ;;  %v2723_v53 = vadd.f32 %v2722_v26, %v2688_v24  ;;  %3297 = vst [vmem:[%s4798_s5 + $0x10] sm:$0xff] %v3219_v32   ;;  %v2327_v8 = vadd.f32 %v3366_v38, %v5043_v16  ;;  %v3386_v57 = vpop.f32.mrf.mxu1  ;;  %v2690_v4 = vmul.f32 %v2613_v58, %v2613_v58  ;;  %v5048_v61 = vld [vmem:[#allocation17_spill] sm:$0xff] }
 0x242   : > { %v2318_v33 = vpop.f32.mrf.mxu0  ;;  %v2614_v42 = vmul.f32 %v5048_v61, %v2316_v6  ;;  %v2066_v18 = vadd.f32 %v4749_v59, %v5049_v25  ;;  %3307 = vst [vmem:[%s4798_s5 + $0x60] sm:$0xff] %v3269_v62   ;;  %v2616_v23 = vmul.f32 %v5050_v17, %v2324_v11  ;;  %v2407_v31 = vadd.f32 %v3386_v57, %v2230_v27  ;;  %v5052_v59 = vld [vmem:[#allocation7_spill] sm:$0xff]  ;;  %v5053_v26 = vld [vmem:[#allocation29_spill] sm:$0xff]  ;;  %v5055_v27 = vld [vmem:[#allocation34_spill] sm:$0xff]  ;;  %v2589_v11 = vpop.permute.xlu0 %2588 }
 0x243   : > { %v2724_v52 = vadd.f32 %v2723_v53, %v2689_v45  ;;  %v2648_v30 = vadd.f32 %v2647_v44, %v2613_v58  ;;  %v2398_v12 = vpop.f32.mrf.mxu1  ;;  %v2617_v46 = vmul.f32 %v5051_v35, %v2327_v8  ;;  %v2396_v0 = vadd.f32 %v2395_v60, %v4791_v7  ;;  %v5054_v24 = vld [vmem:[#allocation5_spill] sm:$0xff]  ;;  %v5057_v44 = vld [vmem:[#allocation18_spill] sm:$0xff]  ;;  %v5061_v61 = vld [vmem:[#allocation35_spill] sm:$0xff] }
 0x244   : > { %v3369_v49 = vpop.f32.mrf.mxu0  ;;  %v2691_v56 = vmul.f32 %v2614_v42, %v2614_v42  ;;  %v4869_v55 = vmul.f32 %v2579_v51, %v2404_v63  ;;  %v4871_v2 = vmul.f32 %v2584_v37, %v2407_v31  ;;  %v2319_v21 = vadd.f32 %v2318_v33, %v5052_v59  ;;  %v5056_v60 = vld [vmem:[#allocation33_spill] sm:$0xff]  ;;  %v2594_v51 = vpop.permute.xlu1 %2593 }
 0x245   : > { %v2649_v20 = vadd.f32 %v2648_v30, %v2614_v42  ;;  %v2725_v3 = vadd.f32 %v2724_v52, %v2690_v4  ;;  %v3389_v50 = vpop.f32.mrf.mxu1  ;;  %v3234_v58 = vpack.c.bf16 %v2617_v46, %v2616_v23  ;;  %v2235_v28 = vadd.f32 %v5053_v26, %v2058_v41  ;;  %v5058_v16 = vld [vmem:[#allocation9_spill] sm:$0xff] }
 0x246   : > { %v2331_v34 = vpop.f32.mrf.mxu0  ;;  %v2069_v32 = vadd.f32 %v5055_v27, %v5054_v24  ;;  %v2399_v6 = vadd.f32 %v2398_v12, %v4804_v47  ;;  %v2243_v38 = vadd.f32 %v5056_v60, %v2066_v18  ;;  %v3284_v45 = vpack.c.bf16 %v4871_v2, %v4869_v55  ;;  %v5062_v17 = vld [vmem:[#allocation21_spill] sm:$0xff] }
 0x247   : > { %v2726_v48 = vadd.f32 %v2725_v3, %v2691_v56  ;;  %v2411_v7 = vpop.f32.mrf.mxu1  ;;  %3300 = vst [vmem:[%s4798_s5 + $0x28] sm:$0xff] %v3234_v58   ;;  %v2615_v53 = vmul.f32 %v5057_v44, %v2319_v21  ;;  %v2332_v8 = vadd.f32 %v2331_v34, %v5058_v16  ;;  %v2238_v43 = vadd.f32 %v5059_v10, %v2061_v5  ;;  %v5065_v34 = vld [vmem:[#allocation23_spill] sm:$0xff] }
 0x248   : > { %v3370_v57 = vpop.f32.mrf.mxu0  ;;  %v4886_v41 = vmul.f32 %v4828_v54, %v2396_v0  ;;  %v4889_v47 = vmul.f32 %v4833_v40, %v2399_v6  ;;  %v2340_v15 = vadd.f32 %v3369_v49, %v5060_v14  ;;  %3310 = vst [vmem:[%s4798_s5 + $0x78] sm:$0xff] %v3284_v45   ;;  %v2420_v4 = vadd.f32 %v3389_v50, %v2243_v38  ;;  %v5064_v0 = vld [vmem:[#allocation10_spill] sm:$0xff]  ;;  %v2604_v59 = vpop.permute.xlu1 %2603 }
 0x249   : > { %v3390_v37 = vpop.f32.mrf.mxu1  ;;  %v2650_v62 = vadd.f32 %v2649_v20, %v2615_v53  ;;  %v2692_v63 = vmul.f32 %v2615_v53, %v2615_v53  ;;  %v3229_v33 = vpack.c.bf16 %v2615_v53, %v2614_v42  ;;  %v2246_v30 = vadd.f32 %v5061_v61, %v2069_v32  ;;  %v2599_v20 = vpop.permute.xlu0 %2598  ;;  %v5063_v42 = vld [vmem:[#allocation12_spill] sm:$0xff]  ;;  %v5067_v6 = vld [vmem:[#allocation22_spill] sm:$0xff]  ;;  %v5068_v53 = vld [vmem:[#allocation13_spill] sm:$0xff] }
 0x24a   : > { %v2334_v52 = vpop.f32.mrf.mxu0  ;;  %v2693_v5 = vmul.f32 %v2616_v23, %v2616_v23  ;;  %v2694_v12 = vmul.f32 %v2617_v46, %v2617_v46  ;;  %v3279_v54 = vpack.c.bf16 %v4889_v47, %v4886_v41  ;;  %v2618_v35 = vmul.f32 %v5062_v17, %v2332_v8  ;;  %v5066_v32 = vld [vmem:[#allocation24_spill] sm:$0xff] }
 0x24b   : > { %v2414_v40 = vpop.f32.mrf.mxu1  ;;  %v2651_v25 = vadd.f32 %v2650_v62, %v2616_v23  ;;  %v2727_v18 = vadd.f32 %v2726_v48, %v2692_v63  ;;  %3299 = vst [vmem:[%s4798_s5 + $0x20] sm:$0xff] %v3229_v33   ;;  %v2412_v31 = vadd.f32 %v2411_v7, %v2235_v28  ;;  %v2343_v56 = vadd.f32 %v3370_v57, %v5063_v42  ;;  %v5075_v42 = vld [vmem:[#allocation26_spill] sm:$0xff] }
 0x24c   : > { %v3373_v49 = vpop.f32.mrf.mxu0  ;;  %3309 = vst [vmem:[%s4798_s5 + $0x70] sm:$0xff] %v3279_v54   ;;  %v2423_v3 = vadd.f32 %v3390_v37, %v2246_v30  ;;  %v2335_v50 = vadd.f32 %v2334_v52, %v5064_v0  ;;  %v2415_v58 = vadd.f32 %v2414_v40, %v2238_v43  ;;  %v2620_v26 = vmul.f32 %v5065_v34, %v2340_v15  ;;  %v5069_v43 = vld [vmem:[#allocation15_spill] sm:$0xff]  ;;  %v5072_v54 = vld [vmem:[#allocation14_spill] sm:$0xff] }
 0x24d   : > { %v2728_v21 = vadd.f32 %v2727_v18, %v2693_v5  ;;  %v4902_v24 = vmul.f32 %v2599_v20, %v2420_v4  ;;  %v2652_v23 = vadd.f32 %v2651_v25, %v2617_v46  ;;  %v2621_v48 = vmul.f32 %v5066_v32, %v2343_v56  ;;  %v5070_v4 = vld [vmem:[#allocation25_spill] sm:$0xff]  ;;  %v5071_v5 = vld [vmem:[#allocation16_spill] sm:$0xff] }
 0x24e   : > { %v2347_v27 = vpop.f32.mrf.mxu0  ;;  %v4905_v28 = vmul.f32 %v2604_v59, %v2423_v3  ;;  %v2619_v7 = vmul.f32 %v5067_v6, %v2335_v50  ;;  %v4908_v60 = vmul.f32 %v2594_v51, %v2415_v58  ;;  %v2695_v45 = vmul.f32 %v2618_v35, %v2618_v35  ;;  %v5073_v18 = vld [vmem:[#allocation28_spill] sm:$0xff] }
 0x24f   : > { %v2653_v38 = vadd.f32 %v2652_v23, %v2618_v35  ;;  %v2729_v44 = vadd.f32 %v2728_v21, %v2694_v12  ;;  %v2348_v16 = vadd.f32 %v2347_v27, %v5068_v53  ;;  %v4911_v57 = vmul.f32 %v2589_v11, %v2412_v31 }
 0x250   : > { %v3374_v8 = vpop.f32.mrf.mxu0  ;;  %v3244_v46 = vpack.c.bf16 %v2621_v48, %v2620_v26  ;;  %v3294_v10 = vpack.c.bf16 %v4905_v28, %v4902_v24  ;;  %v2356_v14 = vadd.f32 %v3373_v49, %v5069_v43  ;;  %v2696_v37 = vmul.f32 %v2619_v7, %v2619_v7  ;;  %v5074_v49 = vld [vmem:[#allocation30_spill] sm:$0xff] }
 0x251   : > { %v2730_v15 = vadd.f32 %v2729_v44, %v2695_v45  ;;  %v2654_v51 = vadd.f32 %v2653_v38, %v2619_v7  ;;  %v3239_v62 = vpack.c.bf16 %v2619_v7, %v2618_v35  ;;  %v2697_v33 = vmul.f32 %v2620_v26, %v2620_v26 }
 0x252   : > { %v2350_v63 = vpop.f32.mrf.mxu0  ;;  %3302 = vst [vmem:[%s4798_s5 + $0x38] sm:$0xff] %v3244_v46   ;;  %3312 = vst [vmem:[%s4798_s5 + $0x88] sm:$0xff] %v3294_v10   ;;  %v3289_v11 = vpack.c.bf16 %v4908_v60, %v4911_v57  ;;  %v2622_v52 = vmul.f32 %v5070_v4, %v2348_v16  ;;  %v2359_v12 = vadd.f32 %v3374_v8, %v5071_v5 }
 0x253   : > { %v2655_v61 = vadd.f32 %v2654_v51, %v2620_v26  ;;  %v2731_v30 = vadd.f32 %v2730_v15, %v2696_v37  ;;  %3301 = vst [vmem:[%s4798_s5 + $0x30] sm:$0xff] %v3239_v62   ;;  %v2351_v40 = vadd.f32 %v2350_v63, %v5072_v54  ;;  %v2698_v25 = vmul.f32 %v2621_v48, %v2621_v48 }
 0x254   : > { %3311 = vst [vmem:[%s4798_s5 + $0x80] sm:$0xff] %v3289_v11   ;;  %v2624_v17 = vmul.f32 %v5073_v18, %v2356_v14  ;;  %v2625_v20 = vmul.f32 %v5074_v49, %v2359_v12  ;;  %v2699_v0 = vmul.f32 %v2622_v52, %v2622_v52  ;;  %v2703_v38 = vmul.f32 %v4806_v1, %v4806_v1 }
 0x255   : > { %v2732_v35 = vadd.f32 %v2731_v30, %v2697_v33  ;;  %v2656_v31 = vadd.f32 %v2655_v61, %v2621_v48  ;;  %v2623_v56 = vmul.f32 %v5075_v42, %v2351_v40  ;;  %v2704_v53 = vmul.f32 %v4811_v13, %v4811_v13 }
 0x256   : > { %v3254_v58 = vpack.c.bf16 %v2625_v20, %v2624_v17  ;;  %v2701_v23 = vmul.f32 %v2624_v17, %v2624_v17  ;;  %v2702_v6 = vmul.f32 %v2625_v20, %v2625_v20  ;;  %v2705_v46 = vmul.f32 %v4793_v39, %v4793_v39 }
 0x257   : > { %v2657_v3 = vadd.f32 %v2656_v31, %v2622_v52  ;;  %v2733_v50 = vadd.f32 %v2732_v35, %v2698_v25  ;;  %v2700_v59 = vmul.f32 %v2623_v56, %v2623_v56  ;;  %v3249_v21 = vpack.c.bf16 %v2623_v56, %v2622_v52 }
 0x258   : > { %3304 = vst [vmem:[%s4798_s5 + $0x48] sm:$0xff] %v3254_v58   ;;  %v2706_v14 = vmul.f32 %v4800_v22, %v4800_v22 }
 0x259   : > { %v2734_v34 = vadd.f32 %v2733_v50, %v2699_v0  ;;  %v2658_v26 = vadd.f32 %v2657_v3, %v2623_v56  ;;  %3303 = vst [vmem:[%s4798_s5 + $0x40] sm:$0xff] %v3249_v21   ;;  %v2718_v56 = vmul.f32 %v4905_v28, %v4905_v28 }
 0x25b   : > { %v2659_v27 = vadd.f32 %v2658_v26, %v2624_v17  ;;  %v2735_v32 = vadd.f32 %v2734_v34, %v2700_v59 }
 0x25d   : > { %v2660_v7 = vadd.f32 %v2659_v27, %v2625_v20  ;;  %v2736_v48 = vadd.f32 %v2735_v32, %v2701_v23 }
 0x25f   : > { %v2661_v45 = vadd.f32 %v2660_v7, %v4806_v1  ;;  %v2737_v44 = vadd.f32 %v2736_v48, %v2702_v6  ;;  %v2707_v1 = vmul.f32 %v4845_v29, %v4845_v29 }
 0x261   : > { %v2662_v16 = vadd.f32 %v2661_v45, %v4811_v13  ;;  %v2738_v8 = vadd.f32 %v2737_v44, %v2703_v38  ;;  %v2708_v13 = vmul.f32 %v4850_v19, %v4850_v19 }
 0x263   : > { %v2663_v10 = vadd.f32 %v2662_v16, %v4793_v39  ;;  %v2739_v43 = vadd.f32 %v2738_v8, %v2704_v53  ;;  %v2709_v39 = vmul.f32 %v4830_v9, %v4830_v9 }
 0x265   : > { %v2664_v15 = vadd.f32 %v2663_v10, %v4800_v22  ;;  %v2740_v51 = vadd.f32 %v2739_v43, %v2705_v46  ;;  %v2710_v22 = vmul.f32 %v4837_v36, %v4837_v36 }
 0x267   : > { %v2665_v37 = vadd.f32 %v2664_v15, %v4845_v29  ;;  %v2741_v62 = vadd.f32 %v2740_v51, %v2706_v14  ;;  %v2711_v29 = vmul.f32 %v4886_v41, %v4886_v41 }
 0x269   : > { %v2666_v63 = vadd.f32 %v2665_v37, %v4850_v19  ;;  %v2742_v33 = vadd.f32 %v2741_v62, %v2707_v1  ;;  %v2712_v19 = vmul.f32 %v4889_v47, %v4889_v47 }
 0x26b   : > { %v2667_v11 = vadd.f32 %v2666_v63, %v4830_v9  ;;  %v2743_v4 = vadd.f32 %v2742_v33, %v2708_v13  ;;  %v2713_v9 = vmul.f32 %v4869_v55, %v4869_v55 }
 0x26d   : > { %v2668_v52 = vadd.f32 %v2667_v11, %v4837_v36  ;;  %v2744_v61 = vadd.f32 %v2743_v4, %v2709_v39  ;;  %v2714_v36 = vmul.f32 %v4871_v2, %v4871_v2 }
 0x26f   : > { %v2669_v30 = vadd.f32 %v2668_v52, %v4886_v41  ;;  %v2745_v5 = vadd.f32 %v2744_v61, %v2710_v22  ;;  %v2715_v41 = vmul.f32 %v4911_v57, %v4911_v57 }
 0x271   : > { %v2670_v12 = vadd.f32 %v2669_v30, %v4889_v47  ;;  %v2746_v54 = vadd.f32 %v2745_v5, %v2711_v29  ;;  %v2716_v47 = vmul.f32 %v4908_v60, %v4908_v60 }
 0x273   : > { %v2671_v40 = vadd.f32 %v2670_v12, %v4869_v55  ;;  %v2747_v25 = vadd.f32 %v2746_v54, %v2712_v19  ;;  %v2717_v55 = vmul.f32 %v4902_v24, %v4902_v24 }
 0x275   : > { %v2672_v18 = vadd.f32 %v2671_v40, %v4871_v2  ;;  %v2748_v17 = vadd.f32 %v2747_v25, %v2713_v9 }
 0x277   : > { %v2673_v35 = vadd.f32 %v2672_v18, %v4911_v57  ;;  %v2749_v31 = vadd.f32 %v2748_v17, %v2714_v36 }
 0x279   : > { %v2674_v49 = vadd.f32 %v2673_v35, %v4908_v60  ;;  %v2750_v20 = vadd.f32 %v2749_v31, %v2715_v41 }
 0x27b   : > { %v2675_v42 = vadd.f32 %v2674_v49, %v4902_v24  ;;  %v2751_v2 = vadd.f32 %v2750_v20, %v2716_v47 }
 0x27d   : > { %v2676_v3 = vadd.f32 %v2675_v42, %v4905_v28  ;;  %v2752_v57 = vadd.f32 %v2751_v2, %v2717_v55 }
 0x27f   : > { %v2677_v0 = vrot.slane %v2676_v3, 4  ;;  %v2753_v50 = vadd.f32 %v2752_v57, %v2718_v56 }
 0x281   : > { %v2678_v58 = vadd.f32 %v2677_v0, %v2676_v3  ;;  %v2754_v59 = vrot.slane %v2753_v50, 4 }
 0x283   : > { %v2679_v21 = vrot.slane %v2678_v58, 2  ;;  %v2755_v60 = vadd.f32 %v2754_v59, %v2753_v50 }
 0x285   : > { %v2680_v34 = vadd.f32 %v2679_v21, %v2678_v58  ;;  %v2756_v26 = vrot.slane %v2755_v60, 2 }
 0x287   : > { %v2681_v23 = vrot.slane %v2680_v34, 1  ;;  %v2757_v27 = vadd.f32 %v2756_v26, %v2755_v60 }
 0x289   : > { %v2758_v32 = vrot.slane %v2757_v27, 1  ;;  %v2682_v24 = vadd.f32 %v2681_v23, %v2680_v34 }
 0x28b   : > { %v2759_v28 = vadd.f32 %v2758_v32, %v2757_v27 }
 0x28d   : > { %v2761_v6 = vsel %vm2760_vm6, %v2682_v24, %v2759_v28 }
 0x28e   : > { %2762 = vst [vmem:[%s208_s9] sm:$0x3] %v2761_v6 }
 0x28f PF: > { %s15_s15 = sadd.s32 1, %s3538_s15  }
 0x290   : > { %p12_p4 = scmp.ge.s32.totalorder %s15_s15, 4  }
 0x292   :  { %14 = sbr.rel (!%p12_p4) target bundleno = 1 (0x1), region = 74 }

// kernel: resnet_block_forward.4
= control target key start
LH: loop header
LB: loop body
LE: loop exit
PB: predicated region body
PF: predicated region fallthrough
CT: control target
= control target key end

     0   :  { %s3909_s21 = smov 0   ;;  %s5775_s0 = inlined_call_operand.vmem [shape: bf16[2,288,128], index: 0, kind: input, shape index: {}]   ;;  %s5776_s1 = inlined_call_operand.vmem [shape: bf16[1152,128], index: 1, kind: input, shape index: {}]   ;;  %s5777_s2 = inlined_call_operand.vmem [shape: f32[288,1], index: 2, kind: input, shape index: {}]   ;;  %s5778_s3 = inlined_call_operand.vmem [shape: f32[1,128], index: 3, kind: input, shape index: {}]   ;;  %s5779_s4 = inlined_call_operand.vmem [shape: f32[1,128], index: 4, kind: input, shape index: {}]   ;;  %s5780_s5 = inlined_call_operand.vmem [shape: bf16[2,288,128], index: 5, kind: output, shape index: {0}]   ;;  %s5781_s6 = inlined_call_operand.vmem [shape: f32[2,2,128], index: 6, kind: output, shape index: {1}]  }
   0x1 LB: > { %s3335_s22 = sadd.s32 4294967295, %s3871_s21   ;;  %p3339_p0 = scmp.ge.s32.totalorder %s3871_s21, 1  ;;  %s3871_s21 = sphi %s3909_s21, %s17_s21  }
   0x2   : > { %p215_p1 = scmp.lt.s32.totalorder %s3871_s21, 3 }
   0x4   : > { %p216_p2 = pnand %p3339_p0, %p215_p1 }
   0x6   : > { %219 = sbr.rel (%p216_p2) target bundleno = 739 (0x2e3), region = 40 }
   0xb   : > { %v266_v0 = vld [vmem:[%s5777_s2 + $0x10] sm:$0xff]  ;;  %v264_v1 = vld [vmem:[%s5777_s2] sm:$0xff]  ;;  %v5787_v2 = vmov 0   ;;  %v267_v3 = vld [vmem:[%s5777_s2 + $0x18] sm:$0xff]  ;;  %p249_p3 = scmp.lt.s32.totalorder %s3335_s22, 1  ;;  %vm908_vm1 = vcmask 1041408  }
   0xc   : > { %3792 = vset.pattern.permute.xlu1 %v5787_v2  ;;  %3791 = vset.pattern.permute.xlu0 %v5787_v2  ;;  %v265_v4 = vld [vmem:[%s5777_s2 + $0x8] sm:$0xff]  ;;  %v268_v6 = vld [vmem:[%s5777_s2 + $0x20] sm:$0xff]  ;;  %v271_v7 = vld [vmem:[%s5777_s2 + $0x38] sm:$0xff]  ;;  %vm728_vm0 = vsmask.f32 1280  ;;  %vm1081_vm2 = vcmask 1046528  }
   0xd   : > { %506 = vperm.xlu1 %3792, %v266_v0   ;;  %496 = vperm.xlu0 %3791, %v264_v1   ;;  %v269_v5 = vld [vmem:[%s5777_s2 + $0x28] sm:$0xff]  ;;  %v270_v8 = vld [vmem:[%s5777_s2 + $0x30] sm:$0xff]  ;;  %v3793_v9 = vld [vmem:[%s5776_s1 + $0xb8] sm:$0xff]   ;;  %s6022_s22 = smov (!%p249_p3, %s3335_s22), 1  ;;  %vm912_vm3 = vsmask.f32 7424 }
   0xe   : > { %2204 = vmatprep.subr.bf16.mxu1 %v5787_v2  ;;  %2027 = vmatprep.subr.bf16.mxu0 %v5787_v2  ;;  %v273_v10 = vld [vmem:[%s5777_s2 + $0x48] sm:$0xff]  ;;  %v272_v11 = vld [vmem:[%s5777_s2 + $0x40] sm:$0xff]  ;;  %v3794_v12 = vld [vmem:[%s5776_s1 + $0x38] sm:$0xff]   ;;  %s3781_s29 = smul.u32 144, %s6022_s22  ;;  %vm1301_vm5 = vsmask.f32 5376 }
   0xf   : > { %v3795_v13 = vld [vmem:[%s5776_s1 + $0xb0] sm:$0xff]   ;;  %2205 = vmatpush1.bf16.msra.mxu1 %v3793_v9  ;;  %2028 = vmatpush1.bf16.msra.mxu0 %v3794_v12  ;;  %v275_v15 = vld [vmem:[%s5777_s2 + $0x58] sm:$0xff]  ;;  %v3797_v17 = vld [vmem:[%s5776_s1 + $0xa8] sm:$0xff]   ;;  %vm1141_vm6 = vsmask.f32 6400  ;;  %vm1242_vm7 = vcmask 1045504  }
  0x10   : > { %v3796_v14 = vld [vmem:[%s5776_s1 + $0x30] sm:$0xff]   ;;  %2206 = vmatprep.subr.bf16.mxu1 %v5787_v2  ;;  %2029 = vmatprep.subr.bf16.mxu0 %v5787_v2  ;;  %v3798_v18 = vld [vmem:[%s5776_s1 + $0x28] sm:$0xff]   ;;  %v276_v20 = vld [vmem:[%s5777_s2 + $0x60] sm:$0xff]  ;;  %s4109_s18 = scalar_lea.vmem %s5775_s0, %s3781_s29  ;;  %vm1395_vm8 = vcmask 1044480   ;;  %s5575_s12 = scalar_lea.vmem %s5780_s5, %s3781_s29  ;;  %vm3066_vm9 = vcmask 1040384  }
  0x11   : > { %511 = vperm.xlu1 %3792, %v267_v3   ;;  %501 = vperm.xlu0 %3791, %v265_v4   ;;  %v274_v16 = vld [vmem:[%s5777_s2 + $0x50] sm:$0xff]  ;;  %v277_v19 = vld [vmem:[%s5777_s2 + $0x68] sm:$0xff]  ;;  %v3799_v21 = vld [vmem:[%s5776_s1 + $0xa0] sm:$0xff]   ;;  %s3342_s29 = sshll.u32 %s6022_s22, 1 }
  0x12   : > { %v3800_v22 = vld [vmem:[%s5776_s1 + $0x20] sm:$0xff]   ;;  %v279_v23 = vld [vmem:[%s5777_s2 + $0x78] sm:$0xff]  ;;  %v278_v24 = vld [vmem:[%s5777_s2 + $0x70] sm:$0xff]  ;;  %s262_s15 = scalar_lea.vmem %s5781_s6, %s3342_s29 }
  0x13   : > { %2207 = vmatpush1.bf16.msra.mxu1 %v3795_v13  ;;  %2030 = vmatpush1.bf16.msra.mxu0 %v3796_v14  ;;  %v3801_v25 = vld [vmem:[%s5776_s1 + $0x98] sm:$0xff]   ;;  %v281_v27 = vld [vmem:[%s5777_s2 + $0x88] sm:$0xff]  ;;  %v280_v28 = vld [vmem:[%s5777_s2 + $0x80] sm:$0xff] }
  0x14   : > { %2208 = vmatprep.subr.bf16.mxu1 %v5787_v2  ;;  %2031 = vmatprep.subr.bf16.mxu0 %v5787_v2  ;;  %v3802_v26 = vld [vmem:[%s5776_s1 + $0x18] sm:$0xff]   ;;  %v3803_v29 = vld [vmem:[%s5776_s1 + $0x90] sm:$0xff]   ;;  %v3805_v33 = vld [vmem:[%s5776_s1 + $0x88] sm:$0xff]  }
  0x15   : > { %521 = vperm.xlu1 %3792, %v269_v5   ;;  %516 = vperm.xlu0 %3791, %v268_v6   ;;  %v3804_v30 = vld [vmem:[%s5776_s1 + $0x10] sm:$0xff]   ;;  %v283_v31 = vld [vmem:[%s5777_s2 + $0x98] sm:$0xff]  ;;  %v3806_v34 = vld [vmem:[%s5776_s1 + $0x8] sm:$0xff]  }
  0x16   : > { %v282_v32 = vld [vmem:[%s5777_s2 + $0x90] sm:$0xff]  ;;  %v285_v35 = vld [vmem:[%s5777_s2 + $0xa8] sm:$0xff]  ;;  %v284_v36 = vld [vmem:[%s5777_s2 + $0xa0] sm:$0xff] }
  0x17   : > { %2209 = vmatpush1.bf16.msra.mxu1 %v3797_v17  ;;  %2032 = vmatpush1.bf16.msra.mxu0 %v3798_v18  ;;  %v3807_v37 = vld [vmem:[%s5776_s1 + $0x80] sm:$0xff]   ;;  %v287_v39 = vld [vmem:[%s5777_s2 + $0xb8] sm:$0xff]  ;;  %v286_v40 = vld [vmem:[%s5777_s2 + $0xb0] sm:$0xff] }
  0x18   : > { %2210 = vmatprep.subr.bf16.mxu1 %v5787_v2  ;;  %2033 = vmatprep.subr.bf16.mxu0 %v5787_v2  ;;  %v3808_v38 = vld [vmem:[%s5776_s1] sm:$0xff]   ;;  %v3809_v41 = vld [vmem:[%s5776_s1 + $0xf8] sm:$0xff]   ;;  %v289_v43 = vld [vmem:[%s5777_s2 + $0xc8] sm:$0xff] }
  0x19   : > { %531 = vperm.xlu1 %3792, %v271_v7   ;;  %526 = vperm.xlu0 %3791, %v270_v8   ;;  %v3810_v42 = vld [vmem:[%s5776_s1 + $0x78] sm:$0xff]   ;;  %v288_v44 = vld [vmem:[%s5777_s2 + $0xc0] sm:$0xff]  ;;  %v3811_v45 = vld [vmem:[%s5776_s1 + $0xf0] sm:$0xff]  }
  0x1a   : > { %v3812_v46 = vld [vmem:[%s5776_s1 + $0x70] sm:$0xff]   ;;  %v291_v47 = vld [vmem:[%s5777_s2 + $0xd8] sm:$0xff]  ;;  %v3813_v49 = vld [vmem:[%s5776_s1 + $0xe8] sm:$0xff]  }
  0x1b   : > { %2211 = vmatpush1.bf16.msra.mxu1 %v3799_v21  ;;  %2034 = vmatpush1.bf16.msra.mxu0 %v3800_v22  ;;  %v290_v48 = vld [vmem:[%s5777_s2 + $0xd0] sm:$0xff]  ;;  %v3814_v50 = vld [vmem:[%s5776_s1 + $0x68] sm:$0xff]   ;;  %v292_v52 = vld [vmem:[%s5777_s2 + $0xe0] sm:$0xff] }
  0x1c   : > { %2212 = vmatprep.subr.bf16.mxu1 %v5787_v2  ;;  %2035 = vmatprep.subr.bf16.mxu0 %v5787_v2  ;;  %v293_v51 = vld [vmem:[%s5777_s2 + $0xe8] sm:$0xff]  ;;  %v3815_v53 = vld [vmem:[%s5776_s1 + $0xe0] sm:$0xff]   ;;  %v3662_v54 = vld [vmem:[%s4109_s18 + $0x50] sm:$0xff]  }
  0x1d   : > { %541 = vperm.xlu1 %3792, %v273_v10   ;;  %536 = vperm.xlu0 %3791, %v272_v11   ;;  %v3816_v55 = vld [vmem:[%s5776_s1 + $0x60] sm:$0xff]   ;;  %v3663_v57 = vld [vmem:[%s4109_s18 + $0x58] sm:$0xff]   ;;  %v294_v59 = vld [vmem:[%s5777_s2 + $0xf0] sm:$0xff]  ;;  %v3534_v61 = vunpack.c.h.bf16 %v3662_v54  ;;  %v3533_v63 = vunpack.c.l.bf16 %v3662_v54 }
  0x1e   : > { %v4122_v56 = vld [vmem:[%s5778_s3] ss:$0 sm:$0xff]  ;;  %v295_v58 = vld [vmem:[%s5777_s2 + $0xf8] sm:$0xff]  ;;  %v3538_v4 = vunpack.c.h.bf16 %v3663_v57  ;;  %v3537_v5 = vunpack.c.l.bf16 %v3663_v57  ;;  %v3665_v7 = vld [vmem:[%s4109_s18 + $0x68] sm:$0xff]  }
  0x1f   : > { %2213 = vmatpush1.bf16.msra.mxu1 %v3801_v25  ;;  %2036 = vmatpush1.bf16.msra.mxu0 %v3802_v26  ;;  %v3817_v60 = vld [vmem:[%s5776_s1 + $0xd8] sm:$0xff]   ;;  %v4138_v62 = vld [vmem:[%s5779_s4] ss:$0 sm:$0xff]  ;;  %v400_v3 = vmul.f32 %v3534_v61, %v4122_v56  ;;  %v399_v6 = vmul.f32 %v3533_v63, %v4122_v56  ;;  %v297_v8 = vld [vmem:[%s5777_s2 + $0x108] sm:$0xff] }
  0x20   : > { %2214 = vmatprep.subr.bf16.mxu1 %v5787_v2  ;;  %2037 = vmatprep.subr.bf16.mxu0 %v5787_v2  ;;  %v3664_v0 = vld [vmem:[%s4109_s18 + $0x60] sm:$0xff]   ;;  %v3818_v1 = vld [vmem:[%s5776_s1 + $0x58] sm:$0xff]   ;;  %v3819_v10 = vld [vmem:[%s5776_s1 + $0xd0] sm:$0xff]   ;;  %v402_v12 = vmul.f32 %v3538_v4, %v4122_v56  ;;  %v401_v13 = vmul.f32 %v3537_v5, %v4122_v56 }
  0x21   : > { %551 = vperm.xlu1 %3792, %v275_v15   ;;  %546 = vperm.xlu0 %3791, %v274_v16   ;;  %v296_v9 = vld [vmem:[%s5777_s2 + $0x100] sm:$0xff]  ;;  %v4159_v11 = vadd.f32 %v4138_v62, %v400_v3  ;;  %v3542_v14 = vunpack.c.h.bf16 %v3664_v0  ;;  %v4164_v15 = vadd.f32 %v4138_v62, %v399_v6  ;;  %v3541_v16 = vunpack.c.l.bf16 %v3664_v0  ;;  %v3666_v17 = vld [vmem:[%s4109_s18 + $0x70] sm:$0xff]   ;;  %v3667_v25 = vld [vmem:[%s4109_s18 + $0x78] sm:$0xff]  }
  0x22   : > { %v3820_v18 = vld [vmem:[%s5776_s1 + $0x50] sm:$0xff]   ;;  %v299_v26 = vld [vmem:[%s5777_s2 + $0x118] sm:$0xff]  ;;  %v3653_v3 = vld [vmem:[%s4109_s18 + $0x8] sm:$0xff]  }
  0x23   : > { %2215 = vmatpush1.bf16.msra.mxu1 %v3803_v29  ;;  %2038 = vmatpush1.bf16.msra.mxu0 %v3804_v30  ;;  %v404_v21 = vmul.f32 %v3542_v14, %v4122_v56  ;;  %v403_v22 = vmul.f32 %v3541_v16, %v4122_v56  ;;  %v3550_v30 = vunpack.c.h.bf16 %v3666_v17  ;;  %v3492_v4 = vld [vmem:[%s4109_s18] sm:$0xff]   ;;  %v3497_v5 = vunpack.c.l.bf16 %v3653_v3  ;;  %v3654_v6 = vld [vmem:[%s4109_s18 + $0x10] sm:$0xff]   ;;  %vm4334_vm4 = vmand %vm908_vm1, %vm728_vm0 }
  0x24   : > { %2216 = vmatprep.subr.bf16.mxu1 %v5787_v2  ;;  %2039 = vmatprep.subr.bf16.mxu0 %v5787_v2  ;;  %v3656_v14 = vld [vmem:[%s4109_s18 + $0x20] sm:$0xff]   ;;  %v3501_v16 = vunpack.c.l.bf16 %v3654_v6 }
  0x25   : > { %561 = vperm.xlu1 %3792, %v277_v19   ;;  %556 = vperm.xlu0 %3791, %v276_v20   ;;  %v4171_v19 = vadd.f32 %v4138_v62, %v402_v12  ;;  %v4174_v20 = vadd.f32 %v4138_v62, %v401_v13  ;;  %v4191_v29 = vadd.f32 %v4138_v62, %v404_v21  ;;  %v3502_v13 = vunpack.c.h.bf16 %v3654_v6 }
  0x26   : > { %v381_v12 = vmul.f32 %v3497_v5, %v4122_v56 }
  0x27   : > { %2217 = vmatpush1.bf16.msra.mxu1 %v3805_v33  ;;  %2040 = vmatpush1.bf16.msra.mxu0 %v3806_v34 }
  0x28   : > { %2218 = vmatprep.subr.bf16.mxu1 %v5787_v2  ;;  %2041 = vmatprep.subr.bf16.mxu0 %v5787_v2 }
  0x29   : > { %571 = vperm.xlu1 %3792, %v279_v23   ;;  %566 = vperm.xlu0 %3791, %v278_v24   ;;  %v3546_v23 = vunpack.c.h.bf16 %v3665_v7  ;;  %v3545_v24 = vunpack.c.l.bf16 %v3665_v7  ;;  %v3493_v7 = vunpack.c.l.bf16 %v3492_v4 }
  0x2b   : > { %2219 = vmatpush1.bf16.msra.mxu1 %v3807_v37  ;;  %2042 = vmatpush1.bf16.msra.mxu0 %v3808_v38  ;;  %v406_v33 = vmul.f32 %v3546_v23, %v4122_v56  ;;  %v405_v34 = vmul.f32 %v3545_v24, %v4122_v56  ;;  %v408_v37 = vmul.f32 %v3550_v30, %v4122_v56  ;;  %v3554_v38 = vunpack.c.h.bf16 %v3667_v25  ;;  %v3657_v23 = vld [vmem:[%s4109_s18 + $0x28] sm:$0xff]  }
  0x2c   : > { %2220 = vmatprep.subr.bf16.mxu1 %v5787_v2  ;;  %2043 = vmatprep.subr.bf16.mxu0 %v5787_v2  ;;  %v383_v30 = vmul.f32 %v3501_v16, %v4122_v56 }
  0x2d   : > { %581 = vperm.xlu1 %3792, %v281_v27   ;;  %576 = vperm.xlu0 %3791, %v280_v28   ;;  %v298_v27 = vld [vmem:[%s5777_s2 + $0x110] sm:$0xff]  ;;  %v3821_v28 = vld [vmem:[%s5776_s1 + $0xc8] sm:$0xff]  }
  0x2f   : > { %2221 = vmatpush2.bf16.msra.mxu1 %v3809_v41  ;;  %2044 = vmatpush2.bf16.msra.mxu0 %v3810_v42  ;;  %v4209_v41 = vadd.f32 %v4138_v62, %v405_v34 }
  0x30   : > { %2222 = vmatprep.subr.bf16.mxu1 %v5787_v2  ;;  %2045 = vmatprep.subr.bf16.mxu0 %v5787_v2 }
  0x31   : > { %591 = vperm.xlu1 %3792, %v283_v31   ;;  %586 = vperm.xlu0 %3791, %v282_v32   ;;  %v3668_v31 = vld [vmem:[%s4109_s18 + $0x80] sm:$0xff]   ;;  %v4195_v32 = vadd.f32 %v4138_v62, %v403_v22 }
  0x33   : > { %2223 = vmatpush2.bf16.msra.mxu1 %v3811_v45  ;;  %2046 = vmatpush2.bf16.msra.mxu0 %v3812_v46  ;;  %v410_v45 = vmul.f32 %v3554_v38, %v4122_v56 }
  0x34   : > { %2224 = vmatprep.subr.bf16.mxu1 %v5787_v2  ;;  %2047 = vmatprep.subr.bf16.mxu0 %v5787_v2 }
  0x35   : > { %601 = vperm.xlu1 %3792, %v285_v35   ;;  %596 = vperm.xlu0 %3791, %v284_v36   ;;  %v3549_v35 = vunpack.c.l.bf16 %v3666_v17  ;;  %v3822_v36 = vld [vmem:[%s5776_s1 + $0x48] sm:$0xff]   ;;  %v379_v17 = vmul.f32 %v3493_v7, %v4122_v56 }
  0x37   : > { %2225 = vmatpush2.bf16.msra.mxu1 %v3813_v49  ;;  %2048 = vmatpush2.bf16.msra.mxu0 %v3814_v50  ;;  %v407_v42 = vmul.f32 %v3549_v35, %v4122_v56  ;;  %v3557_v50 = vunpack.c.l.bf16 %v3668_v31  ;;  %v422_v34 = vadd.f32 %v4138_v62, %v379_v17 }
  0x38   : > { %2226 = vmatprep.subr.bf16.mxu1 %v5787_v2  ;;  %2049 = vmatprep.subr.bf16.mxu0 %v5787_v2 }
  0x39   : > { %611 = vperm.xlu1 %3792, %v287_v39   ;;  %606 = vperm.xlu0 %3791, %v286_v40   ;;  %v3553_v39 = vunpack.c.l.bf16 %v3667_v25  ;;  %v4206_v40 = vadd.f32 %v4138_v62, %v406_v33  ;;  %v4222_v49 = vadd.f32 %v4138_v62, %v407_v42  ;;  %v3510_v25 = vunpack.c.h.bf16 %v3656_v14  ;;  %v3658_v33 = vld [vmem:[%s4109_s18 + $0x30] sm:$0xff]  }
  0x3a   : > { %v3513_v42 = vunpack.c.l.bf16 %v3657_v23  ;;  %v3517_v7 = vunpack.c.l.bf16 %v3658_v33 }
  0x3b   : > { %2227 = vmatpush2.bf16.msra.mxu1 %v3815_v53  ;;  %2050 = vmatpush2.bf16.msra.mxu0 %v3816_v55  ;;  %v409_v46 = vmul.f32 %v3553_v39, %v4122_v56  ;;  %v411_v55 = vmul.f32 %v3557_v50, %v4122_v56  ;;  %v388_v39 = vmul.f32 %v3510_v25, %v4122_v56 }
  0x3c   : > { %2228 = vmatprep.subr.bf16.mxu1 %v5787_v2  ;;  %2051 = vmatprep.subr.bf16.mxu0 %v5787_v2  ;;  %v389_v6 = vmul.f32 %v3513_v42, %v4122_v56 }
  0x3d   : > { %621 = vperm.xlu1 %3792, %v289_v43   ;;  %616 = vperm.xlu0 %3791, %v288_v44   ;;  %v3669_v43 = vld [vmem:[%s4109_s18 + $0x88] sm:$0xff]   ;;  %v4214_v44 = vadd.f32 %v4138_v62, %v408_v37  ;;  %v4231_v53 = vadd.f32 %v4138_v62, %v409_v46  ;;  %v4288_v5 = vadd.f32 %v4138_v62, %v388_v39 }
  0x3e   : > { %v3562_v57 = vunpack.c.h.bf16 %v3669_v43 }
  0x3f   : > { %2229 = vmatpush2.bf16.msra.mxu1 %v3817_v60  ;;  %2052 = vmatpush2.bf16.msra.mxu0 %v3818_v1  ;;  %v4241_v60 = vadd.f32 %v4138_v62, %v411_v55  ;;  %v4282_v55 = vrot.slane %v5787_v2, 1 }
  0x40   : > { %2230 = vmatprep.subr.bf16.mxu1 %v5787_v2  ;;  %2053 = vmatprep.subr.bf16.mxu0 %v5787_v2  ;;  %v414_v61 = vmul.f32 %v3562_v57, %v4122_v56  ;;  %v458_v57 = vmax.f32 %v422_v34, 0.0 }
  0x41   : > { %631 = vperm.xlu1 %3792, %v291_v47   ;;  %626 = vperm.xlu0 %3791, %v290_v48   ;;  %v3558_v47 = vunpack.c.h.bf16 %v3668_v31  ;;  %v3823_v48 = vld [vmem:[%s5776_s1 + $0xc0] sm:$0xff]   ;;  %v3514_v31 = vunpack.c.h.bf16 %v3657_v23 }
  0x42   : > { %v4248_v0 = vadd.f32 %v4138_v62, %v414_v61 }
  0x43   : > { %2231 = vmatpush2.bf16.msra.mxu1 %v3819_v10  ;;  %2054 = vmatpush2.bf16.msra.mxu0 %v3820_v18  ;;  %v412_v54 = vmul.f32 %v3558_v47, %v4122_v56  ;;  %v3655_v10 = vld [vmem:[%s4109_s18 + $0x18] sm:$0xff]   ;;  %v3518_v47 = vunpack.c.h.bf16 %v3658_v33 }
  0x44   : > { %2232 = vmatprep.subr.bf16.mxu1 %v5787_v2  ;;  %2055 = vmatprep.subr.bf16.mxu0 %v5787_v2  ;;  %v3506_v22 = vunpack.c.h.bf16 %v3655_v10  ;;  %v3505_v24 = vunpack.c.l.bf16 %v3655_v10 }
  0x45   : > { %641 = vperm.xlu1 %3792, %v293_v51   ;;  %636 = vperm.xlu0 %3791, %v292_v52   ;;  %v3824_v51 = vld [vmem:[%s5776_s1 + $0x40] sm:$0xff]   ;;  %v4228_v52 = vadd.f32 %v4138_v62, %v410_v45 }
  0x46   : > { %v386_v37 = vmul.f32 %v3506_v22, %v4122_v56  ;;  %v385_v38 = vmul.f32 %v3505_v24, %v4122_v56 }
  0x47   : > { %2233 = vmatpush2.bf16.msra.mxu1 %v3821_v28  ;;  %2056 = vmatpush2.bf16.msra.mxu0 %v3822_v36  ;;  %v3509_v28 = vunpack.c.l.bf16 %v3656_v14 }
  0x48   : > { %2234 = vmatprep.subr.bf16.mxu1 %v5787_v2  ;;  %2057 = vmatprep.subr.bf16.mxu0 %v5787_v2 }
  0x49   : > { %651 = vperm.xlu1 %3792, %v295_v58   ;;  %646 = vperm.xlu0 %3791, %v294_v59   ;;  %v3561_v58 = vunpack.c.l.bf16 %v3669_v43  ;;  %v4238_v59 = vadd.f32 %v4138_v62, %v412_v54  ;;  %v387_v46 = vmul.f32 %v3509_v28, %v4122_v56  ;;  %v390_v54 = vmul.f32 %v3514_v31, %v4122_v56 }
  0x4a   : > { %v467_v28 = vmax.f32 %v4288_v5, 0.0  ;;  %v391_v31 = vmul.f32 %v3517_v7, %v4122_v56  ;;  %v3854_v7 = vld [vmem:[%s5776_s1 + $0x140] sm:$0xff]  }
  0x4b   : > { %v413_v63 = vmul.f32 %v3561_v58, %v4122_v56  ;;  %2235 = vmatpush2.bf16.msra.mxu1 %v3823_v48  ;;  %2058 = vmatpush2.bf16.msra.mxu0 %v3824_v51  ;;  %v426_v51 = vadd.f32 %v4138_v62, %v383_v30  ;;  %v4293_v10 = vadd.f32 %v4138_v62, %v387_v46 }
  0x4c   : > { %2381 = vmatprep.subr.bf16.mxu0 %v5787_v2  ;;  %2558 = vmatprep.subr.bf16.mxu1 %v5787_v2  ;;  %v4301_v17 = vadd.f32 %v4138_v62, %v390_v54  ;;  %v4311_v30 = vadd.f32 %v4138_v62, %v389_v6 }
  0x4d   : > { %661 = vperm.xlu1 %3792, %v297_v8   ;;  %656 = vperm.xlu0 %3791, %v296_v9   ;;  %v4251_v1 = vadd.f32 %v4138_v62, %v413_v63  ;;  %v3498_v8 = vunpack.c.h.bf16 %v3653_v3  ;;  %v3494_v9 = vunpack.c.h.bf16 %v3492_v4  ;;  %v429_v63 = vadd.f32 %v4138_v62, %v386_v37  ;;  %v3659_v3 = vld [vmem:[%s4109_s18 + $0x38] sm:$0xff]  }
  0x4e   : > { %v428_v4 = vadd.f32 %v4138_v62, %v385_v38  ;;  %v462_v16 = vmax.f32 %v426_v51, 0.0  ;;  %v469_v39 = vmax.f32 %v4301_v17, 0.0  ;;  %v3832_v17 = vld [vmem:[%s5776_s1 + $0x1b0] sm:$0xff]  }
  0x4f   : > { %v382_v18 = vmul.f32 %v3498_v8, %v4122_v56  ;;  %v380_v21 = vmul.f32 %v3494_v9, %v4122_v56  ;;  %v465_v25 = vmax.f32 %v429_v63, 0.0  ;;  %v4330_v63 = vadd.f32 %v4138_v62, %v391_v31 }
  0x51   : > { %671 = vperm.xlu1 %3792, %v299_v26   ;;  %666 = vperm.xlu0 %3791, %v298_v27   ;;  %v424_v26 = vadd.f32 %v4138_v62, %v381_v12  ;;  %v384_v27 = vmul.f32 %v3502_v13, %v4122_v56  ;;  %v425_v35 = vadd.f32 %v4138_v62, %v382_v18  ;;  %v3522_v18 = vunpack.c.h.bf16 %v3659_v3 }
  0x52   : > { %v423_v36 = vadd.f32 %v4138_v62, %v380_v21  ;;  %v392_v12 = vmul.f32 %v3518_v47, %v4122_v56  ;;  %v3521_v21 = vunpack.c.l.bf16 %v3659_v3 }
  0x53   : > { %v460_v43 = vmax.f32 %v424_v26, 0.0  ;;  %v427_v45 = vadd.f32 %v4138_v62, %v384_v27  ;;  %v461_v58 = vmax.f32 %v425_v35, 0.0  ;;  %v4307_v26 = vld [vmem:[%s4109_s18 + $0x40] sm:$0xff]   ;;  %v464_v27 = vmax.f32 %v428_v4, 0.0 }
  0x54   : > { %v459_v61 = vmax.f32 %v423_v36, 0.0  ;;  %v466_v35 = vmax.f32 %v4293_v10, 0.0  ;;  %v4316_v36 = vadd.f32 %v4138_v62, %v392_v12  ;;  %v394_v42 = vmul.f32 %v3522_v18, %v4122_v56 }
  0x55   : > { %v463_v9 = vmax.f32 %v427_v45, 0.0  ;;  %v3526_v45 = vunpack.c.h.bf16 %v4307_v26  ;;  %v3525_v18 = vunpack.c.l.bf16 %v4307_v26 }
  0x88   : > { %v4275_v48 = vpop.permute.xlu1 %506  ;;  %v4277_v50 = vpop.permute.xlu0 %496 }
  0x89   : > { %5844 = vst [vmem:[#allocation2_spill] sm:$0xff] %v4275_v48  ;;  %5845 = vst [vmem:[#allocation3_spill] sm:$0xff] %v4277_v50  ;;  %v676_v8 = vmul.f32 %v4275_v48, %v460_v43  ;;  %v674_v22 = vmul.f32 %v4277_v50, %v458_v57  ;;  %v393_v43 = vmul.f32 %v3521_v21, %v4122_v56 }
  0x8c   : > { %v4296_v13 = vpop.permute.xlu1 %511  ;;  %v4298_v14 = vpop.permute.xlu0 %501 }
  0x8d   : > { %5846 = vst [vmem:[#allocation4_spill] sm:$0xff] %v4296_v13  ;;  %5847 = vst [vmem:[#allocation5_spill] sm:$0xff] %v4298_v14  ;;  %v677_v23 = vmul.f32 %v4296_v13, %v461_v58  ;;  %v675_v24 = vmul.f32 %v4298_v14, %v459_v61  ;;  %v468_v61 = vmax.f32 %v4311_v30, 0.0 }
  0x8f   : > { %v711_v33 = vpack.c.bf16 %v677_v23, %v676_v8  ;;  %v710_v34 = vpack.c.bf16 %v675_v24, %v674_v22 }
  0x90   : > { %v4318_v37 = vpop.permute.xlu1 %521  ;;  %v4320_v38 = vpop.permute.xlu0 %516 }
  0x91   : > { %5848 = vst [vmem:[#allocation6_spill] sm:$0xff] %v4318_v37  ;;  %5849 = vst [vmem:[#allocation7_spill] sm:$0xff] %v4320_v38  ;;  %v738_v46 = vshrl.u32 %v711_v33, 16  ;;  %v741_v47 = vshll.u32 %v711_v33, 16  ;;  %v730_v51 = vshrl.u32 %v710_v34, 16  ;;  %v733_v54 = vshll.u32 %v710_v34, 16 }
  0x92   : > { %v679_v57 = vmul.f32 %v4318_v37, %v463_v9  ;;  %v678_v58 = vmul.f32 %v4320_v38, %v462_v16  ;;  %v4344_v16 = vadd.f32 %v4138_v62, %v394_v42  ;;  %v4350_v33 = vadd.f32 %v4138_v62, %v393_v43 }
  0x93   : > { %v740_v3 = vrot.slane %v738_v46, 6  ;;  %v743_v4 = vrot.slane %v741_v47, 7  ;;  %v732_v5 = vrot.slane %v730_v51, 6  ;;  %v735_v6 = vrot.slane %v733_v54, 7 }
  0x94   : > { %v712_v8 = vpack.c.bf16 %v679_v57, %v678_v58  ;;  %v4338_v9 = vpop.permute.xlu1 %531  ;;  %v4340_v10 = vpop.permute.xlu0 %526  ;;  %v4353_v34 = vmul.f32 %v3526_v45, %v4122_v56 }
  0x95   : > { %5852 = vst [vmem:[#allocation8_spill] sm:$0xff] %v4338_v9  ;;  %5853 = vst [vmem:[#allocation9_spill] sm:$0xff] %v4340_v10  ;;  %v744_v21 = vor.u32 %v743_v4, %v740_v3  ;;  %v736_v22 = vor.u32 %v735_v6, %v732_v5  ;;  %v681_v23 = vmul.f32 %v4338_v9, %v465_v25  ;;  %v470_v25 = vmax.f32 %v4330_v63, 0.0  ;;  %v3830_v63 = vld [vmem:[%s5776_s1 + $0x1b8] sm:$0xff]  }
  0x96   : > { %v680_v24 = vmul.f32 %v4340_v10, %v464_v27  ;;  %v747_v30 = vshrl.u32 %v712_v8, 16  ;;  %v750_v31 = vshll.u32 %v712_v8, 16 }
  0x97   : > { %v4356_v46 = vsel %vm728_vm0, %v736_v22, %v744_v21  ;;  %v4360_v26 = vsel %vm4334_vm4, 0, %v736_v22 }
  0x98   : > { %5854 = vst [vmem:[#allocation10_spill] sm:$0xff] %v4356_v46  ;;  %v713_v42 = vpack.c.bf16 %v681_v23, %v680_v24  ;;  %v749_v47 = vrot.slane %v747_v30, 6  ;;  %v752_v27 = vrot.slane %v750_v31, 7  ;;  %v4363_v51 = vpop.permute.xlu1 %541  ;;  %v4365_v54 = vpop.permute.xlu0 %536  ;;  %v1083_v43 = vrot.slane %v4360_v26, 1 }
  0x99   : > { %5855 = vst [vmem:[#allocation11_spill] sm:$0xff] %v4363_v51  ;;  %5856 = vst [vmem:[#allocation12_spill] sm:$0xff] %v4365_v54  ;;  %v1085_v45 = vrot.slane %v4356_v46, 1  ;;  %v683_v3 = vmul.f32 %v4363_v51, %v467_v28  ;;  %v682_v4 = vmul.f32 %v4365_v54, %v466_v35  ;;  %v5782_v22 = vshll.u32 %v4360_v26, 16 }
  0x9a   : > { %v756_v57 = vshrl.u32 %v713_v42, 16  ;;  %v759_v58 = vshll.u32 %v713_v42, 16  ;;  %v753_v5 = vor.u32 %v752_v27, %v749_v47  ;;  %v1084_v8 = vsel %vm1081_vm2, %v4282_v55, %v1083_v43 }
  0x9b   : > { %v1086_v6 = vsel %vm1081_vm2, %v1083_v43, %v1085_v45  ;;  %v714_v30 = vpack.c.bf16 %v683_v3, %v682_v4  ;;  %v4379_v28 = vmul.f32 %v3525_v18, %v4122_v56  ;;  %v923_v47 = vrot.slane %v5782_v22, 1  ;;  %v3825_v4 = vld [vmem:[%s5776_s1 + $0x138] sm:$0xff]  }
  0x9c   : > { %v758_v23 = vrot.slane %v756_v57, 6  ;;  %v761_v24 = vrot.slane %v759_v58, 7  ;;  %2236 = vmatprep.mubr.bf16.mxu1 %v1086_v6  ;;  %v4382_v35 = vsel %vm728_vm0, %v744_v21, %v753_v5  ;;  %v4384_v31 = vpop.permute.xlu1 %551  ;;  %v4386_v42 = vpop.permute.xlu0 %546  ;;  %v5783_v27 = vshrl.u32 %v4360_v26, 16  ;;  %v3661_v57 = vld [vmem:[%s4109_s18 + $0x48] sm:$0xff]  }
  0x9d   : > { %5857 = vst [vmem:[#allocation13_spill] sm:$0xff] %v4382_v35  ;;  %5858 = vst [vmem:[#allocation14_spill] sm:$0xff] %v4384_v31  ;;  %2237 = vmatmul.mubr.bf16.vlgmr.msra.gmra.mxu1 %v1084_v8  ;;  %v4392_v43 = vshll.u32 %v4356_v46, 16  ;;  %v765_v18 = vshrl.u32 %v714_v30, 16  ;;  %v768_v3 = vshll.u32 %v714_v30, 16  ;;  %v685_v21 = vmul.f32 %v4384_v31, %v469_v39 }
  0x9e   : > { %5859 = vst [vmem:[#allocation15_spill] sm:$0xff] %v4386_v42  ;;  %v762_v58 = vor.u32 %v761_v24, %v758_v23  ;;  %2559 = vmatpush1.bf16.msra.mxu1 %v3830_v63  ;;  %v684_v8 = vmul.f32 %v4386_v42, %v468_v61  ;;  %v924_v22 = vsel %vm912_vm3, %v4282_v55, %v923_v47  ;;  %v3530_v61 = vunpack.c.h.bf16 %v3661_v57 }
  0x9f   : > { %v927_v12 = vor.u32 %v5783_v27, %v923_v47  ;;  %v931_v23 = vrot.slane %v4392_v43, 1  ;;  %2560 = vmatprep.subr.bf16.mxu1 %v5787_v2  ;;  %v767_v63 = vrot.slane %v765_v18, 6  ;;  %v770_v24 = vrot.slane %v768_v3, 7  ;;  %2059 = vmatprep.mubr.bf16.mxu0 %v924_v22 }
  0xa0   : > { %v4412_v39 = vsel %vm728_vm0, %v753_v5, %v762_v58  ;;  %v715_v30 = vpack.c.bf16 %v685_v21, %v684_v8  ;;  %2060 = vmatmul.mubr.bf16.vlgmr.msra.gmra.mxu0 %v5787_v2  ;;  %v1087_v47 = vrot.slane %v4382_v35, 1  ;;  %v4417_v27 = vpop.permute.xlu1 %561  ;;  %v4419_v51 = vpop.permute.xlu0 %556  ;;  %v5863_v5 = vmax.f32 %v4316_v36, 0.0  ;;  %v3834_v36 = vld [vmem:[%s5776_s1 + $0x1a8] sm:$0xff]  }
  0xa1   : > { %5860 = vst [vmem:[#allocation16_spill] sm:$0xff] %v4412_v39  ;;  %v932_v55 = vsel %vm912_vm3, %v927_v12, %v931_v23  ;;  %5861 = vst [vmem:[#allocation17_spill] sm:$0xff] %v4417_v27  ;;  %v5789_v31 = vrot.slane %v4412_v39, 1  ;;  %v4422_v42 = vor.u32 %v770_v24, %v767_v63  ;;  %2382 = vmatpush1.bf16.msra.mxu0 %v3825_v4  ;;  %v3826_v12 = vld [vmem:[%s5776_s1 + $0x130] sm:$0xff]   ;;  %v3529_v63 = vunpack.c.l.bf16 %v3661_v57 }
  0xa2   : > { %5862 = vst [vmem:[#allocation18_spill] sm:$0xff] %v4419_v51  ;;  %2067 = vmatprep.mubr.bf16.mxu0 %v932_v55  ;;  %v687_v22 = vmul.f32 %v4417_v27, %v5863_v5  ;;  %v686_v18 = vmul.f32 %v4419_v51, %v470_v25  ;;  %v774_v3 = vshrl.u32 %v715_v30, 16  ;;  %v777_v21 = vshll.u32 %v715_v30, 16  ;;  %2383 = vmatprep.subr.bf16.mxu0 %v5787_v2 }
  0xa3   : > { %v1088_v8 = vsel %vm1081_vm2, %v1085_v45, %v1087_v47  ;;  %2561 = vmatpush1.bf16.msra.mxu1 %v3832_v17  ;;  %v473_v25 = vmax.f32 %v4344_v16, 0.0  ;;  %v472_v24 = vmax.f32 %v4350_v33, 0.0  ;;  %v4439_v55 = vshll.u32 %v4382_v35, 16 }
  0xa4   : > { %2244 = vmatprep.mubr.bf16.mxu1 %v1088_v8  ;;  %v716_v4 = vpack.c.bf16 %v687_v22, %v686_v18  ;;  %2562 = vmatprep.subr.bf16.mxu1 %v5787_v2  ;;  %v4444_v45 = vsel %vm728_vm0, %v762_v58, %v4422_v42  ;;  %v4446_v57 = vpop.permute.xlu1 %571  ;;  %v4448_v17 = vpop.permute.xlu0 %566  ;;  %v4453_v16 = vsel %vm1081_vm2, %v1087_v47, %v5789_v31  ;;  %v4456_v33 = vshrl.u32 %v4356_v46, 16 }
  0xa5   : > { %5864 = vst [vmem:[#allocation19_spill] sm:$0xff] %v4444_v45  ;;  %5865 = vst [vmem:[#allocation20_spill] sm:$0xff] %v4446_v57  ;;  %2245 = vmatmul.mubr.bf16.gmra.mxu1 %v1086_v6  ;;  %v398_v30 = vmul.f32 %v3530_v61, %v4122_v56  ;;  %v776_v5 = vrot.slane %v774_v3, 6  ;;  %v779_v22 = vrot.slane %v777_v21, 7  ;;  %2384 = vmatpush1.bf16.msra.mxu0 %v3826_v12  ;;  %v3827_v6 = vld [vmem:[%s5776_s1 + $0x128] sm:$0xff]   ;;  %v939_v47 = vrot.slane %v4439_v55, 1 }
  0xa6   : > { %5866 = vst [vmem:[#allocation21_spill] sm:$0xff] %v4448_v17  ;;  %v783_v18 = vshrl.u32 %v716_v4, 16  ;;  %v786_v58 = vshll.u32 %v716_v4, 16  ;;  %2252 = vmatprep.mubr.bf16.mxu1 %v4453_v16  ;;  %v935_v2 = vor.u32 %v4456_v33, %v931_v23  ;;  %v397_v31 = vmul.f32 %v3529_v63, %v4122_v56  ;;  %v3836_v61 = vld [vmem:[%s5776_s1 + $0x1a0] sm:$0xff]  }
  0xa7   : > { %v5867_v27 = vmov 0   ;;  %2563 = vmatpush1.bf16.msra.mxu1 %v3834_v36  ;;  %v689_v3 = vmul.f32 %v4446_v57, %v473_v25  ;;  %v688_v12 = vmul.f32 %v4448_v17, %v472_v24  ;;  %v439_v21 = vadd.f32 %v4138_v62, %v4353_v34 }
  0xa8   : > { %2385 = vmatprep.subr.bf16.mxu0 %v5867_v27  ;;  %v438_v23 = vadd.f32 %v4138_v62, %v4379_v28  ;;  %2564 = vmatprep.subr.bf16.mxu1 %v5867_v27  ;;  %v940_v56 = vsel %vm912_vm3, %v935_v2, %v939_v47  ;;  %v4479_v63 = vpop.permute.xlu1 %581  ;;  %v4481_v36 = vpop.permute.xlu0 %576  ;;  %v4484_v4 = vadd.f32 %v4138_v62, %v398_v30  ;;  %v4488_v34 = vshll.u32 %v4412_v39, 16  ;;  %v3828_v2 = vld [vmem:[%s5776_s1 + $0x120] sm:$0xff]   ;;  %v3838_v30 = vld [vmem:[%s5776_s1 + $0x198] sm:$0xff]  }
  0xa9   : > { %2068 = vmatmul.mubr.bf16.gmra.mxu0 %v4360_v26  ;;  %5868 = vst [vmem:[#allocation22_spill] sm:$0xff] %v4479_v63  ;;  %5869 = vst [vmem:[#allocation23_spill] sm:$0xff] %v4481_v36  ;;  %v780_v24 = vor.u32 %v779_v22, %v776_v5  ;;  %v785_v28 = vrot.slane %v783_v18, 6  ;;  %v788_v57 = vrot.slane %v786_v58, 7  ;;  %v4494_v17 = vadd.f32 %v4138_v62, %v397_v31 }
  0xaa   : > { %2075 = vmatprep.mubr.bf16.mxu0 %v940_v56  ;;  %2386 = vmatpush1.bf16.msra.mxu0 %v3827_v6  ;;  %v717_v25 = vpack.c.bf16 %v689_v3, %v688_v12  ;;  %v475_v5 = vmax.f32 %v439_v21, 0.0  ;;  %v474_v22 = vmax.f32 %v438_v23, 0.0  ;;  %v477_v58 = vmax.f32 %v4484_v4, 0.0  ;;  %v3829_v4 = vld [vmem:[%s5776_s1 + $0x118] sm:$0xff]  }
  0xab   : > { %2387 = vmatprep.subr.bf16.mxu0 %v5867_v27  ;;  %2565 = vmatpush1.bf16.msra.mxu1 %v3836_v61  ;;  %v5872_v62 = vrot.slane %v4444_v45, 1  ;;  %v5873_v31 = vrot.slane %v4412_v39, 1  ;;  %v4514_v3 = vshrl.u32 %v4382_v35, 16  ;;  %v4519_v21 = vsel %vm728_vm0, %v4422_v42, %v780_v24 }
  0xac   : > { %2566 = vmatprep.subr.bf16.mxu1 %v5867_v27  ;;  %v4501_v18 = vpop.permute.xlu1 %591  ;;  %v4504_v6 = vpop.permute.xlu0 %586  ;;  %5874 = vst [vmem:[#allocation26_spill] sm:$0xff] %v4519_v21  ;;  %v4521_v23 = vor.u32 %v788_v57, %v785_v28  ;;  %v478_v56 = vmax.f32 %v4164_v15, 0.0  ;;  %v481_v42 = vmax.f32 %v4171_v19, 0.0  ;;  %v480_v57 = vmax.f32 %v4174_v20, 0.0 }
  0xad   : > { %5870 = vst [vmem:[#allocation24_spill] sm:$0xff] %v4501_v18  ;;  %5871 = vst [vmem:[#allocation25_spill] sm:$0xff] %v4504_v6  ;;  %2253 = vmatmul.mubr.bf16.gmra.mxu1 %v1088_v8  ;;  %v4511_v61 = vsel %vm1081_vm2, %v5873_v31, %v5872_v62  ;;  %v479_v8 = vmax.f32 %v4159_v11, 0.0  ;;  %v476_v62 = vmax.f32 %v4494_v17, 0.0  ;;  %v943_v31 = vor.u32 %v4514_v3, %v939_v47  ;;  %v3840_v11 = vld [vmem:[%s5776_s1 + $0x190] sm:$0xff]  }
  0xae   : > { %2260 = vmatprep.mubr.bf16.mxu1 %v4511_v61  ;;  %2388 = vmatpush1.bf16.msra.mxu0 %v3828_v2  ;;  %v792_v15 = vshrl.u32 %v717_v25, 16  ;;  %v795_v28 = vshll.u32 %v717_v25, 16  ;;  %v691_v2 = vmul.f32 %v4479_v63, %v475_v5  ;;  %v690_v12 = vmul.f32 %v4481_v36, %v474_v22  ;;  %v3831_v36 = vld [vmem:[%s5776_s1 + $0x110] sm:$0xff]  }
  0xaf   : > { %2389 = vmatprep.subr.bf16.mxu0 %v5867_v27  ;;  %2567 = vmatpush1.bf16.msra.mxu1 %v3838_v30  ;;  %v5875_v19 = vrot.slane %v4488_v34, 1  ;;  %v1093_v30 = vrot.slane %v4519_v21, 1  ;;  %v4550_v25 = vshll.u32 %v4444_v45, 16  ;;  %v483_v5 = vmax.f32 %v4191_v29, 0.0 }
  0xb0   : > { %2568 = vmatprep.subr.bf16.mxu1 %v5867_v27  ;;  %v4544_v17 = vpop.permute.xlu1 %601  ;;  %v4546_v47 = vpop.permute.xlu0 %596  ;;  %v4555_v22 = vsel %vm728_vm0, %v780_v24, %v4521_v23  ;;  %v5881_v24 = vrot.slane %v4444_v45, 1  ;;  %v4583_v54 = vshrl.u32 %v4412_v39, 16  ;;  %v1306_v50 = vrot.slane %v4439_v55, 3 }
  0xb1   : > { %2076 = vmatmul.mubr.bf16.gmra.mxu0 %v4356_v46  ;;  %v948_v20 = vsel %vm912_vm3, %v943_v31, %v5875_v19  ;;  %5876 = vst [vmem:[#allocation27_spill] sm:$0xff] %v4544_v17  ;;  %5877 = vst [vmem:[#allocation28_spill] sm:$0xff] %v4546_v47  ;;  %v695_v63 = vmul.f32 %v4544_v17, %v479_v8  ;;  %v694_v31 = vmul.f32 %v4546_v47, %v478_v56 }
  0xb2   : > { %5878 = vst [vmem:[#allocation29_spill] sm:$0xff] %v4555_v22  ;;  %2083 = vmatprep.mubr.bf16.mxu0 %v948_v20  ;;  %v482_v19 = vmax.f32 %v4195_v32, 0.0  ;;  %2390 = vmatpush1.bf16.msra.mxu0 %v3829_v4  ;;  %v3842_v32 = vld [vmem:[%s5776_s1 + $0x188] sm:$0xff]   ;;  %v794_v8 = vrot.slane %v792_v15, 6  ;;  %v797_v56 = vrot.slane %v795_v28, 7  ;;  %v718_v4 = vpack.c.bf16 %v691_v2, %v690_v12 }
  0xb3   : > { %2391 = vmatprep.subr.bf16.mxu0 %v5867_v27  ;;  %2569 = vmatpush1.bf16.msra.mxu1 %v3840_v11  ;;  %v720_v20 = vpack.c.bf16 %v695_v63, %v694_v31  ;;  %v4580_v11 = vsel %vm1081_vm2, %v5881_v24, %v1093_v30  ;;  %v955_v15 = vrot.slane %v4550_v25, 1  ;;  %v693_v12 = vmul.f32 %v4501_v18, %v477_v58  ;;  %v3833_v31 = vld [vmem:[%s5776_s1 + $0x108] sm:$0xff]   ;;  %v3835_v18 = vld [vmem:[%s5776_s1 + $0x100] sm:$0xff]  }
  0xb4   : > { %2570 = vmatprep.subr.bf16.mxu1 %v5867_v27  ;;  %v4572_v51 = vpop.permute.xlu1 %611  ;;  %v4574_v29 = vpop.permute.xlu0 %606  ;;  %v692_v28 = vmul.f32 %v4504_v6, %v476_v62  ;;  %v5882_v63 = vrot.slane %v4488_v34, 1  ;;  %v3844_v62 = vld [vmem:[%s5776_s1 + $0x180] sm:$0xff]   ;;  %v5885_v6 = vrot.slane %v4555_v22, 1  ;;  %v1314_v46 = vrot.slane %v4550_v25, 3 }
  0xb5   : > { %5879 = vst [vmem:[#allocation30_spill] sm:$0xff] %v4572_v51  ;;  %5880 = vst [vmem:[#allocation31_spill] sm:$0xff] %v4574_v29  ;;  %2261 = vmatmul.mubr.bf16.gmra.mxu1 %v4453_v16  ;;  %v697_v2 = vmul.f32 %v4572_v51, %v481_v42  ;;  %v819_v24 = vshrl.u32 %v720_v20, 16  ;;  %v822_v37 = vshll.u32 %v720_v20, 16  ;;  %v696_v9 = vmul.f32 %v4574_v29, %v480_v57 }
  0xb6   : > { %2268 = vmatprep.mubr.bf16.mxu1 %v4580_v11  ;;  %2392 = vmatpush1.bf16.msra.mxu0 %v3831_v36  ;;  %v951_v58 = vor.u32 %v4583_v54, %v5882_v63  ;;  %v4603_v36 = vor.u32 %v797_v56, %v794_v8  ;;  %v801_v42 = vshrl.u32 %v718_v4, 16  ;;  %v804_v16 = vshll.u32 %v718_v4, 16 }
  0xb7   : > { %2393 = vmatprep.subr.bf16.mxu0 %v5867_v27  ;;  %2571 = vmatpush1.bf16.msra.mxu1 %v3842_v32  ;;  %v721_v57 = vpack.c.bf16 %v697_v2, %v696_v9  ;;  %v4616_v8 = vsel %vm1081_vm2, %v1093_v30, %v5885_v6  ;;  %v4619_v56 = vshll.u32 %v4519_v21, 16  ;;  %v4621_v4 = vpack.c.bf16 %v693_v12, %v692_v28 }
  0xb8   : > { %2572 = vmatprep.subr.bf16.mxu1 %v5867_v27  ;;  %v956_v20 = vsel %vm912_vm3, %v951_v58, %v955_v15  ;;  %v4609_v63 = vpop.permute.xlu1 %621  ;;  %v4611_v32 = vpop.permute.xlu0 %616  ;;  %v4626_v58 = vshrl.u32 %v4444_v45, 16  ;;  %v821_v6 = vrot.slane %v819_v24, 6  ;;  %v824_v30 = vrot.slane %v822_v37, 7 }
  0xb9   : > { %2084 = vmatmul.mubr.bf16.gmra.mxu0 %v4382_v35  ;;  %5883 = vst [vmem:[#allocation32_spill] sm:$0xff] %v4609_v63  ;;  %5884 = vst [vmem:[#allocation33_spill] sm:$0xff] %v4611_v32  ;;  %v699_v9 = vmul.f32 %v4609_v63, %v483_v5  ;;  %v698_v2 = vmul.f32 %v4611_v32, %v482_v19  ;;  %v828_v38 = vshrl.u32 %v721_v57, 16  ;;  %v831_v10 = vshll.u32 %v721_v57, 16  ;;  %v3846_v5 = vld [vmem:[%s5776_s1 + $0x1f8] sm:$0xff]  }
  0xba   : > { %2091 = vmatprep.mubr.bf16.mxu0 %v956_v20  ;;  %2394 = vmatpush1.bf16.msra.mxu0 %v3833_v31  ;;  %v4638_v19 = vsel %vm728_vm0, %v4521_v23, %v4603_v36  ;;  %v803_v12 = vrot.slane %v801_v42, 6  ;;  %v959_v31 = vor.u32 %v4626_v58, %v955_v15  ;;  %v806_v37 = vrot.slane %v804_v16, 7 }
  0xbb   : > { %2395 = vmatprep.subr.bf16.mxu0 %v5867_v27  ;;  %2573 = vmatpush1.bf16.msra.mxu1 %v3844_v62  ;;  %5886 = vst [vmem:[#allocation34_spill] sm:$0xff] %v4638_v19  ;;  %v722_v28 = vpack.c.bf16 %v699_v9, %v698_v2  ;;  %v830_v24 = vrot.slane %v828_v38, 6  ;;  %v833_v57 = vrot.slane %v831_v10, 7  ;;  %v963_v63 = vrot.slane %v4619_v56, 1  ;;  %v3837_v38 = vld [vmem:[%s5776_s1 + $0x178] sm:$0xff]  }
  0xbc   : > { %2574 = vmatprep.subr.bf16.mxu1 %v5867_v27  ;;  %v4642_v20 = vpop.permute.xlu1 %631  ;;  %v4644_v62 = vpop.permute.xlu0 %626  ;;  %v5889_v42 = vmax.f32 %v4206_v40, 0.0  ;;  %v5890_v15 = vmax.f32 %v4209_v41, 0.0  ;;  %v810_v10 = vshrl.u32 %v4621_v4, 16  ;;  %v3847_v41 = vld [vmem:[%s5776_s1 + $0x1f0] sm:$0xff]  }
  0xbd   : > { %5887 = vst [vmem:[#allocation35_spill] sm:$0xff] %v4642_v20  ;;  %5888 = vst [vmem:[#allocation36_spill] sm:$0xff] %v4644_v62  ;;  %2269 = vmatmul.mubr.bf16.gmra.mxu1 %v4511_v61  ;;  %v837_v32 = vshrl.u32 %v722_v28, 16  ;;  %v840_v23 = vshll.u32 %v722_v28, 16  ;;  %v4659_v61 = vor.u32 %v824_v30, %v821_v6  ;;  %v834_v2 = vor.u32 %v833_v57, %v830_v24 }
  0xbe   : > { %v701_v9 = vmul.f32 %v4642_v20, %v5889_v42  ;;  %v700_v16 = vmul.f32 %v4644_v62, %v5890_v15  ;;  %2276 = vmatprep.mubr.bf16.mxu1 %v4616_v8  ;;  %2396 = vmatpush1.bf16.msra.mxu0 %v3835_v18  ;;  %v813_v18 = vshll.u32 %v4621_v4, 16  ;;  %v4668_v20 = vor.u32 %v806_v37, %v803_v12 }
  0xbf   : > { %2397 = vmatprep.subr.bf16.mxu0 %v5867_v27  ;;  %2575 = vmatpush2.bf16.msra.mxu1 %v3846_v5  ;;  %v839_v28 = vrot.slane %v837_v32, 6  ;;  %v842_v42 = vrot.slane %v840_v23, 7  ;;  %v4672_v6 = vsel %vm728_vm0, %v4659_v61, %v834_v2  ;;  %v964_v30 = vsel %vm912_vm3, %v959_v31, %v963_v63  ;;  %v3839_v31 = vld [vmem:[%s5776_s1 + $0x170] sm:$0xff]  }
  0xc0   : > { %v723_v15 = vpack.c.bf16 %v701_v9, %v700_v16  ;;  %2576 = vmatprep.subr.bf16.mxu1 %v5867_v27  ;;  %v4676_v5 = vpop.permute.xlu1 %641  ;;  %v4678_v24 = vpop.permute.xlu0 %636  ;;  %v4681_v32 = vshll.u32 %v4555_v22, 16  ;;  %v5893_v12 = vmax.f32 %v4214_v44, 0.0  ;;  %v812_v9 = vrot.slane %v810_v10, 6 }
  0xc1   : > { %2092 = vmatmul.mubr.bf16.gmra.mxu0 %v4412_v39  ;;  %5891 = vst [vmem:[#allocation37_spill] sm:$0xff] %v4676_v5  ;;  %5892 = vst [vmem:[#allocation38_spill] sm:$0xff] %v4678_v24  ;;  %v843_v4 = vor.u32 %v842_v42, %v839_v28  ;;  %v5894_v16 = vmax.f32 %v4222_v49, 0.0  ;;  %v5895_v62 = vrot.slane %v4638_v19, 1  ;;  %v5896_v28 = vrot.slane %v4555_v22, 1 }
  0xc2   : > { %v846_v57 = vshrl.u32 %v723_v15, 16  ;;  %v849_v23 = vshll.u32 %v723_v15, 16  ;;  %2099 = vmatprep.mubr.bf16.mxu0 %v964_v30  ;;  %v703_v37 = vmul.f32 %v4676_v5, %v5893_v12  ;;  %2398 = vmatpush2.bf16.msra.mxu0 %v3837_v38  ;;  %v491_v44 = vmax.f32 %v4238_v59, 0.0  ;;  %v3849_v38 = vld [vmem:[%s5776_s1 + $0x1e8] sm:$0xff]  }
  0xc3   : > { %v702_v40 = vmul.f32 %v4678_v24, %v5894_v16  ;;  %v4697_v42 = vsel %vm1081_vm2, %v5896_v28, %v5895_v62  ;;  %2399 = vmatprep.subr.bf16.mxu0 %v5867_v27  ;;  %2577 = vmatpush2.bf16.msra.mxu1 %v3847_v41  ;;  %v815_v10 = vrot.slane %v813_v18, 7  ;;  %v4705_v49 = vsel %vm728_vm0, %v834_v2, %v843_v4 }
  0xc4   : > { %v848_v15 = vrot.slane %v846_v57, 6  ;;  %v851_v30 = vrot.slane %v849_v23, 7  ;;  %2578 = vmatprep.subr.bf16.mxu1 %v5867_v27  ;;  %v4711_v62 = vsel %vm728_vm0, %v4603_v36, %v4668_v20  ;;  %v4713_v12 = vpop.permute.xlu1 %651  ;;  %v4715_v41 = vpop.permute.xlu0 %646  ;;  %v4719_v18 = vshrl.u32 %v4519_v21, 16 }
  0xc5   : > { %v724_v59 = vpack.c.bf16 %v703_v37, %v702_v40  ;;  %5897 = vst [vmem:[#allocation39_spill] sm:$0xff] %v4713_v12  ;;  %5898 = vst [vmem:[#allocation40_spill] sm:$0xff] %v4715_v41  ;;  %2277 = vmatmul.mubr.bf16.gmra.mxu1 %v4580_v11  ;;  %v971_v2 = vrot.slane %v4681_v32, 1  ;;  %v5899_v23 = vmax.f32 %v4228_v52, 0.0  ;;  %v5900_v36 = vmax.f32 %v4231_v53, 0.0  ;;  %v3841_v11 = vld [vmem:[%s5776_s1 + $0x168] sm:$0xff]  }
  0xc6   : > { %v852_v57 = vor.u32 %v851_v30, %v848_v15  ;;  %2284 = vmatprep.mubr.bf16.mxu1 %v4697_v42  ;;  %v490_v37 = vmax.f32 %v4241_v60, 0.0  ;;  %2400 = vmatpush2.bf16.msra.mxu0 %v3839_v31  ;;  %v967_v15 = vor.u32 %v4719_v18, %v963_v63  ;;  %v493_v52 = vmax.f32 %v4248_v0, 0.0  ;;  %v3850_v53 = vld [vmem:[%s5776_s1 + $0x1e0] sm:$0xff]  }
  0xc7   : > { %v705_v16 = vmul.f32 %v4713_v12, %v5899_v23  ;;  %v704_v40 = vmul.f32 %v4715_v41, %v5900_v36  ;;  %v855_v28 = vshrl.u32 %v724_v59, 16  ;;  %v858_v24 = vshll.u32 %v724_v59, 16  ;;  %2401 = vmatprep.subr.bf16.mxu0 %v5867_v27  ;;  %2579 = vmatpush2.bf16.msra.mxu1 %v3849_v38 }
  0xc8   : > { %v816_v30 = vor.u32 %v815_v10, %v812_v9  ;;  %v4740_v60 = vsel %vm728_vm0, %v843_v4, %v852_v57  ;;  %v4743_v23 = vshll.u32 %v4638_v19, 16  ;;  %2580 = vmatprep.subr.bf16.mxu1 %v5867_v27  ;;  %v972_v0 = vsel %vm912_vm3, %v967_v15, %v971_v2  ;;  %v4748_v38 = vpop.permute.xlu1 %661  ;;  %v4750_v36 = vpop.permute.xlu0 %656 }
  0xc9   : > { %v725_v31 = vpack.c.bf16 %v705_v16, %v704_v40  ;;  %v857_v63 = vrot.slane %v855_v28, 6  ;;  %v860_v59 = vrot.slane %v858_v24, 7  ;;  %2100 = vmatmul.mubr.bf16.gmra.mxu0 %v4444_v45  ;;  %5901 = vst [vmem:[#allocation41_spill] sm:$0xff] %v4748_v38  ;;  %5902 = vst [vmem:[#allocation42_spill] sm:$0xff] %v4750_v36  ;;  %v5810_v9 = vrot.slane %v4711_v62, 1  ;;  %v3843_v24 = vld [vmem:[%s5776_s1 + $0x160] sm:$0xff]  }
  0xca   : > { %2107 = vmatprep.mubr.bf16.mxu0 %v972_v0  ;;  %v707_v16 = vmul.f32 %v4748_v38, %v491_v44  ;;  %v706_v40 = vmul.f32 %v4750_v36, %v490_v37  ;;  %2402 = vmatpush2.bf16.msra.mxu0 %v3841_v11  ;;  %v492_v15 = vmax.f32 %v4251_v1, 0.0  ;;  %v4760_v5 = vshrl.u32 %v4555_v22, 16  ;;  %v3852_v44 = vld [vmem:[%s5776_s1 + $0x1d8] sm:$0xff]  }
  0xcb   : > { %v864_v4 = vshrl.u32 %v725_v31, 16  ;;  %v867_v10 = vshll.u32 %v725_v31, 16  ;;  %v861_v28 = vor.u32 %v860_v59, %v857_v63  ;;  %2403 = vmatprep.subr.bf16.mxu0 %v5867_v27  ;;  %2581 = vmatpush2.bf16.msra.mxu1 %v3850_v53  ;;  %v4768_v37 = vsel %vm728_vm0, %v4668_v20, %v816_v30 }
  0xcc   : > { %5903 = vst [vmem:[#allocation43_spill] sm:$0xff] %v4768_v37  ;;  %v726_v0 = vpack.c.bf16 %v707_v16, %v706_v40  ;;  %2582 = vmatprep.subr.bf16.mxu1 %v5867_v27  ;;  %v4774_v63 = vpop.permute.xlu1 %671  ;;  %v4776_v59 = vpop.permute.xlu0 %666  ;;  %v5906_v53 = vrot.slane %v4638_v19, 1  ;;  %v975_v38 = vor.u32 %v4760_v5, %v971_v2  ;;  %v5909_v14 = vrot.slane %v4711_v62, 1 }
  0xcd   : > { %v866_v11 = vrot.slane %v864_v4, 6  ;;  %v869_v31 = vrot.slane %v867_v10, 7  ;;  %v4772_v1 = vsel %vm728_vm0, %v852_v57, %v861_v28  ;;  %5904 = vst [vmem:[#allocation44_spill] sm:$0xff] %v4774_v63  ;;  %5905 = vst [vmem:[#allocation45_spill] sm:$0xff] %v4776_v59  ;;  %2285 = vmatmul.mubr.bf16.gmra.mxu1 %v4616_v8  ;;  %v979_v4 = vrot.slane %v4743_v23, 1  ;;  %v3845_v8 = vld [vmem:[%s5776_s1 + $0x158] sm:$0xff]  }
  0xce   : > { %v4784_v20 = vsel %vm1081_vm2, %v5906_v53, %v5810_v9  ;;  %v4788_v10 = vshll.u32 %v4711_v62, 16  ;;  %v873_v16 = vshrl.u32 %v726_v0, 16  ;;  %v876_v40 = vshll.u32 %v726_v0, 16  ;;  %2404 = vmatpush2.bf16.msra.mxu0 %v3843_v24 }
  0xcf   : > { %v870_v57 = vor.u32 %v869_v31, %v866_v11  ;;  %v709_v36 = vmul.f32 %v4774_v63, %v493_v52  ;;  %2292 = vmatprep.mubr.bf16.mxu1 %v4784_v20  ;;  %v4797_v53 = vsel %vm728_vm0, %v816_v30, %v4659_v61  ;;  %v708_v9 = vmul.f32 %v4776_v59, %v492_v15  ;;  %v3853_v52 = vld [vmem:[%s5776_s1 + $0x1d0] sm:$0xff]  }
  0xd0   : > { %v4802_v11 = vshll.u32 %v4768_v37, 16  ;;  %2405 = vmatprep.subr.bf16.mxu0 %v5867_v27  ;;  %2583 = vmatpush2.bf16.msra.mxu1 %v3852_v44  ;;  %v875_v31 = vrot.slane %v873_v16, 6  ;;  %v878_v61 = vrot.slane %v876_v40, 7  ;;  %v980_v2 = vsel %vm912_vm3, %v975_v38, %v979_v4 }
  0xd1   : > { %v4809_v24 = vsel %vm728_vm0, %v861_v28, %v870_v57  ;;  %2584 = vmatprep.subr.bf16.mxu1 %v5867_v27  ;;  %v727_v30 = vpack.c.bf16 %v709_v36, %v708_v9  ;;  %2108 = vmatmul.mubr.bf16.gmra.mxu0 %v4519_v21  ;;  %v1101_v15 = vrot.slane %v4768_v37, 1  ;;  %v987_v44 = vrot.slane %v4788_v10, 1  ;;  %v3848_v36 = vld [vmem:[%s5776_s1 + $0x150] sm:$0xff]  }
  0xd2   : > { %v879_v0 = vor.u32 %v878_v61, %v875_v31  ;;  %2115 = vmatprep.mubr.bf16.mxu0 %v980_v2  ;;  %v4817_v63 = vshrl.u32 %v4638_v19, 16  ;;  %v1103_v28 = vrot.slane %v4797_v53, 1  ;;  %2406 = vmatpush2.bf16.msra.mxu0 %v3845_v8  ;;  %v4824_v38 = vshrl.u32 %v4711_v62, 16  ;;  %v3855_v31 = vld [vmem:[%s5776_s1 + $0x1c8] sm:$0xff]  }
  0xd3   : > { %v882_v9 = vshrl.u32 %v727_v30, 16  ;;  %v885_v16 = vshll.u32 %v727_v30, 16  ;;  %v995_v40 = vrot.slane %v4802_v11, 1  ;;  %2407 = vmatprep.subr.bf16.mxu0 %v5867_v27  ;;  %v5907_v8 = vshll.u32 %v4360_v26, 16 }
  0xd4   : > { %2585 = vmatpush2.bf16.msra.mxu1 %v3853_v52  ;;  %v5908_v2 = vshrl.u32 %v4360_v26, 16  ;;  %v4840_v30 = vsel %vm728_vm0, %v870_v57, %v879_v0  ;;  %v983_v12 = vor.u32 %v4817_v63, %v979_v4  ;;  %v991_v13 = vor.u32 %v4824_v38, %v987_v44 }
  0xd5   : > { %v4833_v61 = vrot.slane %v5907_v8, 2  ;;  %2586 = vmatprep.subr.bf16.mxu1 %v5867_v27  ;;  %v884_v52 = vrot.slane %v882_v9, 6  ;;  %v887_v41 = vrot.slane %v885_v16, 7  ;;  %2293 = vmatmul.mubr.bf16.gmra.mxu1 %v4697_v42  ;;  %v4848_v8 = vsel %vm1081_vm2, %v5909_v14, %v1101_v15  ;;  %v3851_v14 = vld [vmem:[%s5776_s1 + $0x148] sm:$0xff]  }
  0xd6   : > { %v4837_v59 = vrot.slane %v5908_v2, 1  ;;  %2300 = vmatprep.mubr.bf16.mxu1 %v4848_v8  ;;  %v988_v57 = vsel %vm912_vm3, %v983_v12, %v987_v44  ;;  %v4854_v2 = vsel %vm1081_vm2, %v1101_v15, %v1103_v28  ;;  %v4857_v4 = vshrl.u32 %v4768_v37, 16  ;;  %2408 = vmatpush2.bf16.msra.mxu0 %v3848_v36  ;;  %v3856_v15 = vld [vmem:[%s5776_s1 + $0x1c0] sm:$0xff]  }
  0xd7   : > { %v4860_v42 = vshll.u32 %v4840_v30, 16  ;;  %v888_v9 = vor.u32 %v887_v41, %v884_v52  ;;  %v996_v16 = vsel %vm912_vm3, %v991_v13, %v995_v40  ;;  %v1105_v17 = vrot.slane %v4672_v6, 1  ;;  %2409 = vmatprep.subr.bf16.mxu0 %v5867_v27 }
  0xd8   : > { %2587 = vmatpush2.bf16.msra.mxu1 %v3855_v31  ;;  %v1302_v12 = vrot.slane %v4456_v33, 2  ;;  %v999_v44 = vor.u32 %v4857_v4, %v995_v40  ;;  %v4874_v36 = vshll.u32 %v4797_v53, 16  ;;  %v1303_v13 = vrot.slane %v4392_v43, 3  ;;  %v4882_v31 = vld [vmem:[%s5776_s1 + $0x238] sm:$0xff]  }
  0xd9   : > { %2588 = vmatprep.subr.bf16.mxu1 %v5867_v27  ;;  %5910 = vst [vmem:[#allocation46_spill] sm:$0xff] %v4882_v31  ;;  %v4885_v52 = vsel %vm728_vm0, %v879_v0, %v888_v9  ;;  %v4889_v40 = vsel %vm4334_vm4, %v888_v9, 0  ;;  %2116 = vmatmul.mubr.bf16.gmra.mxu0 %v4555_v22  ;;  %v1305_v41 = vrot.slane %v4514_v3, 2  ;;  %v1107_v48 = vrot.slane %v4705_v49, 1 }
  0xda   : > { %2123 = vmatprep.mubr.bf16.mxu0 %v988_v57  ;;  %2410 = vmatpush2.bf16.msra.mxu0 %v3851_v14  ;;  %v1138_v51 = vrot.slane %v4889_v40, 1  ;;  %v4898_v0 = vshrl.u32 %v4840_v30, 16  ;;  %v4904_v9 = vshll.u32 %v4672_v6, 16  ;;  %v4907_v29 = vshll.u32 %v4885_v52, 16 }
  0xdb   : > { %2411 = vmatprep.subr.bf16.mxu0 %v5867_v27  ;;  %v1304_v57 = vor.u32 %v1303_v13, %v1302_v12  ;;  %v1307_v47 = vor.u32 %v1306_v50, %v1305_v41  ;;  %v4911_v14 = vsel %vm1081_vm2, %v1103_v28, %v1105_v17  ;;  %v1003_v22 = vrot.slane %v4874_v36, 1 }
  0xdc   : > { %2589 = vmatpush2.bf16.msra.mxu1 %v3856_v15  ;;  %v5911_v21 = vrot.slane %v4885_v52, 1  ;;  %v5912_v39 = vrot.slane %v4860_v42, 1  ;;  %v1059_v50 = vrot.slane %v4907_v29, 1  ;;  %v1309_v12 = vrot.slane %v4583_v54, 2 }
  0xdd   : > { %3765 = vmatprep.subr.bf16.mxu1 %v4882_v31  ;;  %2301 = vmatmul.mubr.bf16.gmra.mxu1 %v4784_v20  ;;  %v4926_v28 = vsel %vm1301_vm5, %v1304_v57, %v1307_v47  ;;  %v1310_v15 = vrot.slane %v4488_v34, 3  ;;  %v1145_v20 = vrot.slane %v4456_v33, 1  ;;  %v1011_v41 = vrot.slane %v4904_v9, 1 }
  0xde   : > { %v4917_v45 = vsel %vm1081_vm2, %v5911_v21, %v1138_v51  ;;  %v1055_v35 = vor.u32 %v4898_v0, %v5912_v39  ;;  %5913 = vst [vmem:[#allocation47_spill] sm:$0xff] %v4926_v28  ;;  %2308 = vmatprep.mubr.bf16.mxu1 %v4854_v2  ;;  %v4932_v51 = vsel %vm1081_vm2, %v1105_v17, %v1107_v48  ;;  %v4935_v39 = vshrl.u32 %v4797_v53, 16 }
  0xdf   : > { %2412 = vmatpush2.bf16.msra.mxu0 %v3854_v7  ;;  %v1144_v21 = vor.u32 %v4833_v61, %v4837_v59  ;;  %v1311_v57 = vor.u32 %v1310_v15, %v1309_v12  ;;  %v1146_v17 = vrot.slane %v4392_v43, 2  ;;  %v1313_v28 = vrot.slane %v4626_v58, 2 }
  0xe0   : > { %v4942_v13 = vsel %vm912_vm3, %v1055_v35, %v1059_v50  ;;  %3713 = vmatprep.subr.bf16.mxu0 %v4882_v31  ;;  %v1149_v7 = vrot.slane %v4514_v3, 1  ;;  %v1150_v59 = vrot.slane %v4439_v55, 2  ;;  %v1007_v33 = vor.u32 %v4935_v39, %v1003_v22 }
  0xe1   : > { %2124 = vmatmul.mubr.bf16.gmra.mxu0 %v4638_v19  ;;  %v4954_v61 = vsel %vm1301_vm5, %v1307_v47, %v1311_v57  ;;  %v1147_v50 = vor.u32 %v1146_v17, %v1145_v20  ;;  %v1315_v43 = vor.u32 %v1314_v46, %v1313_v28  ;;  %v1317_v15 = vrot.slane %v4719_v18, 2 }
  0xe2   : > { %2131 = vmatprep.mubr.bf16.mxu0 %v996_v16  ;;  %v1151_v12 = vor.u32 %v1150_v59, %v1149_v7  ;;  %v1318_v31 = vrot.slane %v4619_v56, 3  ;;  %v1004_v3 = vsel %vm912_vm3, %v999_v44, %v1003_v22  ;;  %v1153_v19 = vrot.slane %v4583_v54, 1 }
  0xe3   : > { %v4960_v55 = vsel %vm1141_vm6, %v1144_v21, %v1147_v50  ;;  %v1154_v35 = vrot.slane %v4488_v34, 2  ;;  %v1012_v47 = vsel %vm912_vm3, %v1007_v33, %v1011_v41  ;;  %v4966_v20 = vsel %vm1301_vm5, %v1311_v57, %v1315_v43 }
  0xe4   : > { %v4969_v46 = vsel %vm1141_vm6, %v1147_v50, %v1151_v12  ;;  %v1319_v16 = vor.u32 %v1318_v31, %v1317_v15  ;;  %v1321_v22 = vrot.slane %v4760_v5, 2  ;;  %v1322_v44 = vrot.slane %v4681_v32, 3 }
  0xe5   : > { %2309 = vmatmul.mubr.bf16.gmra.mxu1 %v4848_v8  ;;  %v1155_v28 = vor.u32 %v1154_v35, %v1153_v19  ;;  %v1157_v54 = vrot.slane %v4626_v58, 1  ;;  %v5914_v34 = vrot.slane %v4740_v60, 1  ;;  %v4982_v57 = vshrl.u32 %v4672_v6, 16 }
  0xe6   : > { %2316 = vmatprep.mubr.bf16.mxu1 %v4911_v14  ;;  %v4985_v31 = vsel %vm1301_vm5, %v1315_v43, %v1319_v16  ;;  %v1158_v19 = vrot.slane %v4550_v25, 2  ;;  %v1323_v17 = vor.u32 %v1322_v44, %v1321_v22  ;;  %v1325_v58 = vrot.slane %v4817_v63, 2 }
  0xe7   : > { %v4979_v21 = vsel %vm1081_vm2, %v1107_v48, %v5914_v34  ;;  %v4989_v8 = vsel %vm1141_vm6, %v1151_v12, %v1155_v28  ;;  %v1326_v7 = vrot.slane %v4743_v23, 3  ;;  %v4994_v59 = vshll.u32 %v4705_v49, 16 }
  0xe8   : > { %v1159_v48 = vor.u32 %v1158_v19, %v1157_v54  ;;  %v1161_v33 = vrot.slane %v4719_v18, 1  ;;  %v1162_v35 = vrot.slane %v4619_v56, 2  ;;  %v1015_v25 = vor.u32 %v4982_v57, %v1011_v41 }
  0xe9   : > { %2132 = vmatmul.mubr.bf16.gmra.mxu0 %v4711_v62  ;;  %v5001_v50 = vsel %vm1301_vm5, %v1319_v16, %v1323_v17  ;;  %v1327_v43 = vor.u32 %v1326_v7, %v1325_v58  ;;  %v1329_v12 = vrot.slane %v4824_v38, 2  ;;  %v1330_v44 = vrot.slane %v4788_v10, 3 }
  0xea   : > { %2139 = vmatprep.mubr.bf16.mxu0 %v1004_v3  ;;  %v5005_v15 = vsel %vm1141_vm6, %v1155_v28, %v1159_v48  ;;  %v1163_v22 = vor.u32 %v1162_v35, %v1161_v33  ;;  %v1165_v18 = vrot.slane %v4760_v5, 1  ;;  %v5010_v56 = vshrl.u32 %v4705_v49, 16 }
  0xeb   : > { %v5013_v41 = vshll.u32 %v4740_v60, 16  ;;  %v5016_v16 = vsel %vm1301_vm5, %v1323_v17, %v1327_v43  ;;  %v1166_v54 = vrot.slane %v4681_v32, 2  ;;  %v1331_v28 = vor.u32 %v1330_v44, %v1329_v12 }
  0xec   : > { %v5020_v3 = vsel %vm1141_vm6, %v1159_v48, %v1163_v22  ;;  %v1333_v34 = vrot.slane %v4857_v4, 2  ;;  %v1334_v19 = vrot.slane %v4802_v11, 3  ;;  %v1019_v5 = vrot.slane %v4994_v59, 1 }
  0xed   : > { %2317 = vmatmul.mubr.bf16.gmra.mxu1 %v4854_v2  ;;  %v1167_v58 = vor.u32 %v1166_v54, %v1165_v18  ;;  %v1169_v7 = vrot.slane %v4817_v63, 1  ;;  %v1170_v17 = vrot.slane %v4743_v23, 2  ;;  %v5031_v48 = vsel %vm1301_vm5, %v1327_v43, %v1331_v28 }
  0xee   : > { %2324 = vmatprep.mubr.bf16.mxu1 %v4932_v51  ;;  %v1335_v33 = vor.u32 %v1334_v19, %v1333_v34  ;;  %v1337_v35 = vrot.slane %v4935_v39, 2  ;;  %v1338_v44 = vrot.slane %v4874_v36, 3  ;;  %v1173_v63 = vrot.slane %v4824_v38, 1 }
  0xef   : > { %v5035_v12 = vsel %vm1141_vm6, %v1163_v22, %v1167_v58  ;;  %v1171_v2 = vor.u32 %v1170_v17, %v1169_v7  ;;  %v1027_v23 = vrot.slane %v5013_v41, 1  ;;  %v5041_v18 = vshrl.u32 %v4740_v60, 16 }
  0xf0   : > { %v5044_v54 = vsel %vm1301_vm5, %v1331_v28, %v1335_v33  ;;  %v1174_v43 = vrot.slane %v4788_v10, 2  ;;  %v1339_v34 = vor.u32 %v1338_v44, %v1337_v35  ;;  %v1341_v19 = vrot.slane %v4982_v57, 2 }
  0xf1   : > { %2140 = vmatmul.mubr.bf16.gmra.mxu0 %v4768_v37  ;;  %v5049_v22 = vsel %vm1141_vm6, %v1167_v58, %v1171_v2  ;;  %v1342_v38 = vrot.slane %v4904_v9, 3  ;;  %v1020_v7 = vsel %vm912_vm3, %v1015_v25, %v1019_v5  ;;  %v1177_v32 = vrot.slane %v4857_v4, 1 }
  0xf2   : > { %2147 = vmatprep.mubr.bf16.mxu0 %v1012_v47  ;;  %v1175_v17 = vor.u32 %v1174_v43, %v1173_v63  ;;  %v1178_v28 = vrot.slane %v4802_v11, 2  ;;  %v5057_v10 = vshrl.u32 %v4772_v1, 16  ;;  %v5060_v37 = vsel %vm1301_vm5, %v1335_v33, %v1339_v34 }
  0xf3   : > { %v1343_v58 = vor.u32 %v1342_v38, %v1341_v19  ;;  %v1345_v35 = vrot.slane %v5010_v56, 2  ;;  %v1346_v25 = vrot.slane %v4994_v59, 3  ;;  %v1181_v63 = vrot.slane %v4935_v39, 1 }
  0xf4   : > { %v5064_v44 = vsel %vm1141_vm6, %v1171_v2, %v1175_v17  ;;  %v1179_v47 = vor.u32 %v1178_v28, %v1177_v32  ;;  %v5070_v11 = vshll.u32 %v4772_v1, 16  ;;  %v5073_v4 = vshll.u32 %v4809_v24, 16 }
  0xf5   : > { %2325 = vmatmul.mubr.bf16.gmra.mxu1 %v4911_v14  ;;  %v5076_v33 = vsel %vm1301_vm5, %v1339_v34, %v1343_v58  ;;  %v1182_v43 = vrot.slane %v4874_v36, 2  ;;  %v1347_v2 = vor.u32 %v1346_v25, %v1345_v35  ;;  %v1349_v39 = vrot.slane %v5041_v18, 2 }
  0xf6   : > { %5915 = vst [vmem:[#allocation48_spill] sm:$0xff] %v5076_v33  ;;  %2332 = vmatprep.mubr.bf16.mxu1 %v4979_v21  ;;  %v5081_v32 = vsel %vm1141_vm6, %v1175_v17, %v1179_v47  ;;  %v1350_v14 = vrot.slane %v5013_v41, 3  ;;  %v5086_v19 = vshrl.u32 %v4809_v24, 16  ;;  %v1185_v28 = vrot.slane %v4982_v57, 1 }
  0xf7   : > { %5916 = vst [vmem:[#allocation49_spill] sm:$0xff] %v5081_v32  ;;  %v1183_v38 = vor.u32 %v1182_v43, %v1181_v63  ;;  %v1186_v34 = vrot.slane %v4904_v9, 2  ;;  %v5917_v36 = vrot.slane %v4772_v1, 1  ;;  %v5918_v33 = vrot.slane %v4740_v60, 1 }
  0xf8   : > { %v5098_v35 = vsel %vm1301_vm5, %v1343_v58, %v1347_v2  ;;  %v1351_v25 = vor.u32 %v1350_v14, %v1349_v39  ;;  %v1353_v32 = vrot.slane %v5057_v10, 2  ;;  %v1354_v9 = vrot.slane %v5070_v11, 3 }
  0xf9   : > { %v5095_v17 = vsel %vm1081_vm2, %v5918_v33, %v5917_v36  ;;  %2148 = vmatmul.mubr.bf16.gmra.mxu0 %v4797_v53  ;;  %v5103_v63 = vsel %vm1141_vm6, %v1179_v47, %v1183_v38  ;;  %v1187_v57 = vor.u32 %v1186_v34, %v1185_v28  ;;  %v1189_v43 = vrot.slane %v5010_v56, 1 }
  0xfa   : > { %5919 = vst [vmem:[#allocation50_spill] sm:$0xff] %v5103_v63  ;;  %2155 = vmatprep.mubr.bf16.mxu0 %v1020_v7  ;;  %v1023_v33 = vor.u32 %v5010_v56, %v1019_v5  ;;  %v5842_v36 = vrot.slane %v4809_v24, 1  ;;  %v5110_v58 = vsel %vm1301_vm5, %v1347_v2, %v1351_v25  ;;  %v1190_v39 = vrot.slane %v4994_v59, 2 }
  0xfb   : > { %v5114_v14 = vsel %vm1141_vm6, %v1183_v38, %v1187_v57  ;;  %v1355_v47 = vor.u32 %v1354_v9, %v1353_v32  ;;  %v1357_v28 = vrot.slane %v5086_v19, 2  ;;  %v1358_v34 = vrot.slane %v5073_v4, 3 }
  0xfc   : > { %5920 = vst [vmem:[#allocation51_spill] sm:$0xff] %v5114_v14  ;;  %v1031_v7 = vor.u32 %v5041_v18, %v1027_v23  ;;  %v1191_v63 = vor.u32 %v1190_v39, %v1189_v43  ;;  %v1193_v56 = vrot.slane %v5041_v18, 1  ;;  %v1194_v5 = vrot.slane %v5013_v41, 2 }
  0xfd   : > { %2333 = vmatmul.mubr.bf16.gmra.mxu1 %v4932_v51  ;;  %v1028_v59 = vsel %vm912_vm3, %v1023_v33, %v1027_v23  ;;  %v5124_v2 = vsel %vm1301_vm5, %v1351_v25, %v1355_v47  ;;  %v1359_v38 = vor.u32 %v1358_v34, %v1357_v28  ;;  %v1361_v32 = vrot.slane %v4898_v0, 2 }
  0xfe   : > { %5921 = vst [vmem:[#allocation52_spill] sm:$0xff] %v5124_v2  ;;  %2340 = vmatprep.mubr.bf16.mxu1 %v5095_v17  ;;  %v5129_v9 = vsel %vm1141_vm6, %v1187_v57, %v1191_v63  ;;  %v1195_v43 = vor.u32 %v1194_v5, %v1193_v56  ;;  %v1362_v18 = vrot.slane %v4860_v42, 3  ;;  %v1197_v41 = vrot.slane %v5057_v10, 1 }
  0xff   : > { %5922 = vst [vmem:[#allocation53_spill] sm:$0xff] %v5129_v9  ;;  %v5923_v51 = vrot.slane %v4772_v1, 1  ;;  %v1035_v25 = vrot.slane %v5070_v11, 1  ;;  %v5142_v33 = vsel %vm1301_vm5, %v1355_v47, %v1359_v38  ;;  %v1198_v57 = vrot.slane %v5070_v11, 2 }
 0x100   : > { %5924 = vst [vmem:[#allocation54_spill] sm:$0xff] %v5142_v33  ;;  %v5146_v39 = vsel %vm1141_vm6, %v1191_v63, %v1195_v43  ;;  %v1363_v28 = vor.u32 %v1362_v18, %v1361_v32  ;;  %v1209_v34 = vshrl.u32 %v4885_v52, 16  ;;  %v1366_v56 = vrot.slane %v4907_v29, 3 }
 0x101   : > { %v5138_v23 = vsel %vm1081_vm2, %v5923_v51, %v5842_v36  ;;  %5925 = vst [vmem:[#allocation55_spill] sm:$0xff] %v5146_v39  ;;  %2156 = vmatmul.mubr.bf16.gmra.mxu0 %v4672_v6  ;;  %v1199_v5 = vor.u32 %v1198_v57, %v1197_v41  ;;  %v1201_v36 = vrot.slane %v5086_v19, 1  ;;  %v1202_v47 = vrot.slane %v5073_v4, 2 }
 0x102   : > { %2163 = vmatprep.mubr.bf16.mxu0 %v1028_v59  ;;  %v5155_v11 = vsel %vm1301_vm5, %v1359_v38, %v1363_v28  ;;  %v1365_v63 = vrot.slane %v1209_v34, 2  ;;  %v1276_v32 = vrot.slane %v4885_v52, 2  ;;  %v1216_v18 = vshrl.u32 %v4889_v40, 16 }
 0x103   : > { %5926 = vst [vmem:[#allocation56_spill] sm:$0xff] %v5155_v11  ;;  %v5160_v39 = vsel %vm1141_vm6, %v1195_v43, %v1199_v5  ;;  %v1203_v33 = vor.u32 %v1202_v47, %v1201_v36  ;;  %v1219_v41 = vshll.u32 %v4889_v40, 16  ;;  %v1205_v57 = vrot.slane %v4898_v0, 1 }
 0x104   : > { %5927 = vst [vmem:[#allocation57_spill] sm:$0xff] %v5160_v39  ;;  %v1367_v51 = vor.u32 %v1366_v56, %v1365_v63  ;;  %v5928_v9 = vrot.slane %v4840_v30, 2  ;;  %v1369_v38 = vrot.slane %v1216_v18, 2  ;;  %v1206_v11 = vrot.slane %v4860_v42, 2 }
 0x105   : > { %2341 = vmatmul.mubr.bf16.gmra.mxu1 %v4979_v21  ;;  %v5172_v2 = vsel %vm1141_vm6, %v1199_v5, %v1203_v33  ;;  %v1370_v43 = vrot.slane %v1219_v41, 3  ;;  %v1278_v36 = vrot.slane %v4889_v40, 2  ;;  %v1298_v47 = vrot.slane %v5867_v27, 2 }
 0x106   : > { %v5167_v59 = vsel %vm1242_vm7, %v5928_v9, %v1276_v32  ;;  %5930 = vst [vmem:[#allocation59_spill] sm:$0xff] %v5172_v2  ;;  %2348 = vmatprep.mubr.bf16.mxu1 %v5138_v23  ;;  %v5178_v0 = vsel %vm1301_vm5, %v1363_v28, %v1367_v51  ;;  %v1207_v9 = vor.u32 %v1206_v11, %v1205_v57  ;;  %v5181_v56 = vrot.slane %v5867_v27, 3 }
 0x107   : > { %5929 = vst [vmem:[#allocation58_spill] sm:$0xff] %v5167_v59  ;;  %v1211_v63 = vrot.slane %v1209_v34, 1  ;;  %v1371_v59 = vor.u32 %v1370_v43, %v1369_v38  ;;  %v5184_v21 = vsel %vm1242_vm7, %v1276_v32, %v1278_v36  ;;  %v1212_v5 = vrot.slane %v4907_v29, 2 }
 0x108   : > { %v5188_v2 = vsel %vm1242_vm7, %v1278_v36, %v1298_v47  ;;  %v1036_v39 = vsel %vm912_vm3, %v1031_v7, %v1035_v25  ;;  %v1115_v14 = vrot.slane %v4840_v30, 1  ;;  %v5193_v28 = vsel %vm1141_vm6, %v1203_v33, %v1207_v9 }
 0x109   : > { %v1375_v27 = vor.u32 %v5181_v56, %v1298_v47  ;;  %2164 = vmatmul.mubr.bf16.gmra.mxu0 %v4705_v49  ;;  %v5198_v34 = vsel %vm1301_vm5, %v1367_v51, %v1371_v59  ;;  %v1213_v11 = vor.u32 %v1212_v5, %v1211_v63  ;;  %v1218_v32 = vrot.slane %v1216_v18, 1  ;;  %v5936_v5 = vld [vmem:[#allocation13_spill] sm:$0xff] }
 0x10a   : > { %v1221_v29 = vrot.slane %v1219_v41, 2  ;;  %2171 = vmatprep.mubr.bf16.mxu0 %v1036_v39  ;;  %v5931_v33 = vrot.slane %v4809_v24, 1  ;;  %v1043_v51 = vrot.slane %v5073_v4, 1  ;;  %v1039_v39 = vor.u32 %v5057_v10, %v1035_v25 }
 0x10b   : > { %v5201_v57 = vsel %vm1301_vm5, %v1371_v59, %v1375_v27  ;;  %v5204_v7 = vsel %vm1141_vm6, %v1207_v9, %v1213_v11  ;;  %v1427_v18 = vrot.slane %v4885_v52, 3  ;;  %v1429_v41 = vrot.slane %v4889_v40, 3 }
 0x10c   : > { %v1222_v38 = vor.u32 %v1221_v29, %v1218_v32  ;;  %v1116_v43 = vsel %vm1081_vm2, %v5931_v33, %v1115_v14  ;;  %v5932_v10 = vrot.slane %v4885_v52, 1  ;;  %v1047_v59 = vor.u32 %v5086_v19, %v1043_v51  ;;  %v5935_v19 = vld [vmem:[#allocation47_spill] sm:$0xff] }
 0x10d   : > { %2349 = vmatmul.mubr.bf16.gmra.mxu1 %v5095_v17  ;;  %v1044_v17 = vsel %vm912_vm3, %v1039_v39, %v1043_v51  ;;  %v5224_v4 = vsel %vm1395_vm8, %v1427_v18, %v1429_v41  ;;  %v5933_v47 = vrot.slane %v4860_v42, 1  ;;  %v1246_v27 = vrot.slane %v5936_v5, 2  ;;  %v3859_v29 = vld [vmem:[%s5776_s1 + $0x228] sm:$0xff]   ;;  %v5940_v39 = vld [vmem:[#allocation26_spill] sm:$0xff] }
 0x10e   : > { %v5212_v36 = vsel %vm1141_vm6, %v1213_v11, %v1222_v38  ;;  %2356 = vmatprep.mubr.bf16.mxu1 %v1116_v43  ;;  %v1118_v25 = vsel %vm1081_vm2, %v1115_v14, %v5932_v10  ;;  %v1243_v14 = vrot.slane %v4360_v26, 2  ;;  %v5937_v26 = vld [vmem:[#allocation46_spill] sm:$0xff]  ;;  %v5938_v11 = vld [vmem:[#allocation16_spill] sm:$0xff]  ;;  %v5939_v33 = vld [vmem:[#allocation19_spill] sm:$0xff] }
 0x10f   : > { %v1052_v9 = vsel %vm912_vm3, %v1047_v59, %v5933_v47  ;;  %v1248_v32 = vrot.slane %v5938_v11, 2  ;;  %v5942_v47 = vld [vmem:[#allocation34_spill] sm:$0xff] }
 0x111   : > { %2172 = vmatmul.mubr.bf16.gmra.mxu0 %v4740_v60  ;;  %v1249_v38 = vsel %vm1242_vm7, %v1246_v27, %v1248_v32 }
 0x112   : > { %2179 = vmatprep.mubr.bf16.mxu0 %v1044_v17  ;;  %v1252_v17 = vrot.slane %v5940_v39, 2 }
 0x115   : > { %2357 = vmatmul.mubr.bf16.gmra.mxu1 %v5138_v23  ;;  %v5934_v23 = vld [vmem:[#allocation10_spill] sm:$0xff] }
 0x116   : > { %2364 = vmatprep.mubr.bf16.mxu1 %v1118_v25  ;;  %v1244_v63 = vrot.slane %v5934_v23, 2 }
 0x118   : > { %v1245_v42 = vsel %vm1242_vm7, %v1243_v14, %v1244_v63 }
 0x119   : > { %2180 = vmatmul.mubr.bf16.gmra.mxu0 %v4772_v1 }
 0x11a   : > { %2187 = vmatprep.mubr.bf16.mxu0 %v1052_v9 }
 0x11d   : > { %2365 = vmatmul.mubr.bf16.gmra.mxu1 %v1116_v43  ;;  %v3861_v43 = vld [vmem:[%s5776_s1 + $0x218] sm:$0xff]  }
 0x11e   : > { %2372 = vmatprep.mubr.bf16.mxu1 %v4917_v45  ;;  %v3858_v45 = vld [vmem:[%s5776_s1 + $0x230] sm:$0xff]  }
 0x121   : > { %2188 = vmatmul.mubr.bf16.gmra.mxu0 %v4809_v24 }
 0x122   : > { %2195 = vmatprep.mubr.bf16.mxu0 %v4942_v13  ;;  %v1247_v13 = vsel %vm1242_vm7, %v1244_v63, %v1246_v27 }
 0x125   : > { %2373 = vmatmul.mubr.bf16.gmra.mxu1 %v1118_v25  ;;  %v5941_v25 = vld [vmem:[#allocation29_spill] sm:$0xff] }
 0x126   : > { %2590 = vmatprep.mubr.bf16.mxu1 %v5935_v19  ;;  %v1254_v59 = vrot.slane %v5941_v25, 2  ;;  %v5943_v19 = vld [vmem:[#allocation43_spill] sm:$0xff] }
 0x129   : > { %2196 = vmatmul.mubr.bf16.gmra.mxu0 %v4840_v30 }
 0x12a   : > { %2413 = vmatprep.mubr.bf16.mxu0 %v1245_v42 }
 0x12d   : > { %2591 = vmatmul.mubr.bf16.vlgmr.msra.gmra.mxu1 %v1247_v13 }
 0x12e   : > { %2598 = vmatprep.mubr.bf16.mxu1 %v4954_v61  ;;  %3773 = vmatpush3.bf16.msra.mxu1 %v5937_v26  ;;  %v3860_v61 = vld [vmem:[%s5776_s1 + $0x220] sm:$0xff]  }
 0x12f   : > { %3766 = vmatprep.subr.bf16.mxu1 %v3858_v45 }
 0x131   : > { %2414 = vmatmul.mubr.bf16.vlgmr.msra.gmra.mxu0 %v4960_v55  ;;  %v1250_v55 = vrot.slane %v5939_v33, 2 }
 0x132   : > { %3714 = vmatpush3.bf16.msra.mxu0 %v5937_v26  ;;  %2421 = vmatprep.mubr.bf16.mxu0 %v1247_v13 }
 0x133   : > { %3715 = vmatprep.subr.bf16.mxu0 %v3858_v45  ;;  %3774 = vmatpush3.bf16.msra.mxu1 %v3858_v45  ;;  %v1251_v51 = vsel %vm1242_vm7, %v1248_v32, %v1250_v55  ;;  %v1253_v10 = vsel %vm1242_vm7, %v1250_v55, %v1252_v17 }
 0x134   : > { %3767 = vmatprep.subr.bf16.mxu1 %v3859_v29 }
 0x135   : > { %2599 = vmatmul.mubr.bf16.gmra.mxu1 %v1249_v38 }
 0x136   : > { %2606 = vmatprep.mubr.bf16.mxu1 %v4966_v20  ;;  %3716 = vmatpush3.bf16.msra.mxu0 %v3858_v45  ;;  %v3862_v20 = vld [vmem:[%s5776_s1 + $0x210] sm:$0xff]  }
 0x137   : > { %3717 = vmatprep.subr.bf16.mxu0 %v3859_v29  ;;  %3775 = vmatpush3.bf16.msra.mxu1 %v3859_v29 }
 0x138   : > { %3768 = vmatprep.subr.bf16.mxu1 %v3860_v61 }
 0x139   : > { %2422 = vmatmul.mubr.bf16.gmra.mxu0 %v4969_v46  ;;  %v3863_v46 = vld [vmem:[%s5776_s1 + $0x208] sm:$0xff]  }
 0x13a   : > { %2429 = vmatprep.mubr.bf16.mxu0 %v1249_v38  ;;  %3718 = vmatpush3.bf16.msra.mxu0 %v3859_v29 }
 0x13b   : > { %3719 = vmatprep.subr.bf16.mxu0 %v3860_v61  ;;  %3776 = vmatpush3.bf16.msra.mxu1 %v3860_v61 }
 0x13c   : > { %3769 = vmatprep.subr.bf16.mxu1 %v3861_v43 }
 0x13d   : > { %2607 = vmatmul.mubr.bf16.gmra.mxu1 %v1251_v51 }
 0x13e   : > { %2614 = vmatprep.mubr.bf16.mxu1 %v4985_v31  ;;  %3720 = vmatpush3.bf16.msra.mxu0 %v3860_v61  ;;  %v3864_v31 = vld [vmem:[%s5776_s1 + $0x200] sm:$0xff]   ;;  %v1262_v61 = vrot.slane %v4797_v53, 2 }
 0x13f   : > { %3721 = vmatprep.subr.bf16.mxu0 %v3861_v43  ;;  %3777 = vmatpush3.bf16.msra.mxu1 %v3861_v43 }
 0x140   : > { %3770 = vmatprep.subr.bf16.mxu1 %v3862_v20 }
 0x141   : > { %2430 = vmatmul.mubr.bf16.gmra.mxu0 %v4989_v8  ;;  %v1255_v8 = vsel %vm1242_vm7, %v1252_v17, %v1254_v59 }
 0x142   : > { %2437 = vmatprep.mubr.bf16.mxu0 %v1251_v51  ;;  %3722 = vmatpush3.bf16.msra.mxu0 %v3861_v43 }
 0x143   : > { %3723 = vmatprep.subr.bf16.mxu0 %v3862_v20  ;;  %3778 = vmatpush3.bf16.msra.mxu1 %v3862_v20 }
 0x144   : > { %3771 = vmatprep.subr.bf16.mxu1 %v3863_v46 }
 0x145   : > { %2615 = vmatmul.mubr.bf16.gmra.mxu1 %v1253_v10 }
 0x146   : > { %2622 = vmatprep.mubr.bf16.mxu1 %v5001_v50  ;;  %3724 = vmatpush3.bf16.msra.mxu0 %v3862_v20  ;;  %v1256_v50 = vrot.slane %v5942_v47, 2 }
 0x147   : > { %3725 = vmatprep.subr.bf16.mxu0 %v3863_v46  ;;  %3779 = vmatpush3.bf16.msra.mxu1 %v3863_v46 }
 0x148   : > { %3772 = vmatprep.subr.bf16.mxu1 %v3864_v31  ;;  %v1257_v9 = vsel %vm1242_vm7, %v1254_v59, %v1256_v50 }
 0x149   : > { %2438 = vmatmul.mubr.bf16.gmra.mxu0 %v5005_v15  ;;  %v1258_v15 = vrot.slane %v4711_v62, 2 }
 0x14a   : > { %2445 = vmatprep.mubr.bf16.mxu0 %v1253_v10  ;;  %3726 = vmatpush3.bf16.msra.mxu0 %v3863_v46 }
 0x14b   : > { %3727 = vmatprep.subr.bf16.mxu0 %v3864_v31  ;;  %3780 = vmatpush3.bf16.msra.mxu1 %v3864_v31  ;;  %v1259_v14 = vsel %vm1242_vm7, %v1256_v50, %v1258_v15  ;;  %v1264_v50 = vrot.slane %v4672_v6, 2 }
 0x14d   : > { %2623 = vmatmul.mubr.bf16.gmra.mxu1 %v1255_v8 }
 0x14e   : > { %2630 = vmatprep.mubr.bf16.mxu1 %v5016_v16  ;;  %3728 = vmatpush3.bf16.msra.mxu0 %v3864_v31 }
 0x151   : > { %2446 = vmatmul.mubr.bf16.gmra.mxu0 %v5020_v3  ;;  %v1260_v3 = vrot.slane %v5943_v19, 2 }
 0x152   : > { %2453 = vmatprep.mubr.bf16.mxu0 %v1255_v8 }
 0x153   : > { %v1263_v17 = vsel %vm1242_vm7, %v1260_v3, %v1262_v61 }
 0x155   : > { %2631 = vmatmul.mubr.bf16.gmra.mxu1 %v1257_v9 }
 0x156   : > { %2638 = vmatprep.mubr.bf16.mxu1 %v5031_v48 }
 0x159   : > { %2454 = vmatmul.mubr.bf16.gmra.mxu0 %v5035_v12  ;;  %v1261_v12 = vsel %vm1242_vm7, %v1258_v15, %v1260_v3  ;;  %v1265_v3 = vsel %vm1242_vm7, %v1262_v61, %v1264_v50 }
 0x15a   : > { %2461 = vmatprep.mubr.bf16.mxu0 %v1257_v9  ;;  %v5945_v9 = vld [vmem:[#allocation49_spill] sm:$0xff] }
 0x15d   : > { %v2238_v63 = vpop.f32.mrf.mxu1  ;;  %2639 = vmatmul.mubr.bf16.gmra.mxu1 %v1259_v14 }
 0x15e   : > { %2646 = vmatprep.mubr.bf16.mxu1 %v5044_v54 }
 0x15f   : > { %v2240_v16 = vpop.f32.mrf.mxu1 }
 0x160   : > { %v2061_v27 = vpop.f32.mrf.mxu0 }
 0x161   : > { %2462 = vmatmul.mubr.bf16.gmra.mxu0 %v5049_v22  ;;  %v2241_v42 = vpop.f32.mrf.mxu1  ;;  %v5295_v45 = vadd.f32 %v2238_v63, %v2061_v27 }
 0x162   : > { %2469 = vmatprep.mubr.bf16.mxu0 %v1259_v14  ;;  %v2063_v48 = vpop.f32.mrf.mxu0 }
 0x163   : > { %v2243_v13 = vpop.f32.mrf.mxu1 }
 0x164   : > { %v2064_v26 = vpop.f32.mrf.mxu0 }
 0x165   : > { %v2246_v32 = vpop.f32.mrf.mxu1  ;;  %2647 = vmatmul.mubr.bf16.gmra.mxu1 %v1261_v12  ;;  %v5298_v29 = vadd.f32 %v2241_v42, %v2064_v26  ;;  %v1266_v26 = vrot.slane %v4705_v49, 2 }
 0x166   : > { %2654 = vmatprep.mubr.bf16.mxu1 %v5060_v37  ;;  %v2066_v54 = vpop.f32.mrf.mxu0  ;;  %v5944_v37 = vld [vmem:[#allocation48_spill] sm:$0xff] }
 0x167   : > { %v2248_v38 = vpop.f32.mrf.mxu1  ;;  %v5946_v54 = vld [vmem:[#allocation50_spill] sm:$0xff] }
 0x169   : > { %v2069_v22 = vpop.f32.mrf.mxu0  ;;  %2470 = vmatmul.mubr.bf16.gmra.mxu0 %v5064_v44  ;;  %v2249_v55 = vpop.f32.mrf.mxu1 }
 0x16a   : > { %v5303_v43 = vadd.f32 %v2246_v32, %v2069_v22  ;;  %2477 = vmatprep.mubr.bf16.mxu0 %v1261_v12 }
 0x16b   : > { %v2071_v51 = vpop.f32.mrf.mxu0  ;;  %v2251_v20 = vpop.f32.mrf.mxu1 }
 0x16c   : > { %v1267_v51 = vsel %vm1242_vm7, %v1264_v50, %v1266_v26 }
 0x16d   : > { %v2072_v46 = vpop.f32.mrf.mxu0  ;;  %v2254_v10 = vpop.f32.mrf.mxu1  ;;  %2655 = vmatmul.mubr.bf16.gmra.mxu1 %v1263_v17 }
 0x16e   : > { %v5306_v31 = vadd.f32 %v2249_v55, %v2072_v46  ;;  %2662 = vmatprep.mubr.bf16.mxu1 %v5944_v37  ;;  %v1268_v37 = vrot.slane %v4740_v60, 2 }
 0x16f   : > { %v2074_v59 = vpop.f32.mrf.mxu0  ;;  %v2256_v8 = vpop.f32.mrf.mxu1 }
 0x170   : > { %v5947_v8 = vld [vmem:[#allocation51_spill] sm:$0xff] }
 0x171   : > { %v2077_v44 = vpop.f32.mrf.mxu0  ;;  %2478 = vmatmul.mubr.bf16.gmra.mxu0 %v5945_v9  ;;  %v2257_v15 = vpop.f32.mrf.mxu1 }
 0x172   : > { %v5311_v14 = vadd.f32 %v2254_v10, %v2077_v44  ;;  %2485 = vmatprep.mubr.bf16.mxu0 %v1263_v17 }
 0x173   : > { %v2079_v63 = vpop.f32.mrf.mxu0  ;;  %v2259_v16 = vpop.f32.mrf.mxu1 }
 0x174   : > { %v1269_v63 = vsel %vm1242_vm7, %v1266_v26, %v1268_v37 }
 0x175   : > { %v2080_v27 = vpop.f32.mrf.mxu0  ;;  %v2262_v42 = vpop.f32.mrf.mxu1  ;;  %2663 = vmatmul.mubr.bf16.gmra.mxu1 %v1265_v3 }
 0x176   : > { %v5314_v48 = vadd.f32 %v2257_v15, %v2080_v27  ;;  %2670 = vmatprep.mubr.bf16.mxu1 %v5098_v35 }
 0x177   : > { %v2082_v13 = vpop.f32.mrf.mxu0  ;;  %v2264_v12 = vpop.f32.mrf.mxu1 }
 0x178   : > { %v1270_v12 = vrot.slane %v4772_v1, 2 }
 0x179   : > { %v2085_v32 = vpop.f32.mrf.mxu0  ;;  %2486 = vmatmul.mubr.bf16.gmra.mxu0 %v5946_v54  ;;  %v2265_v38 = vpop.f32.mrf.mxu1  ;;  %v5949_v54 = vld [vmem:[#allocation53_spill] sm:$0xff] }
 0x17a   : > { %v5319_v22 = vadd.f32 %v2262_v42, %v2085_v32  ;;  %2493 = vmatprep.mubr.bf16.mxu0 %v1265_v3 }
 0x17b   : > { %v2087_v55 = vpop.f32.mrf.mxu0  ;;  %v2267_v61 = vpop.f32.mrf.mxu1 }
 0x17d   : > { %v2088_v20 = vpop.f32.mrf.mxu0  ;;  %v2270_v17 = vpop.f32.mrf.mxu1  ;;  %2671 = vmatmul.mubr.bf16.gmra.mxu1 %v1267_v51 }
 0x17e   : > { %v5322_v46 = vadd.f32 %v2265_v38, %v2088_v20  ;;  %2678 = vmatprep.mubr.bf16.mxu1 %v5110_v58  ;;  %v5948_v58 = vld [vmem:[#allocation52_spill] sm:$0xff] }
 0x17f   : > { %v2090_v35 = vpop.f32.mrf.mxu0  ;;  %v2272_v10 = vpop.f32.mrf.mxu1 }
 0x180   : > { %v5950_v10 = vld [vmem:[#allocation54_spill] sm:$0xff] }
 0x181   : > { %v2093_v59 = vpop.f32.mrf.mxu0  ;;  %2494 = vmatmul.mubr.bf16.gmra.mxu0 %v5947_v8  ;;  %v2273_v44 = vpop.f32.mrf.mxu1 }
 0x182   : > { %v5327_v9 = vadd.f32 %v2270_v17, %v2093_v59  ;;  %2501 = vmatprep.mubr.bf16.mxu0 %v1267_v51  ;;  %v1271_v51 = vsel %vm1242_vm7, %v1268_v37, %v1270_v12 }
 0x183   : > { %v2095_v15 = vpop.f32.mrf.mxu0  ;;  %v2275_v50 = vpop.f32.mrf.mxu1 }
 0x184   : > { %v5951_v50 = vld [vmem:[#allocation55_spill] sm:$0xff] }
 0x185   : > { %v2096_v16 = vpop.f32.mrf.mxu0  ;;  %v2278_v3 = vpop.f32.mrf.mxu1  ;;  %2679 = vmatmul.mubr.bf16.gmra.mxu1 %v1269_v63 }
 0x186   : > { %v5330_v27 = vadd.f32 %v2273_v44, %v2096_v16  ;;  %2686 = vmatprep.mubr.bf16.mxu1 %v5948_v58  ;;  %v1272_v44 = vrot.slane %v4809_v24, 2 }
 0x187   : > { %v2098_v42 = vpop.f32.mrf.mxu0  ;;  %v2280_v13 = vpop.f32.mrf.mxu1 }
 0x188   : > { %v1273_v58 = vsel %vm1242_vm7, %v1270_v12, %v1272_v44  ;;  %v5954_v12 = vrot.slane %v4840_v30, 2 }
 0x189   : > { %v2101_v32 = vpop.f32.mrf.mxu0  ;;  %2502 = vmatmul.mubr.bf16.gmra.mxu0 %v5949_v54  ;;  %v2281_v38 = vpop.f32.mrf.mxu1  ;;  %v5952_v54 = vld [vmem:[#allocation56_spill] sm:$0xff] }
 0x18a   : > { %v5335_v55 = vadd.f32 %v2278_v3, %v2101_v32  ;;  %2509 = vmatprep.mubr.bf16.mxu0 %v1269_v63 }
 0x18b   : > { %v2103_v61 = vpop.f32.mrf.mxu0  ;;  %v2283_v26 = vpop.f32.mrf.mxu1 }
 0x18d   : > { %v2104_v20 = vpop.f32.mrf.mxu0  ;;  %v2286_v17 = vpop.f32.mrf.mxu1  ;;  %2687 = vmatmul.mubr.bf16.gmra.mxu1 %v1271_v51 }
 0x18e   : > { %v5338_v35 = vadd.f32 %v2281_v38, %v2104_v20  ;;  %2694 = vmatprep.mubr.bf16.mxu1 %v5950_v10  ;;  %v5953_v20 = vld [vmem:[#allocation57_spill] sm:$0xff] }
 0x18f   : > { %v2106_v59 = vpop.f32.mrf.mxu0  ;;  %v2288_v8 = vpop.f32.mrf.mxu1 }
 0x190   : > { %v1275_v8 = vsel %vm1242_vm7, %v1272_v44, %v5954_v12 }
 0x191   : > { %v2109_v15 = vpop.f32.mrf.mxu0  ;;  %2510 = vmatmul.mubr.bf16.gmra.mxu0 %v5951_v50  ;;  %v2289_v16 = vpop.f32.mrf.mxu1 }
 0x192   : > { %v5343_v63 = vadd.f32 %v2286_v17, %v2109_v15  ;;  %2517 = vmatprep.mubr.bf16.mxu0 %v1271_v51 }
 0x193   : > { %v2111_v3 = vpop.f32.mrf.mxu0  ;;  %v2291_v37 = vpop.f32.mrf.mxu1 }
 0x195   : > { %v2112_v42 = vpop.f32.mrf.mxu0  ;;  %v2294_v13 = vpop.f32.mrf.mxu1  ;;  %2695 = vmatmul.mubr.bf16.gmra.mxu1 %v1273_v58 }
 0x196   : > { %v5346_v32 = vadd.f32 %v2289_v16, %v2112_v42  ;;  %2702 = vmatprep.mubr.bf16.mxu1 %v5952_v54  ;;  %v5955_v54 = vld [vmem:[#allocation59_spill] sm:$0xff] }
 0x197   : > { %v2114_v38 = vpop.f32.mrf.mxu0  ;;  %v2296_v61 = vpop.f32.mrf.mxu1 }
 0x199   : > { %v2117_v26 = vpop.f32.mrf.mxu0  ;;  %2518 = vmatmul.mubr.bf16.gmra.mxu0 %v5953_v20  ;;  %v2297_v10 = vpop.f32.mrf.mxu1  ;;  %v5956_v20 = vld [vmem:[#allocation58_spill] sm:$0xff] }
 0x19a   : > { %v5350_v17 = vadd.f32 %v2294_v13, %v2117_v26  ;;  %2525 = vmatprep.mubr.bf16.mxu0 %v1273_v58 }
 0x19b   : > { %v2119_v51 = vpop.f32.mrf.mxu0  ;;  %v2299_v59 = vpop.f32.mrf.mxu1 }
 0x19d   : > { %v2120_v15 = vpop.f32.mrf.mxu0  ;;  %v2302_v50 = vpop.f32.mrf.mxu1  ;;  %2703 = vmatmul.mubr.bf16.gmra.mxu1 %v1275_v8 }
 0x19e   : > { %v5355_v16 = vadd.f32 %v2297_v10, %v2120_v15  ;;  %2710 = vmatprep.mubr.bf16.mxu1 %v5178_v0 }
 0x19f   : > { %v2122_v3 = vpop.f32.mrf.mxu0  ;;  %v2304_v37 = vpop.f32.mrf.mxu1 }
 0x1a1   : > { %v2125_v42 = vpop.f32.mrf.mxu0  ;;  %2526 = vmatmul.mubr.bf16.gmra.mxu0 %v5955_v54  ;;  %v2305_v13 = vpop.f32.mrf.mxu1 }
 0x1a2   : > { %v5359_v58 = vadd.f32 %v2302_v50, %v2125_v42  ;;  %2533 = vmatprep.mubr.bf16.mxu0 %v1275_v8 }
 0x1a3   : > { %v2127_v38 = vpop.f32.mrf.mxu0  ;;  %v2307_v61 = vpop.f32.mrf.mxu1 }
 0x1a4   : > { %v1417_v38 = vrot.slane %v4705_v49, 3 }
 0x1a5   : > { %v2128_v26 = vpop.f32.mrf.mxu0  ;;  %v2310_v44 = vpop.f32.mrf.mxu1  ;;  %2711 = vmatmul.mubr.bf16.gmra.mxu1 %v5956_v20 }
 0x1a6   : > { %v5362_v51 = vadd.f32 %v2305_v13, %v2128_v26  ;;  %2718 = vmatprep.mubr.bf16.mxu1 %v5198_v34 }
 0x1a7   : > { %v2130_v0 = vpop.f32.mrf.mxu0  ;;  %v2312_v10 = vpop.f32.mrf.mxu1 }
 0x1a9   : > { %v2133_v59 = vpop.f32.mrf.mxu0  ;;  %2534 = vmatmul.mubr.bf16.gmra.mxu0 %v5193_v28  ;;  %v2313_v12 = vpop.f32.mrf.mxu1 }
 0x1aa   : > { %v5366_v15 = vadd.f32 %v2310_v44, %v2133_v59  ;;  %2541 = vmatprep.mubr.bf16.mxu0 %v5956_v20  ;;  %v1415_v20 = vrot.slane %v4672_v6, 3 }
 0x1ab   : > { %v2135_v8 = vpop.f32.mrf.mxu0  ;;  %v2315_v50 = vpop.f32.mrf.mxu1 }
 0x1ac   : > { %v1419_v8 = vrot.slane %v4740_v60, 3 }
 0x1ad   : > { %v2136_v3 = vpop.f32.mrf.mxu0  ;;  %v2318_v37 = vpop.f32.mrf.mxu1  ;;  %2719 = vmatmul.mubr.bf16.gmra.mxu1 %v5184_v21 }
 0x1ae   : > { %v5370_v42 = vadd.f32 %v2313_v12, %v2136_v3  ;;  %2726 = vmatprep.mubr.bf16.mxu1 %v5201_v57  ;;  %v1418_v57 = vsel %vm1395_vm8, %v1415_v20, %v1417_v38 }
 0x1af   : > { %v2138_v34 = vpop.f32.mrf.mxu0  ;;  %v2320_v54 = vpop.f32.mrf.mxu1 }
 0x1b1   : > { %v2141_v13 = vpop.f32.mrf.mxu0  ;;  %2542 = vmatmul.mubr.bf16.gmra.mxu0 %v5204_v7  ;;  %v2321_v28 = vpop.f32.mrf.mxu1  ;;  %v1397_v7 = vrot.slane %v5936_v5, 3 }
 0x1b2   : > { %v5375_v61 = vadd.f32 %v2318_v37, %v2141_v13  ;;  %2549 = vmatprep.mubr.bf16.mxu0 %v5184_v21  ;;  %v1396_v21 = vrot.slane %v5934_v23, 3  ;;  %v1421_v37 = vrot.slane %v4772_v1, 3  ;;  %v1420_v13 = vsel %vm1395_vm8, %v1417_v38, %v1419_v8 }
 0x1b3   : > { %v2143_v26 = vpop.f32.mrf.mxu0  ;;  %v2323_v44 = vpop.f32.mrf.mxu1 }
 0x1b4   : > { %v1422_v60 = vsel %vm1395_vm8, %v1419_v8, %v1421_v37 }
 0x1b5   : > { %v2144_v0 = vpop.f32.mrf.mxu0  ;;  %v2326_v10 = vpop.f32.mrf.mxu1  ;;  %2727 = vmatmul.mubr.bf16.gmra.mxu1 %v5188_v2  ;;  %v1398_v2 = vsel %vm1395_vm8, %v1396_v21, %v1397_v7 }
 0x1b6   : > { %v5384_v59 = vadd.f32 %v2321_v28, %v2144_v0  ;;  %3749 = vmatprep.mubr.bf16.mxu1 %v1418_v57  ;;  %v1399_v28 = vrot.slane %v5938_v11, 3  ;;  %v1423_v57 = vrot.slane %v4809_v24, 3 }
 0x1b7   : > { %v2146_v49 = vpop.f32.mrf.mxu0  ;;  %v2328_v12 = vpop.f32.mrf.mxu1 }
 0x1b8   : > { %v1425_v12 = vrot.slane %v4840_v30, 3 }
 0x1b9   : > { %v2149_v50 = vpop.f32.mrf.mxu0  ;;  %2550 = vmatmul.mubr.bf16.gmra.mxu0 %v5212_v36  ;;  %v2329_v3 = vpop.f32.mrf.mxu1  ;;  %v1401_v36 = vrot.slane %v5939_v33, 3 }
 0x1ba   : > { %v5391_v34 = vadd.f32 %v2326_v10, %v2149_v50  ;;  %3729 = vmatprep.mubr.bf16.mxu0 %v1398_v2  ;;  %v1400_v10 = vsel %vm1395_vm8, %v1397_v7, %v1399_v28  ;;  %v1424_v50 = vsel %vm1395_vm8, %v1421_v37, %v1423_v57  ;;  %v1403_v2 = vrot.slane %v5940_v39, 3 }
 0x1bb   : > { %v2151_v5 = vpop.f32.mrf.mxu0  ;;  %v2331_v54 = vpop.f32.mrf.mxu1  ;;  %v1402_v11 = vsel %vm1395_vm8, %v1399_v28, %v1401_v36  ;;  %v1426_v24 = vsel %vm1395_vm8, %v1423_v57, %v1425_v12 }
 0x1bc   : > { %v1405_v5 = vrot.slane %v5941_v25, 3  ;;  %v1404_v28 = vsel %vm1395_vm8, %v1401_v36, %v1403_v2  ;;  %v1428_v25 = vsel %vm1395_vm8, %v1425_v12, %v1427_v18  ;;  %v1409_v36 = vrot.slane %v4711_v62, 3 }
 0x1bd   : > { %v2152_v23 = vpop.f32.mrf.mxu0  ;;  %v2334_v26 = vpop.f32.mrf.mxu1  ;;  %3750 = vmatmul.mubr.bf16.vlgmr.msra.gmra.mxu1 %v1420_v13  ;;  %v1432_v62 = vsel %vm1395_vm8, %v1429_v41, %v5181_v56 }
 0x1be   : > { %v5397_v44 = vadd.f32 %v2329_v3, %v2152_v23  ;;  %3753 = vmatprep.mubr.bf16.mxu1 %v1422_v60  ;;  %v1406_v37 = vsel %vm1395_vm8, %v1403_v2, %v1405_v5 }
 0x1bf   : > { %v2154_v1 = vpop.f32.mrf.mxu0  ;;  %v2336_v0 = vpop.f32.mrf.mxu1 }
 0x1c0   : > { %v1407_v0 = vrot.slane %v5942_v47, 3 }
 0x1c1   : > { %v2157_v49 = vpop.f32.mrf.mxu0  ;;  %3730 = vmatmul.mubr.bf16.vlgmr.msra.gmra.mxu0 %v1400_v10  ;;  %v2337_v38 = vpop.f32.mrf.mxu1 }
 0x1c2   : > { %v5403_v21 = vadd.f32 %v2334_v26, %v2157_v49  ;;  %3733 = vmatprep.mubr.bf16.mxu0 %v1402_v11  ;;  %v1410_v52 = vsel %vm1395_vm8, %v1407_v0, %v1409_v36 }
 0x1c3   : > { %v2159_v33 = vpop.f32.mrf.mxu0  ;;  %v2339_v8 = vpop.f32.mrf.mxu1 }
 0x1c4   : > { %v1408_v33 = vsel %vm1395_vm8, %v1405_v5, %v1407_v0 }
 0x1c5   : > { %v2160_v3 = vpop.f32.mrf.mxu0  ;;  %v2342_v7 = vpop.f32.mrf.mxu1  ;;  %3754 = vmatmul.mubr.bf16.gmra.mxu1 %v1424_v50 }
 0x1c6   : > { %v5409_v54 = vadd.f32 %v2337_v38, %v2160_v3  ;;  %3757 = vmatprep.mubr.bf16.mxu1 %v1426_v24 }
 0x1c7   : > { %v2162_v30 = vpop.f32.mrf.mxu0  ;;  %v2344_v13 = vpop.f32.mrf.mxu1 }
 0x1c9   : > { %v2165_v23 = vpop.f32.mrf.mxu0  ;;  %3734 = vmatmul.mubr.bf16.gmra.mxu0 %v1404_v28  ;;  %v2345_v26 = vpop.f32.mrf.mxu1 }
 0x1ca   : > { %v5413_v39 = vadd.f32 %v2342_v7, %v2165_v23  ;;  %3737 = vmatprep.mubr.bf16.mxu0 %v1406_v37  ;;  %v1413_v7 = vrot.slane %v4797_v53, 3 }
 0x1cb   : > { %v2167_v60 = vpop.f32.mrf.mxu0  ;;  %v2347_v1 = vpop.f32.mrf.mxu1 }
 0x1cd   : > { %v2168_v10 = vpop.f32.mrf.mxu0  ;;  %v2350_v57 = vpop.f32.mrf.mxu1  ;;  %3758 = vmatmul.mubr.bf16.gmra.mxu1 %v1428_v25  ;;  %v1416_v25 = vsel %vm1395_vm8, %v1413_v7, %v1415_v20 }
 0x1ce   : > { %v5420_v49 = vadd.f32 %v2345_v26, %v2168_v10  ;;  %3761 = vmatprep.mubr.bf16.mxu1 %v5224_v4  ;;  %v1411_v4 = vrot.slane %v5943_v19, 3 }
 0x1cf   : > { %v2170_v11 = vpop.f32.mrf.mxu0  ;;  %v2352_v38 = vpop.f32.mrf.mxu1 }
 0x1d0   : > { %v1412_v13 = vsel %vm1395_vm8, %v1409_v36, %v1411_v4  ;;  %v1414_v23 = vsel %vm1395_vm8, %v1411_v4, %v1413_v7 }
 0x1d1   : > { %v2173_v8 = vpop.f32.mrf.mxu0  ;;  %3738 = vmatmul.mubr.bf16.gmra.mxu0 %v1408_v33  ;;  %v2353_v18 = vpop.f32.mrf.mxu1 }
 0x1d2   : > { %v5425_v12 = vadd.f32 %v2350_v57, %v2173_v8  ;;  %3741 = vmatprep.mubr.bf16.mxu0 %v1410_v52 }
 0x1d3   : > { %v2175_v47 = vpop.f32.mrf.mxu0  ;;  %v2355_v50 = vpop.f32.mrf.mxu1 }
 0x1d5   : > { %v2176_v2 = vpop.f32.mrf.mxu0  ;;  %v2358_v3 = vpop.f32.mrf.mxu1  ;;  %3762 = vmatmul.mubr.bf16.gmra.mxu1 %v1432_v62 }
 0x1d6   : > { %v5433_v24 = vadd.f32 %v2353_v18, %v2176_v2 }
 0x1d7   : > { %v2178_v5 = vpop.f32.mrf.mxu0  ;;  %v2360_v30 = vpop.f32.mrf.mxu1 }
 0x1d9   : > { %v2181_v28 = vpop.f32.mrf.mxu0  ;;  %3742 = vmatmul.mubr.bf16.gmra.mxu0 %v1412_v13  ;;  %v2361_v40 = vpop.f32.mrf.mxu1 }
 0x1da   : > { %v5437_v37 = vadd.f32 %v2358_v3, %v2181_v28  ;;  %3745 = vmatprep.mubr.bf16.mxu0 %v1414_v23 }
 0x1db   : > { %v2183_v56 = vpop.f32.mrf.mxu0  ;;  %v2363_v41 = vpop.f32.mrf.mxu1 }
 0x1dd   : > { %v2184_v19 = vpop.f32.mrf.mxu0  ;;  %v2366_v26 = vpop.f32.mrf.mxu1 }
 0x1de   : > { %v5439_v60 = vadd.f32 %v2361_v40, %v2184_v19 }
 0x1df   : > { %v2186_v53 = vpop.f32.mrf.mxu0  ;;  %v2368_v1 = vpop.f32.mrf.mxu1 }
 0x1e1   : > { %v2189_v0 = vpop.f32.mrf.mxu0  ;;  %3746 = vmatmul.mubr.bf16.gmra.mxu0 %v1416_v25  ;;  %v2369_v10 = vpop.f32.mrf.mxu1 }
 0x1e2   : > { %v5444_v57 = vadd.f32 %v2366_v26, %v2189_v0 }
 0x1e3   : > { %v2191_v36 = vpop.f32.mrf.mxu0  ;;  %v2371_v11 = vpop.f32.mrf.mxu1 }
 0x1e5   : > { %v2192_v38 = vpop.f32.mrf.mxu0  ;;  %v2374_v33 = vpop.f32.mrf.mxu1 }
 0x1e6   : > { %v5446_v8 = vadd.f32 %v2369_v10, %v2192_v38 }
 0x1e7   : > { %v2194_v52 = vpop.f32.mrf.mxu0  ;;  %v2376_v18 = vpop.f32.mrf.mxu1 }
 0x1e9   : > { %v2197_v47 = vpop.f32.mrf.mxu0  ;;  %v2377_v50 = vpop.f32.mrf.mxu1 }
 0x1ea   : > { %v5448_v62 = vadd.f32 %v2374_v33, %v2197_v47 }
 0x1eb   : > { %v2199_v6 = vpop.f32.mrf.mxu0  ;;  %v2379_v4 = vpop.f32.mrf.mxu1 }
 0x1ed   : > { %v2200_v20 = vpop.f32.mrf.mxu0  ;;  %v2592_v2 = vpop.f32.mrf.mxu1 }
 0x1ee   : > { %v5450_v3 = vadd.f32 %v2377_v50, %v2200_v20 }
 0x1ef   : > { %v2202_v7 = vpop.f32.mrf.mxu0  ;;  %v2594_v5 = vpop.f32.mrf.mxu1 }
 0x1f0   : > { %5957 = vst [vmem:[#allocation10_spill] sm:$0xff] %v5450_v3 }
 0x1f1   : > { %v2415_v30 = vpop.f32.mrf.mxu0  ;;  %v2595_v13 = vpop.f32.mrf.mxu1 }
 0x1f2   : > { %v2416_v28 = vadd.f32 %v2415_v30, %v5295_v45 }
 0x1f3   : > { %v2417_v23 = vpop.f32.mrf.mxu0  ;;  %v2597_v40 = vpop.f32.mrf.mxu1 }
 0x1f4   : > { %v5453_v56 = vadd.f32 %v2592_v2, %v2416_v28 }
 0x1f5   : > { %v2418_v41 = vpop.f32.mrf.mxu0  ;;  %v2600_v19 = vpop.f32.mrf.mxu1 }
 0x1f6   : > { %v2419_v26 = vadd.f32 %v2418_v41, %v5298_v29 }
 0x1f7   : > { %v2420_v53 = vpop.f32.mrf.mxu0  ;;  %v2602_v1 = vpop.f32.mrf.mxu1 }
 0x1f8   : > { %v5456_v25 = vadd.f32 %v2595_v13, %v2419_v26 }
 0x1f9   : > { %v2423_v0 = vpop.f32.mrf.mxu0  ;;  %v2603_v10 = vpop.f32.mrf.mxu1 }
 0x1fa   : > { %v2424_v36 = vadd.f32 %v2423_v0, %v5303_v43 }
 0x1fb   : > { %v2425_v11 = vpop.f32.mrf.mxu0  ;;  %v2605_v38 = vpop.f32.mrf.mxu1 }
 0x1fc   : > { %v5459_v33 = vadd.f32 %v2600_v19, %v2424_v36 }
 0x1fd   : > { %v2426_v45 = vpop.f32.mrf.mxu0  ;;  %v2608_v52 = vpop.f32.mrf.mxu1 }
 0x1fe   : > { %v2427_v18 = vadd.f32 %v2426_v45, %v5306_v31 }
 0x1ff   : > { %v2428_v47 = vpop.f32.mrf.mxu0  ;;  %v2610_v50 = vpop.f32.mrf.mxu1 }
 0x200   : > { %v5462_v6 = vadd.f32 %v2603_v10, %v2427_v18 }
 0x201   : > { %v2431_v29 = vpop.f32.mrf.mxu0  ;;  %v2611_v4 = vpop.f32.mrf.mxu1 }
 0x202   : > { %v2432_v20 = vadd.f32 %v2431_v29, %v5311_v14 }
 0x203   : > { %v2433_v2 = vpop.f32.mrf.mxu0  ;;  %v2613_v7 = vpop.f32.mrf.mxu1 }
 0x204   : > { %v5465_v5 = vadd.f32 %v2608_v52, %v2432_v20 }
 0x205   : > { %v2434_v43 = vpop.f32.mrf.mxu0  ;;  %v2616_v30 = vpop.f32.mrf.mxu1 }
 0x206   : > { %v2435_v13 = vadd.f32 %v2434_v43, %v5314_v48 }
 0x207   : > { %v2436_v28 = vpop.f32.mrf.mxu0  ;;  %v2618_v23 = vpop.f32.mrf.mxu1 }
 0x208   : > { %v5468_v40 = vadd.f32 %v2611_v4, %v2435_v13 }
 0x209   : > { %v2439_v31 = vpop.f32.mrf.mxu0  ;;  %v2619_v41 = vpop.f32.mrf.mxu1 }
 0x20a   : > { %v2440_v19 = vadd.f32 %v2439_v31, %v5319_v22 }
 0x20b   : > { %v2441_v26 = vpop.f32.mrf.mxu0  ;;  %v2621_v53 = vpop.f32.mrf.mxu1 }
 0x20c   : > { %v5471_v1 = vadd.f32 %v2616_v30, %v2440_v19 }
 0x20d   : > { %v2442_v14 = vpop.f32.mrf.mxu0  ;;  %v2624_v0 = vpop.f32.mrf.mxu1 }
 0x20e   : > { %v2443_v10 = vadd.f32 %v2442_v14, %v5322_v46 }
 0x20f   : > { %v2444_v36 = vpop.f32.mrf.mxu0  ;;  %v2626_v11 = vpop.f32.mrf.mxu1 }
 0x210   : > { %v5474_v38 = vadd.f32 %v2619_v41, %v2443_v10 }
 0x211   : > { %v2447_v48 = vpop.f32.mrf.mxu0  ;;  %v2627_v45 = vpop.f32.mrf.mxu1 }
 0x212   : > { %v2448_v52 = vadd.f32 %v2447_v48, %v5327_v9 }
 0x213   : > { %v2449_v18 = vpop.f32.mrf.mxu0  ;;  %v2629_v47 = vpop.f32.mrf.mxu1 }
 0x214   : > { %v5477_v50 = vadd.f32 %v2624_v0, %v2448_v52 }
 0x215   : > { %v2450_v22 = vpop.f32.mrf.mxu0  ;;  %v2632_v29 = vpop.f32.mrf.mxu1 }
 0x216   : > { %5958 = vst [vmem:[#allocation47_spill] sm:$0xff] %v5477_v50  ;;  %v2451_v4 = vadd.f32 %v2450_v22, %v5330_v27 }
 0x217   : > { %v2452_v20 = vpop.f32.mrf.mxu0  ;;  %v2634_v2 = vpop.f32.mrf.mxu1 }
 0x218   : > { %v5480_v7 = vadd.f32 %v2627_v45, %v2451_v4 }
 0x219   : > { %v2455_v46 = vpop.f32.mrf.mxu0  ;;  %v2635_v43 = vpop.f32.mrf.mxu1 }
 0x21a   : > { %5959 = vst [vmem:[#allocation13_spill] sm:$0xff] %v5480_v7  ;;  %v2456_v30 = vadd.f32 %v2455_v46, %v5335_v55 }
 0x21b   : > { %v2457_v13 = vpop.f32.mrf.mxu0  ;;  %v2637_v28 = vpop.f32.mrf.mxu1 }
 0x21c   : > { %v5483_v23 = vadd.f32 %v2632_v29, %v2456_v30 }
 0x21d   : > { %v2458_v9 = vpop.f32.mrf.mxu0  ;;  %v2640_v31 = vpop.f32.mrf.mxu1 }
 0x21e   : > { %v2459_v41 = vadd.f32 %v2458_v9, %v5338_v35 }
 0x21f   : > { %v2460_v19 = vpop.f32.mrf.mxu0  ;;  %v2642_v26 = vpop.f32.mrf.mxu1 }
 0x220   : > { %v5486_v53 = vadd.f32 %v2635_v43, %v2459_v41 }
 0x221   : > { %v2463_v27 = vpop.f32.mrf.mxu0  ;;  %v2643_v14 = vpop.f32.mrf.mxu1 }
 0x222   : > { %5960 = vst [vmem:[#allocation46_spill] sm:$0xff] %v5486_v53  ;;  %v2464_v0 = vadd.f32 %v2463_v27, %v5343_v63 }
 0x223   : > { %v2465_v10 = vpop.f32.mrf.mxu0  ;;  %v2645_v36 = vpop.f32.mrf.mxu1 }
 0x224   : > { %v5489_v11 = vadd.f32 %v2640_v31, %v2464_v0 }
 0x225   : > { %v2466_v55 = vpop.f32.mrf.mxu0  ;;  %v2648_v48 = vpop.f32.mrf.mxu1 }
 0x226   : > { %5961 = vst [vmem:[#allocation16_spill] sm:$0xff] %v5489_v11  ;;  %v2467_v45 = vadd.f32 %v2466_v55, %v5346_v32 }
 0x227   : > { %v2468_v52 = vpop.f32.mrf.mxu0  ;;  %v2650_v18 = vpop.f32.mrf.mxu1 }
 0x228   : > { %v5492_v47 = vadd.f32 %v2643_v14, %v2467_v45 }
 0x229   : > { %v2471_v35 = vpop.f32.mrf.mxu0  ;;  %v2651_v22 = vpop.f32.mrf.mxu1 }
 0x22a   : > { %5962 = vst [vmem:[#allocation19_spill] sm:$0xff] %v5492_v47  ;;  %v2472_v29 = vadd.f32 %v2471_v35, %v5350_v17 }
 0x22b   : > { %v2473_v4 = vpop.f32.mrf.mxu0  ;;  %v2653_v20 = vpop.f32.mrf.mxu1 }
 0x22c   : > { %v5495_v2 = vadd.f32 %v2648_v48, %v2472_v29 }
 0x22d   : > { %v2474_v63 = vpop.f32.mrf.mxu0  ;;  %v2656_v46 = vpop.f32.mrf.mxu1 }
 0x22e   : > { %5963 = vst [vmem:[#allocation26_spill] sm:$0xff] %v5495_v2  ;;  %v2475_v43 = vadd.f32 %v2474_v63, %v5355_v16 }
 0x22f   : > { %v2476_v30 = vpop.f32.mrf.mxu0  ;;  %v2658_v13 = vpop.f32.mrf.mxu1 }
 0x230   : > { %v5498_v28 = vadd.f32 %v2651_v22, %v2475_v43 }
 0x231   : > { %v2479_v32 = vpop.f32.mrf.mxu0  ;;  %v2659_v9 = vpop.f32.mrf.mxu1 }
 0x232   : > { %5964 = vst [vmem:[#allocation29_spill] sm:$0xff] %v5498_v28  ;;  %v2480_v31 = vadd.f32 %v2479_v32, %v5359_v58 }
 0x233   : > { %v2481_v41 = vpop.f32.mrf.mxu0  ;;  %v2661_v19 = vpop.f32.mrf.mxu1 }
 0x234   : > { %v5501_v26 = vadd.f32 %v2656_v46, %v2480_v31 }
 0x235   : > { %v2482_v17 = vpop.f32.mrf.mxu0  ;;  %v2664_v27 = vpop.f32.mrf.mxu1 }
 0x236   : > { %5965 = vst [vmem:[#allocation34_spill] sm:$0xff] %v5501_v26  ;;  %v2483_v14 = vadd.f32 %v2482_v17, %v5362_v51 }
 0x237   : > { %v2484_v0 = vpop.f32.mrf.mxu0  ;;  %v2666_v10 = vpop.f32.mrf.mxu1 }
 0x238   : > { %v5504_v36 = vadd.f32 %v2659_v9, %v2483_v14 }
 0x239   : > { %v2487_v16 = vpop.f32.mrf.mxu0  ;;  %v2667_v55 = vpop.f32.mrf.mxu1 }
 0x23a   : > { %5966 = vst [vmem:[#allocation43_spill] sm:$0xff] %v5504_v36  ;;  %v2488_v48 = vadd.f32 %v2487_v16, %v5366_v15 }
 0x23b   : > { %v2489_v45 = vpop.f32.mrf.mxu0  ;;  %v2669_v52 = vpop.f32.mrf.mxu1 }
 0x23c   : > { %v5507_v18 = vadd.f32 %v2664_v27, %v2488_v48 }
 0x23d   : > { %v2490_v58 = vpop.f32.mrf.mxu0  ;;  %v2672_v35 = vpop.f32.mrf.mxu1 }
 0x23e   : > { %5967 = vst [vmem:[#allocation48_spill] sm:$0xff] %v5507_v18  ;;  %v2491_v22 = vadd.f32 %v2490_v58, %v5370_v42 }
 0x23f   : > { %v2492_v29 = vpop.f32.mrf.mxu0  ;;  %v2674_v4 = vpop.f32.mrf.mxu1 }
 0x240   : > { %v5510_v20 = vadd.f32 %v2667_v55, %v2491_v22 }
 0x241   : > { %v2495_v51 = vpop.f32.mrf.mxu0  ;;  %v2675_v63 = vpop.f32.mrf.mxu1 }
 0x242   : > { %5968 = vst [vmem:[#allocation49_spill] sm:$0xff] %v5510_v20  ;;  %v2496_v46 = vadd.f32 %v2495_v51, %v5375_v61 }
 0x243   : > { %v2497_v43 = vpop.f32.mrf.mxu0  ;;  %v2677_v30 = vpop.f32.mrf.mxu1 }
 0x244   : > { %v5513_v13 = vadd.f32 %v2672_v35, %v2496_v46 }
 0x245   : > { %v2498_v15 = vpop.f32.mrf.mxu0  ;;  %v2680_v32 = vpop.f32.mrf.mxu1 }
 0x246   : > { %v2499_v9 = vadd.f32 %v2498_v15, %v5384_v59 }
 0x247   : > { %v2500_v31 = vpop.f32.mrf.mxu0  ;;  %v2682_v41 = vpop.f32.mrf.mxu1 }
 0x248   : > { %v5516_v19 = vadd.f32 %v2675_v63, %v2499_v9 }
 0x249   : > { %v2503_v42 = vpop.f32.mrf.mxu0  ;;  %v2683_v17 = vpop.f32.mrf.mxu1 }
 0x24b   : > { %v2505_v27 = vpop.f32.mrf.mxu0  ;;  %v2685_v14 = vpop.f32.mrf.mxu1 }
 0x24d   : > { %v2506_v0 = vpop.f32.mrf.mxu0  ;;  %v5518_v10 = vpop.f32.mrf.mxu1 }
 0x24e   : > { %v2507_v11 = vadd.f32 %v2506_v0, %v5397_v44 }
 0x24f   : > { %v2508_v61 = vpop.f32.mrf.mxu0  ;;  %v2690_v16 = vpop.f32.mrf.mxu1 }
 0x251   : > { %v2511_v55 = vpop.f32.mrf.mxu0  ;;  %v5520_v48 = vpop.f32.mrf.mxu1 }
 0x252   : > { %v2512_v7 = vadd.f32 %v2511_v55, %v5403_v21 }
 0x253   : > { %v2513_v45 = vpop.f32.mrf.mxu0  ;;  %v2693_v52 = vpop.f32.mrf.mxu1 }
 0x255   : > { %v2514_v58 = vpop.f32.mrf.mxu0  ;;  %v5522_v59 = vpop.f32.mrf.mxu1 }
 0x256   : > { %v2515_v3 = vadd.f32 %v2514_v58, %v5409_v54  ;;  %v2689_v54 = vadd.f32 %v5518_v10, %v2512_v7  ;;  %v5973_v7 = vld [vmem:[#allocation28_spill] sm:$0xff] }
 0x257   : > { %v2516_v35 = vpop.f32.mrf.mxu0  ;;  %v2698_v22 = vpop.f32.mrf.mxu1 }
 0x259   : > { %v2519_v29 = vpop.f32.mrf.mxu0  ;;  %v5524_v4 = vpop.f32.mrf.mxu1 }
 0x25b   : > { %v2521_v51 = vpop.f32.mrf.mxu0  ;;  %v2701_v63 = vpop.f32.mrf.mxu1 }
 0x25d   : > { %v2522_v46 = vpop.f32.mrf.mxu0  ;;  %v5526_v43 = vpop.f32.mrf.mxu1 }
 0x25f   : > { %v2524_v30 = vpop.f32.mrf.mxu0  ;;  %v2706_v15 = vpop.f32.mrf.mxu1 }
 0x261   : > { %v2527_v9 = vpop.f32.mrf.mxu0  ;;  %v5528_v31 = vpop.f32.mrf.mxu1 }
 0x262   : > { %v2528_v44 = vadd.f32 %v2527_v9, %v5425_v12 }
 0x263   : > { %v2529_v41 = vpop.f32.mrf.mxu0  ;;  %v2709_v27 = vpop.f32.mrf.mxu1 }
 0x264   : > { %v5587_v9 = vadd.f32 %v5526_v43, %v2528_v44 }
 0x265   : > { %v2530_v14 = vpop.f32.mrf.mxu0  ;;  %v5530_v61 = vpop.f32.mrf.mxu1 }
 0x266   : > { %v2531_v21 = vadd.f32 %v2530_v14, %v5433_v24  ;;  %v5974_v14 = vld [vmem:[#allocation2_spill] sm:$0xff] }
 0x267   : > { %v2532_v16 = vpop.f32.mrf.mxu0  ;;  %v2714_v45 = vpop.f32.mrf.mxu1 }
 0x268   : > { %v5599_v43 = vadd.f32 %v5528_v31, %v2531_v21 }
 0x269   : > { %v2535_v52 = vpop.f32.mrf.mxu0  ;;  %v5532_v35 = vpop.f32.mrf.mxu1 }
 0x26b   : > { %v2537_v22 = vpop.f32.mrf.mxu0  ;;  %v2717_v51 = vpop.f32.mrf.mxu1 }
 0x26c   : > { %v2504_v51 = vadd.f32 %v2503_v42, %v5391_v34  ;;  %v2523_v42 = vadd.f32 %v2522_v46, %v5420_v49 }
 0x26d   : > { %v2538_v63 = vpop.f32.mrf.mxu0  ;;  %v5534_v36 = vpop.f32.mrf.mxu1 }
 0x26e   : > { %v2700_v46 = vadd.f32 %v5524_v4, %v2523_v42  ;;  %v5978_v42 = vld [vmem:[#allocation5_spill] sm:$0xff] }
 0x26f   : > { %v2540_v30 = vpop.f32.mrf.mxu0  ;;  %v2722_v15 = vpop.f32.mrf.mxu1 }
 0x271   : > { %v5536_v20 = vpop.f32.mrf.mxu0  ;;  %v5538_v26 = vpop.f32.mrf.mxu1 }
 0x273   : > { %v2545_v41 = vpop.f32.mrf.mxu0  ;;  %v2725_v27 = vpop.f32.mrf.mxu1 }
 0x274   : > { %v2681_v27 = vadd.f32 %v2680_v32, %v2504_v51 }
 0x275   : > { %v5540_v18 = vpop.f32.mrf.mxu0  ;;  %v5542_v16 = vpop.f32.mrf.mxu1 }
 0x276   : > { %5969 = vst [vmem:[#allocation50_spill] sm:$0xff] %v5542_v16 }
 0x277   : > { %v2548_v45 = vpop.f32.mrf.mxu0  ;;  %v2730_v47 = vpop.f32.mrf.mxu1 }
 0x278   : > { %v2684_v47 = vadd.f32 %v2683_v17, %v2507_v11  ;;  %v5971_v17 = vld [vmem:[#allocation31_spill] sm:$0xff] }
 0x279   : > { %v5544_v28 = vpop.f32.mrf.mxu0  ;;  %v5546_v22 = vpop.f32.mrf.mxu1 }
 0x27a   : > { %5970 = vst [vmem:[#allocation51_spill] sm:$0xff] %v5546_v22  ;;  %v2520_v22 = vadd.f32 %v2519_v29, %v5413_v39  ;;  %v2536_v39 = vadd.f32 %v2535_v52, %v5437_v37  ;;  %v5972_v29 = vld [vmem:[#allocation30_spill] sm:$0xff] }
 0x27b   : > { %v2553_v30 = vpop.f32.mrf.mxu0  ;;  %v2733_v15 = vpop.f32.mrf.mxu1 }
 0x27c   : > { %v2713_v4 = vadd.f32 %v5530_v61, %v2536_v39  ;;  %v5977_v15 = vld [vmem:[#allocation4_spill] sm:$0xff]  ;;  %v2547_v61 = vadd.f32 %v5540_v18, %v5446_v8  ;;  %v5980_v8 = vld [vmem:[#allocation33_spill] sm:$0xff] }
 0x27d   : > { %v5550_v2 = vpop.f32.mrf.mxu0  ;;  %v3751_v41 = vpop.f32.mrf.mxu1 }
 0x27e   : > { %v2858_v45 = vadd.f32 %v3751_v41, %v2681_v27 }
 0x27f   : > { %v2556_v53 = vpop.f32.mrf.mxu0  ;;  %v2849_v16 = vpop.f32.mrf.mxu1 }
 0x280   : > { %v2850_v0 = vadd.f32 %v2849_v16, %v5513_v13  ;;  %v5563_v58 = vmul.f32 %v2858_v45, %v5971_v17  ;;  %v2539_v13 = vadd.f32 %v2538_v63, %v5439_v60  ;;  %v5975_v63 = vld [vmem:[#allocation3_spill] sm:$0xff]  ;;  %v5979_v17 = vld [vmem:[#allocation36_spill] sm:$0xff] }
 0x281   : > { %v3731_v50 = vpop.f32.mrf.mxu0  ;;  %v3752_v34 = vpop.f32.mrf.mxu1  ;;  %v5976_v16 = vld [vmem:[#allocation27_spill] sm:$0xff] }
 0x282   : > { %v2861_v32 = vadd.f32 %v3752_v34, %v2684_v47  ;;  %v2778_v53 = vadd.f32 %v3731_v50, %v5459_v33  ;;  %v2697_v33 = vadd.f32 %v5522_v59, %v2520_v22  ;;  %v5581_v10 = vmul.f32 %v2850_v0, %v5973_v7 }
 0x283   : > { %v2769_v55 = vpop.f32.mrf.mxu0  ;;  %v2852_v11 = vpop.f32.mrf.mxu1  ;;  %v2716_v34 = vadd.f32 %v5532_v35, %v2539_v13 }
 0x284   : > { %v2770_v49 = vadd.f32 %v2769_v55, %v5453_v56  ;;  %v5567_v12 = vmul.f32 %v2861_v32, %v5972_v29  ;;  %v2853_v37 = vadd.f32 %v2852_v11, %v5516_v19  ;;  %v2692_v56 = vadd.f32 %v5520_v48, %v2515_v3 }
 0x285   : > { %v3732_v24 = vpop.f32.mrf.mxu0  ;;  %v3755_v50 = vpop.f32.mrf.mxu1  ;;  %v2914_v52 = vmul.f32 %v2778_v53, %v5974_v14  ;;  %v5983_v14 = vld [vmem:[#allocation7_spill] sm:$0xff] }
 0x286   : > { %v3621_v60 = vpack.c.bf16 %v5567_v12, %v5563_v58  ;;  %v2912_v19 = vmul.f32 %v2770_v49, %v5975_v63  ;;  %v2781_v59 = vadd.f32 %v3732_v24, %v5462_v6  ;;  %v5593_v22 = vmul.f32 %v2853_v37, %v5976_v16  ;;  %v5981_v49 = vld [vmem:[#allocation35_spill] sm:$0xff] }
 0x287   : > { %v2772_v3 = vpop.f32.mrf.mxu0  ;;  %v2865_v48 = vpop.f32.mrf.mxu1  ;;  %v2874_v30 = vadd.f32 %v3755_v50, %v2697_v33  ;;  %v2991_v0 = vmul.f32 %v2914_v52, %v2914_v52 }
 0x288   : > { %3680 = vst [vmem:[%s5575_s12 + $0x58] sm:$0xff] %v3621_v60   ;;  %v2773_v51 = vadd.f32 %v2772_v3, %v5456_v25  ;;  %v2915_v41 = vmul.f32 %v2781_v59, %v5977_v15  ;;  %v3616_v6 = vpack.c.bf16 %v5593_v22, %v5581_v10  ;;  %v2866_v45 = vadd.f32 %v2865_v48, %v2689_v54  ;;  %v5982_v60 = vld [vmem:[#allocation9_spill] sm:$0xff] }
 0x289   : > { %v3735_v27 = vpop.f32.mrf.mxu0  ;;  %v3756_v47 = vpop.f32.mrf.mxu1  ;;  %v2544_v25 = vadd.f32 %v5536_v20, %v5444_v57  ;;  %v2989_v32 = vmul.f32 %v2912_v19, %v2912_v19  ;;  %v5613_v57 = vmul.f32 %v2874_v30, %v5979_v17 }
 0x28a   : > { %v2913_v31 = vmul.f32 %v2773_v51, %v5978_v42  ;;  %v2877_v44 = vadd.f32 %v3756_v47, %v2700_v46  ;;  %v3571_v21 = vpack.c.bf16 %v2915_v41, %v2914_v52  ;;  %3679 = vst [vmem:[%s5575_s12 + $0x50] sm:$0xff] %v3616_v6   ;;  %v2794_v53 = vadd.f32 %v3735_v27, %v5471_v1 }
 0x28b   : > { %v2785_v55 = vpop.f32.mrf.mxu0  ;;  %v2868_v11 = vpop.f32.mrf.mxu1  ;;  %v5617_v18 = vmul.f32 %v2866_v45, %v5980_v8  ;;  %v2992_v37 = vmul.f32 %v2915_v41, %v2915_v41  ;;  %v2721_v45 = vadd.f32 %v5534_v36, %v2544_v25  ;;  %v5639_v47 = vadd.f32 %v5538_v26, %v2547_v61  ;;  %v5987_v26 = vld [vmem:[#allocation47_spill] sm:$0xff] }
 0x28c   : > { %v2948_v35 = vadd.f32 %v2913_v31, %v2912_v19  ;;  %v2990_v54 = vmul.f32 %v2913_v31, %v2913_v31  ;;  %v3566_v39 = vpack.c.bf16 %v2913_v31, %v2912_v19  ;;  %3670 = vst [vmem:[%s5575_s12 + $0x8] sm:$0xff] %v3571_v21   ;;  %v2786_v20 = vadd.f32 %v2785_v55, %v5465_v5  ;;  %v5984_v19 = vld [vmem:[#allocation32_spill] sm:$0xff] }
 0x28d   : > { %v5621_v29 = vmul.f32 %v2877_v44, %v5981_v49  ;;  %v3736_v13 = vpop.f32.mrf.mxu0  ;;  %v2869_v1 = vadd.f32 %v2868_v11, %v2692_v56  ;;  %v3759_v24 = vpop.f32.mrf.mxu1  ;;  %v2918_v46 = vmul.f32 %v2794_v53, %v5982_v60  ;;  %v5990_v49 = vld [vmem:[#allocation12_spill] sm:$0xff] }
 0x28e   : > { %v2949_v33 = vadd.f32 %v2948_v35, %v2914_v52  ;;  %v3025_v50 = vadd.f32 %v2990_v54, %v2989_v32  ;;  %3567 = vst [vmem:[%s5575_s12] sm:$0xff] %v3566_v39   ;;  %v2797_v7 = vadd.f32 %v3736_v13, %v5474_v38  ;;  %v2916_v63 = vmul.f32 %v2786_v20, %v5983_v14  ;;  %v5985_v52 = vld [vmem:[#allocation8_spill] sm:$0xff]  ;;  %v5988_v35 = vld [vmem:[#allocation10_spill] sm:$0xff] }
 0x28f   : > { %v3631_v5 = vpack.c.bf16 %v5621_v29, %v5613_v57  ;;  %v5630_v59 = vmul.f32 %v2869_v1, %v5984_v19  ;;  %v2788_v16 = vpop.f32.mrf.mxu0  ;;  %v2881_v56 = vpop.f32.mrf.mxu1  ;;  %v2890_v44 = vadd.f32 %v3759_v24, %v2713_v4  ;;  %v2995_v8 = vmul.f32 %v2918_v46, %v2918_v46  ;;  %v5991_v1 = vld [vmem:[#allocation39_spill] sm:$0xff]  ;;  %v5995_v19 = vld [vmem:[#allocation38_spill] sm:$0xff] }
 0x290   : > { %v3026_v3 = vadd.f32 %v3025_v50, %v2991_v0  ;;  %v2950_v48 = vadd.f32 %v2949_v33, %v2915_v41  ;;  %v2919_v51 = vmul.f32 %v2797_v7, %v5985_v52  ;;  %v2789_v30 = vadd.f32 %v2788_v16, %v5468_v40  ;;  %v5986_v0 = vld [vmem:[#allocation6_spill] sm:$0xff] }
 0x291   : > { %v2993_v38 = vmul.f32 %v2916_v63, %v2916_v63  ;;  %3682 = vst [vmem:[%s5575_s12 + $0x68] sm:$0xff] %v3631_v5   ;;  %v3626_v15 = vpack.c.bf16 %v5630_v59, %v5617_v18  ;;  %v3739_v6 = vpop.f32.mrf.mxu0  ;;  %v3760_v27 = vpop.f32.mrf.mxu1  ;;  %v2552_v40 = vadd.f32 %v5544_v28, %v5448_v62  ;;  %v2882_v53 = vadd.f32 %v2881_v56, %v5587_v9  ;;  %v5989_v9 = vld [vmem:[#allocation40_spill] sm:$0xff]  ;;  %v5996_v56 = vld [vmem:[#allocation50_spill] sm:$0xff] }
 0x292   : > { %v2951_v42 = vadd.f32 %v2950_v48, %v2916_v63  ;;  %v3027_v31 = vadd.f32 %v3026_v3, %v2992_v37  ;;  %v3581_v41 = vpack.c.bf16 %v2919_v51, %v2918_v46  ;;  %v2917_v32 = vmul.f32 %v2789_v30, %v5986_v0  ;;  %v5997_v30 = vld [vmem:[#allocation14_spill] sm:$0xff] }
 0x293   : > { %3681 = vst [vmem:[%s5575_s12 + $0x60] sm:$0xff] %v3626_v15   ;;  %v2810_v21 = vadd.f32 %v3739_v6, %v5483_v23  ;;  %v2801_v55 = vpop.f32.mrf.mxu0  ;;  %v2884_v11 = vpop.f32.mrf.mxu1  ;;  %v2893_v61 = vadd.f32 %v3760_v27, %v2716_v34  ;;  %v2555_v62 = vadd.f32 %v5550_v2, %v5988_v35  ;;  %v5653_v20 = vmul.f32 %v2890_v44, %v5989_v9  ;;  %v5993_v2 = vld [vmem:[#allocation37_spill] sm:$0xff]  ;;  %v5999_v44 = vld [vmem:[#allocation51_spill] sm:$0xff]  ;;  %v6002_v35 = vld [vmem:[#allocation16_spill] sm:$0xff] }
 0x294   : > { %v3028_v36 = vadd.f32 %v3027_v31, %v2993_v38  ;;  %3672 = vst [vmem:[%s5575_s12 + $0x18] sm:$0xff] %v3581_v41   ;;  %v2802_v25 = vadd.f32 %v2801_v55, %v5987_v26  ;;  %v2885_v4 = vadd.f32 %v2884_v11, %v5599_v43  ;;  %v2952_v28 = vadd.f32 %v2951_v42, %v2917_v32  ;;  %v5992_v43 = vld [vmem:[#allocation46_spill] sm:$0xff]  ;;  %v5998_v31 = vld [vmem:[#allocation13_spill] sm:$0xff]  ;;  %v6000_v11 = vld [vmem:[#allocation11_spill] sm:$0xff] }
 0x295   : > { %v2994_v54 = vmul.f32 %v2917_v32, %v2917_v32  ;;  %v3576_v39 = vpack.c.bf16 %v2917_v32, %v2916_v63  ;;  %v3740_v17 = vpop.f32.mrf.mxu0  ;;  %v3763_v23 = vpop.f32.mrf.mxu1  ;;  %v5657_v24 = vmul.f32 %v2893_v61, %v5991_v1  ;;  %v2996_v14 = vmul.f32 %v2919_v51, %v2919_v51  ;;  %v5994_v63 = vld [vmem:[#allocation15_spill] sm:$0xff]  ;;  %v6001_v26 = vld [vmem:[#allocation26_spill] sm:$0xff] }
 0x296   : > { %v2920_v13 = vmul.f32 %v2802_v25, %v5990_v49  ;;  %v2953_v34 = vadd.f32 %v2952_v28, %v2918_v46  ;;  %v2813_v33 = vadd.f32 %v3740_v17, %v5992_v43  ;;  %v5662_v50 = vmul.f32 %v2885_v4, %v5993_v2  ;;  %v6003_v49 = vld [vmem:[#allocation45_spill] sm:$0xff]  ;;  %v6005_v43 = vld [vmem:[#allocation44_spill] sm:$0xff] }
 0x297   : > { %v3029_v37 = vadd.f32 %v3028_v36, %v2994_v54  ;;  %3671 = vst [vmem:[%s5575_s12 + $0x10] sm:$0xff] %v3576_v39   ;;  %v2804_v7 = vpop.f32.mrf.mxu0  ;;  %v2897_v60 = vpop.f32.mrf.mxu1  ;;  %v2922_v5 = vmul.f32 %v2810_v21, %v5994_v63  ;;  %v5666_v16 = vmul.f32 %v2882_v53, %v5995_v19  ;;  %v2729_v3 = vadd.f32 %v5996_v56, %v2552_v40  ;;  %v6007_v63 = vld [vmem:[#allocation41_spill] sm:$0xff] }
 0x298   : > { %v2954_v46 = vadd.f32 %v2953_v34, %v2919_v51  ;;  %v3641_v52 = vpack.c.bf16 %v5657_v24, %v5653_v20  ;;  %v2923_v38 = vmul.f32 %v2813_v33, %v5997_v30  ;;  %v2997_v27 = vmul.f32 %v2920_v13, %v2920_v13  ;;  %v6004_v34 = vld [vmem:[#allocation18_spill] sm:$0xff]  ;;  %v6008_v19 = vld [vmem:[#allocation21_spill] sm:$0xff] }
 0x299   : > { %v3030_v48 = vadd.f32 %v3029_v37, %v2995_v8  ;;  %v3743_v15 = vpop.f32.mrf.mxu0  ;;  %v3764_v6 = vpop.f32.mrf.mxu1  ;;  %v3636_v42 = vpack.c.bf16 %v5662_v50, %v5666_v16  ;;  %v2805_v41 = vadd.f32 %v2804_v7, %v5998_v31  ;;  %v2732_v0 = vadd.f32 %v5999_v44, %v2555_v62  ;;  %v6011_v31 = vld [vmem:[#allocation19_spill] sm:$0xff] }
 0x29a   : > { %v2955_v40 = vadd.f32 %v2954_v46, %v2920_v13  ;;  %3684 = vst [vmem:[%s5575_s12 + $0x78] sm:$0xff] %v3641_v52   ;;  %v3591_v51 = vpack.c.bf16 %v2923_v38, %v2922_v5  ;;  %v2906_v21 = vadd.f32 %v3763_v23, %v2729_v3  ;;  %v2826_v25 = vadd.f32 %v3743_v15, %v6001_v26  ;;  %v6009_v3 = vld [vmem:[#allocation42_spill] sm:$0xff]  ;;  %v6010_v15 = vld [vmem:[#allocation20_spill] sm:$0xff] }
 0x29b   : > { %v3031_v32 = vadd.f32 %v3030_v48, %v2996_v14  ;;  %v2817_v53 = vpop.f32.mrf.mxu0  ;;  %v2900_v55 = vpop.f32.mrf.mxu1  ;;  %3683 = vst [vmem:[%s5575_s12 + $0x70] sm:$0xff] %v3636_v42   ;;  %v2921_v36 = vmul.f32 %v2805_v41, %v6000_v11  ;;  %v2898_v61 = vadd.f32 %v2897_v60, %v2721_v45  ;;  %v2909_v54 = vadd.f32 %v3764_v6, %v2732_v0  ;;  %v6006_v60 = vld [vmem:[#allocation29_spill] sm:$0xff] }
 0x29c   : > { %3674 = vst [vmem:[%s5575_s12 + $0x28] sm:$0xff] %v3591_v51   ;;  %v2818_v28 = vadd.f32 %v2817_v53, %v6002_v35  ;;  %v2901_v39 = vadd.f32 %v2900_v55, %v5639_v47  ;;  %v2999_v9 = vmul.f32 %v2922_v5, %v2922_v5  ;;  %v5684_v1 = vmul.f32 %v2906_v21, %v6003_v49  ;;  %v6012_v51 = vld [vmem:[#allocation48_spill] sm:$0xff]  ;;  %v6014_v55 = vld [vmem:[#allocation34_spill] sm:$0xff] }
 0x29d   : > { %v3032_v4 = vadd.f32 %v3031_v32, %v2997_v27  ;;  %v3744_v62 = vpop.f32.mrf.mxu0  ;;  %v2956_v17 = vadd.f32 %v2955_v40, %v2921_v36  ;;  %v2998_v8 = vmul.f32 %v2921_v36, %v2921_v36  ;;  %v3586_v23 = vpack.c.bf16 %v2921_v36, %v2920_v13 }
 0x29e   : > { %v2924_v37 = vmul.f32 %v2818_v28, %v6004_v34  ;;  %v5688_v45 = vmul.f32 %v2909_v54, %v6005_v43  ;;  %v2829_v14 = vadd.f32 %v3744_v62, %v6006_v60  ;;  %v5693_v47 = vmul.f32 %v2901_v39, %v6007_v63  ;;  %v6016_v62 = vld [vmem:[#allocation25_spill] sm:$0xff]  ;;  %v6020_v60 = vld [vmem:[#allocation22_spill] sm:$0xff] }
 0x29f   : > { %v2820_v33 = vpop.f32.mrf.mxu0  ;;  %v2957_v2 = vadd.f32 %v2956_v17, %v2922_v5  ;;  %v3033_v7 = vadd.f32 %v3032_v4, %v2998_v8  ;;  %3673 = vst [vmem:[%s5575_s12 + $0x20] sm:$0xff] %v3586_v23   ;;  %v3000_v13 = vmul.f32 %v2923_v38, %v2923_v38  ;;  %v2926_v56 = vmul.f32 %v2826_v25, %v6008_v19  ;;  %v6015_v25 = vld [vmem:[#allocation49_spill] sm:$0xff]  ;;  %v6017_v17 = vld [vmem:[#allocation24_spill] sm:$0xff]  ;;  %v6018_v23 = vld [vmem:[#allocation43_spill] sm:$0xff] }
 0x2a0   : > { %v5697_v48 = vmul.f32 %v2898_v61, %v6009_v3  ;;  %v3651_v5 = vpack.c.bf16 %v5688_v45, %v5684_v1  ;;  %v2927_v6 = vmul.f32 %v2829_v14, %v6010_v15  ;;  %v3001_v27 = vmul.f32 %v2924_v37, %v2924_v37 }
 0x2a1   : > { %v3747_v46 = vpop.f32.mrf.mxu0  ;;  %v3034_v52 = vadd.f32 %v3033_v7, %v2999_v9  ;;  %v2958_v30 = vadd.f32 %v2957_v2, %v2923_v38  ;;  %v2821_v41 = vadd.f32 %v2820_v33, %v6011_v31  ;;  %v6013_v38 = vld [vmem:[#allocation17_spill] sm:$0xff]  ;;  %v3003_v49 = vmul.f32 %v2926_v56, %v2926_v56  ;;  %v6019_v33 = vld [vmem:[#allocation23_spill] sm:$0xff] }
 0x2a2   : > { %v3646_v42 = vpack.c.bf16 %v5693_v47, %v5697_v48  ;;  %3686 = vst [vmem:[%s5575_s12 + $0x88] sm:$0xff] %v3651_v5   ;;  %v3601_v32 = vpack.c.bf16 %v2927_v6, %v2926_v56  ;;  %v2842_v21 = vadd.f32 %v3747_v46, %v6012_v51  ;;  %v3004_v63 = vmul.f32 %v2927_v6, %v2927_v6 }
 0x2a3   : > { %v2833_v44 = vpop.f32.mrf.mxu0  ;;  %v2959_v0 = vadd.f32 %v2958_v30, %v2924_v37  ;;  %v3035_v40 = vadd.f32 %v3034_v52, %v3000_v13  ;;  %v2925_v53 = vmul.f32 %v2821_v41, %v6013_v38  ;;  %v3011_v38 = vmul.f32 %v5563_v58, %v5563_v58 }
 0x2a4   : > { %3685 = vst [vmem:[%s5575_s12 + $0x80] sm:$0xff] %v3646_v42   ;;  %v2834_v11 = vadd.f32 %v2833_v44, %v6014_v55  ;;  %3676 = vst [vmem:[%s5575_s12 + $0x38] sm:$0xff] %v3601_v32   ;;  %v2930_v39 = vmul.f32 %v2842_v21, %v6016_v62  ;;  %v3010_v32 = vmul.f32 %v5593_v22, %v5593_v22 }
 0x2a5   : > { %v3748_v36 = vpop.f32.mrf.mxu0  ;;  %v3036_v26 = vadd.f32 %v3035_v40, %v3001_v27  ;;  %v2960_v4 = vadd.f32 %v2959_v0, %v2925_v53  ;;  %v3002_v35 = vmul.f32 %v2925_v53, %v2925_v53  ;;  %v3596_v28 = vpack.c.bf16 %v2925_v53, %v2924_v37 }
 0x2a6   : > { %v2845_v61 = vadd.f32 %v3748_v36, %v6015_v25  ;;  %v2928_v2 = vmul.f32 %v2834_v11, %v6019_v33  ;;  %v3009_v0 = vmul.f32 %v5581_v10, %v5581_v10  ;;  %v3012_v11 = vmul.f32 %v5567_v12, %v5567_v12 }
 0x2a7   : > { %v2836_v54 = vpop.f32.mrf.mxu0  ;;  %v2961_v34 = vadd.f32 %v2960_v4, %v2926_v56  ;;  %v3037_v43 = vadd.f32 %v3036_v26, %v3002_v35  ;;  %3675 = vst [vmem:[%s5575_s12 + $0x30] sm:$0xff] %v3596_v28   ;;  %v3007_v56 = vmul.f32 %v2930_v39, %v2930_v39 }
 0x2a8   : > { %v2931_v8 = vmul.f32 %v2845_v61, %v6017_v17  ;;  %v2837_v9 = vadd.f32 %v2836_v54, %v6018_v23  ;;  %v3005_v46 = vmul.f32 %v2928_v2, %v2928_v2 }
 0x2a9   : > { %v3038_v13 = vadd.f32 %v3037_v43, %v3003_v49  ;;  %v2962_v37 = vadd.f32 %v2961_v34, %v2927_v6 }
 0x2aa   : > { %v3611_v7 = vpack.c.bf16 %v2931_v8, %v2930_v39  ;;  %v2929_v14 = vmul.f32 %v2837_v9, %v6020_v60  ;;  %v3008_v31 = vmul.f32 %v2931_v8, %v2931_v8 }
 0x2ab   : > { %v2963_v3 = vadd.f32 %v2962_v37, %v2928_v2  ;;  %v3039_v52 = vadd.f32 %v3038_v13, %v3004_v63  ;;  %v3024_v13 = vmul.f32 %v5688_v45, %v5688_v45 }
 0x2ac   : > { %3678 = vst [vmem:[%s5575_s12 + $0x48] sm:$0xff] %v3611_v7   ;;  %v3606_v19 = vpack.c.bf16 %v2929_v14, %v2928_v2  ;;  %v3006_v30 = vmul.f32 %v2929_v14, %v2929_v14 }
 0x2ad   : > { %v3040_v5 = vadd.f32 %v3039_v52, %v3005_v46  ;;  %v2964_v15 = vadd.f32 %v2963_v3, %v2929_v14 }
 0x2ae   : > { %3677 = vst [vmem:[%s5575_s12 + $0x40] sm:$0xff] %v3606_v19  }
 0x2af   : > { %v2965_v27 = vadd.f32 %v2964_v15, %v2930_v39  ;;  %v3041_v42 = vadd.f32 %v3040_v5, %v3006_v30 }
 0x2b1   : > { %v2966_v41 = vadd.f32 %v2965_v27, %v2931_v8  ;;  %v3042_v44 = vadd.f32 %v3041_v42, %v3007_v56 }
 0x2b3   : > { %v2967_v6 = vadd.f32 %v2966_v41, %v5581_v10  ;;  %v3043_v40 = vadd.f32 %v3042_v44, %v3008_v31  ;;  %v3013_v10 = vmul.f32 %v5617_v18, %v5617_v18 }
 0x2b5   : > { %v2968_v51 = vadd.f32 %v2967_v6, %v5593_v22  ;;  %v3044_v21 = vadd.f32 %v3043_v40, %v3009_v0  ;;  %v3014_v22 = vmul.f32 %v5630_v59, %v5630_v59 }
 0x2b7   : > { %v2969_v53 = vadd.f32 %v2968_v51, %v5563_v58  ;;  %v3045_v55 = vadd.f32 %v3044_v21, %v3010_v32  ;;  %v3015_v58 = vmul.f32 %v5613_v57, %v5613_v57 }
 0x2b9   : > { %v2970_v36 = vadd.f32 %v2969_v53, %v5567_v12  ;;  %v3046_v26 = vadd.f32 %v3045_v55, %v3011_v38  ;;  %v3016_v12 = vmul.f32 %v5621_v29, %v5621_v29 }
 0x2bb   : > { %v2971_v25 = vadd.f32 %v2970_v36, %v5617_v18  ;;  %v3047_v61 = vadd.f32 %v3046_v26, %v3012_v11  ;;  %v3017_v18 = vmul.f32 %v5666_v16, %v5666_v16 }
 0x2bd   : > { %v2972_v4 = vadd.f32 %v2971_v25, %v5630_v59  ;;  %v3048_v35 = vadd.f32 %v3047_v61, %v3013_v10  ;;  %v3018_v59 = vmul.f32 %v5662_v50, %v5662_v50 }
 0x2bf   : > { %v2973_v28 = vadd.f32 %v2972_v4, %v5613_v57  ;;  %v3049_v54 = vadd.f32 %v3048_v35, %v3014_v22  ;;  %v3019_v57 = vmul.f32 %v5653_v20, %v5653_v20 }
 0x2c1   : > { %v2974_v62 = vadd.f32 %v2973_v28, %v5621_v29  ;;  %v3050_v39 = vadd.f32 %v3049_v54, %v3015_v58  ;;  %v3020_v29 = vmul.f32 %v5657_v24, %v5657_v24 }
 0x2c3   : > { %v2975_v17 = vadd.f32 %v2974_v62, %v5666_v16  ;;  %v3051_v8 = vadd.f32 %v3050_v39, %v3016_v12  ;;  %v3021_v16 = vmul.f32 %v5697_v48, %v5697_v48 }
 0x2c5   : > { %v2976_v23 = vadd.f32 %v2975_v17, %v5662_v50  ;;  %v3052_v9 = vadd.f32 %v3051_v8, %v3017_v18  ;;  %v3022_v50 = vmul.f32 %v5693_v47, %v5693_v47 }
 0x2c7   : > { %v2977_v49 = vadd.f32 %v2976_v23, %v5653_v20  ;;  %v3053_v34 = vadd.f32 %v3052_v9, %v3018_v59  ;;  %v3023_v20 = vmul.f32 %v5684_v1, %v5684_v1 }
 0x2c9   : > { %v2978_v43 = vadd.f32 %v2977_v49, %v5657_v24  ;;  %v3054_v33 = vadd.f32 %v3053_v34, %v3019_v57 }
 0x2cb   : > { %v2979_v2 = vadd.f32 %v2978_v43, %v5697_v48  ;;  %v3055_v7 = vadd.f32 %v3054_v33, %v3020_v29 }
 0x2cd   : > { %v2980_v60 = vadd.f32 %v2979_v2, %v5693_v47  ;;  %v3056_v14 = vadd.f32 %v3055_v7, %v3021_v16 }
 0x2cf   : > { %v2981_v63 = vadd.f32 %v2980_v60, %v5684_v1  ;;  %v3057_v24 = vadd.f32 %v3056_v14, %v3022_v50 }
 0x2d1   : > { %v2982_v37 = vadd.f32 %v2981_v63, %v5688_v45  ;;  %v3058_v48 = vadd.f32 %v3057_v24, %v3023_v20 }
 0x2d3   : > { %v2983_v19 = vrot.slane %v2982_v37, 4  ;;  %v3059_v3 = vadd.f32 %v3058_v48, %v3024_v13 }
 0x2d5   : > { %v2984_v46 = vadd.f32 %v2983_v19, %v2982_v37  ;;  %v3060_v52 = vrot.slane %v3059_v3, 4 }
 0x2d7   : > { %v2985_v30 = vrot.slane %v2984_v46, 2  ;;  %v3061_v47 = vadd.f32 %v3060_v52, %v3059_v3 }
 0x2d9   : > { %v2986_v5 = vadd.f32 %v2985_v30, %v2984_v46  ;;  %v3062_v15 = vrot.slane %v3061_v47, 2 }
 0x2db   : > { %v2987_v56 = vrot.slane %v2986_v5, 1  ;;  %v3063_v27 = vadd.f32 %v3062_v15, %v3061_v47 }
 0x2dd   : > { %v3064_v42 = vrot.slane %v3063_v27, 1  ;;  %v2988_v1 = vadd.f32 %v2987_v56, %v2986_v5 }
 0x2df   : > { %v3065_v45 = vadd.f32 %v3064_v42, %v3063_v27 }
 0x2e1   : > { %v3067_v31 = vsel %vm3066_vm9, %v2988_v1, %v3065_v45 }
 0x2e2   : > { %3068 = vst [vmem:[%s262_s15] sm:$0x3] %v3067_v31 }
 0x2e3 PF: > { %s17_s21 = sadd.s32 1, %s3871_s21  }
 0x2e4   : > { %p14_p4 = scmp.ge.s32.totalorder %s17_s21, 4  }
 0x2e6   :  { %16 = sbr.rel (!%p14_p4) target bundleno = 1 (0x1), region = 82 }

</bundles_post_ra>
